<compile_context>
chip_gen: v7x
topology: tpu7x:2x2x1
jax: 0.10.0
libtpu: 0.0.40
codegen_flags: <defaults>
</compile_context>

<pallas_src>
import jax
import jax.numpy as jnp
from jax.experimental import pallas as pl
from jax.experimental.pallas import tpu as pltpu

K = 5            # kernel_size
PAD = 2          # padding
NEG_SLOPE = 0.2  # LeakyReLU negative slope


def _round_up(x, m):
    return ((x + m - 1) // m) * m


def p4cz2_kernel(x_ref, w_ref, b_ref, o_ref):
    """One (batch, H-strip) tile.

    x_ref: (Hp*Cin_p, Wp)    bf16; row = h*Cin_p + ci, spatial W in lanes.
                             Whole padded image, resident across the strip axis.
    w_ref: (K, C4, K*Cin_p)  bf16; w_ref[kw, o, kh*Cin_p + ci] = rotated tap.
    b_ref: (C4, 1)           f32 bias (shared over the 4 rotations).
    o_ref: (C4, TH, W)       output strip, written row by row.
    """
    C4, TH, W = o_ref.shape
    KC = w_ref.shape[2]              # K * Cin_p
    cin_p = KC // K

    h = pl.program_id(1)
    # First flattened input row of this strip.  Cin_p is a multiple of 16, so
    # every dynamic sublane offset below is bf16-packing/tile aligned.
    base = pl.multiple_of(h * (TH * cin_p), TH * cin_p)

    # Hoist the small weight slabs and the bias out of the row loop.
    w_taps = [w_ref[kw] for kw in range(K)]      # each (C4, KC) bf16
    b = b_ref[...]                               # (C4, 1) f32

    for y in range(TH):                          # static, unrolled
        r0 = pl.multiple_of(base + y * cin_p, cin_p)
        acc = None
        for kw in range(K):
            # Dense (K*Cin_p, W) slab: all (kh, ci) taps for this kw are
            # consecutive sublane rows; the lane window is shifted by the
            # static offset kw.  Feeds the MXU directly — no im2col scratch,
            # no masked sub-lane stores.
            slab = x_ref[pl.ds(r0, KC), pl.ds(kw, W)]
            p = jnp.dot(w_taps[kw], slab, preferred_element_type=jnp.float32)
            acc = p if acc is None else acc + p
        acc = acc + b                             # (C4, W) f32
        # Full-lane row store at a static sublane offset (dense for W >= 128).
        o_ref[:, y, :] = jnp.maximum(acc, NEG_SLOPE * acc).astype(o_ref.dtype)


def p4cz2_forward(x_nchw, weight, bias, *, tile_h=8, out_dtype=jnp.float32):
    """x_nchw: (N, Cin, H, W); weight: (Cout, Cin, K, K); bias: (Cout,).

    Returns (N, Cout, 4, H, W) float32, matching P4CZ2.forward.
    """
    N, Cin, H, W = x_nchw.shape
    Cout = weight.shape[0]
    C4 = Cout * 4
    assert tile_h % 8 == 0, "tile_h must be a multiple of 8"
    TH = tile_h
    Hc = _round_up(H, TH)            # computed rows; extras sliced off below
    Hp = Hc + 2 * PAD
    Wp = W + 2 * PAD
    Cin_p = _round_up(Cin, 16)       # keep dynamic sublane offsets tile-aligned
    KC = K * Cin_p

    # --- weights: rotated bank -> (K_w, C4, K_h*Cin_p) bf16 -------------------
    # Output-channel ordering o = c_out*4 + r, r = CCW rotation index (same
    # convention as the previously validated version).
    w_rots = [jnp.rot90(weight, k=r, axes=(2, 3)) for r in range(4)]
    w_all = jnp.stack(w_rots, axis=1).reshape(C4, Cin, K, K)
    w_all = jnp.pad(w_all, ((0, 0), (0, Cin_p - Cin), (0, 0), (0, 0)))
    w_kw = jnp.transpose(w_all, (3, 0, 2, 1)).reshape(K, C4, KC)
    w_kw = w_kw.astype(jnp.bfloat16)
    b2d = jnp.repeat(bias, 4).reshape(C4, 1).astype(jnp.float32)

    # --- input: NCHW -> (N, Hp*Cin_p, Wp) bf16, spatial W in lanes ------------
    # TODO(synk): if the surrounding model keeps activations in this (H, C, W)
    # layout, this transpose/pad becomes a fusable no-op in the neighbours.
    x_hcw = jnp.transpose(x_nchw, (0, 2, 1, 3))                # (N, H, Cin, W)
    x_pad = jnp.pad(
        x_hcw,
        ((0, 0), (PAD, PAD + (Hc - H)), (0, Cin_p - Cin), (PAD, PAD)))
    x2d = x_pad.reshape(N, Hp * Cin_p, Wp).astype(jnp.bfloat16)

    out = pl.pallas_call(
        p4cz2_kernel,
        out_shape=jax.ShapeDtypeStruct((N, C4, Hc, W), out_dtype),
        grid=(N, Hc // TH),
        in_specs=[
            # Whole padded image; resident across the strip axis (re-DMA'd only
            # when the batch index changes).
            pl.BlockSpec((None, Hp * Cin_p, Wp), lambda n, h: (n, 0, 0)),
            pl.BlockSpec((K, C4, KC), lambda n, h: (0, 0, 0)),
            pl.BlockSpec((C4, 1), lambda n, h: (0, 0)),
        ],
        out_specs=pl.BlockSpec((None, C4, TH, W), lambda n, h: (n, 0, h, 0)),
        compiler_params=pltpu.CompilerParams(
            # Batch axis may be sharded across TensorCores; the strip axis is
            # kept on-core so the resident image is reused, not duplicated.
            dimension_semantics=("parallel", "arbitrary"),
            vmem_limit_bytes=32 * 1024 * 1024),
    )(x2d, w_kw, b2d)
    # TODO(synk): for production-size images on v7x (64 MiB VMEM), replace the
    # resident image with halo'd H-strip DMA (memory_space=pl.ANY +
    # pltpu.make_async_copy) and/or store bf16 outputs to halve writeback.

    if Hc != H:
        out = out[:, :, :H, :]
    # (N, C4, H, W) -> (N, Cout, 4, H, W): a free reshape, no transpose.
    return out.reshape(N, Cout, 4, H, W).astype(jnp.float32)


def _reference(x_nchw, weight, bias):
    """Pure-XLA f32 reference: expanded-filter conv2d + bias + LeakyReLU."""
    N, Cin, H, W = x_nchw.shape
    Cout = weight.shape[0]
    w_rots = [jnp.rot90(weight, k=r, axes=(2, 3)) for r in range(4)]
    w_all = jnp.stack(w_rots, axis=1).reshape(Cout * 4, Cin, K, K)
    y = jax.lax.conv_general_dilated(
        x_nchw, w_all, window_strides=(1, 1),
        padding=((PAD, PAD), (PAD, PAD)),
        dimension_numbers=("NCHW", "OIHW", "NCHW"))
    y = y + jnp.repeat(bias, 4)[None, :, None, None]
    y = jnp.where(y > 0, y, NEG_SLOPE * y)
    return y.reshape(N, Cout, 4, H, W)


if __name__ == "__main__":
    key = jax.random.PRNGKey(0)
    k_x, k_w, k_b = jax.random.split(key, 3)

    N, Cin, Cout, H, W = 2, 4, 8, 16, 16
    x = jax.random.normal(k_x, (N, Cin, H, W), dtype=jnp.float32)
    weight = 0.1 * jax.random.normal(k_w, (Cout, Cin, K, K), dtype=jnp.float32)
    bias = 0.05 * jax.random.normal(k_b, (Cout,), dtype=jnp.float32)

    out = jax.jit(p4cz2_forward)(x, weight, bias)
    jax.block_until_ready(out)
    assert out.shape == (N, Cout, 4, H, W), out.shape

    # Sanity check vs an f32 XLA reference (kernel uses bf16 operands).
    ref = _reference(x, weight, bias)
    err = float(jnp.max(jnp.abs(out - ref)))
    assert err < 1e-1, f"max abs error {err}"

    print("KERNEL_OK")
</pallas_src>

<mosaic_0001>
module attributes {stable_mosaic.version = 11 : i64} {
  func.func @p4cz2_kernel(%arg0: i32, %arg1: i32, %arg2: memref<1x320x20xbf16, #tpu.memory_space<vmem>>, %arg3: memref<5x32x80xbf16, #tpu.memory_space<vmem>>, %arg4: memref<32x1xf32, #tpu.memory_space<vmem>>, %arg5: memref<1x32x8x16xf32, #tpu.memory_space<vmem>>) attributes {dimension_semantics = [#tpu.dimension_semantics<parallel>, #tpu.dimension_semantics<arbitrary>], iteration_bounds = array<i64: 2, 2>, scalar_prefetch = 0 : i64, scratch_operands = 0 : i64, tpu.core_type = #tpu.core_type<tc>, window_params = [{transform_indices = @transform_0, window_bounds = array<i64: 1, 320, 20>}, {pipeline_mode = #tpu.pipeline_mode<synchronous>, transform_indices = @transform_1, window_bounds = array<i64: 5, 32, 80>}, {pipeline_mode = #tpu.pipeline_mode<synchronous>, transform_indices = @transform_2, window_bounds = array<i64: 32, 1>}, {transform_indices = @transform_3, window_bounds = array<i64: 1, 32, 8, 16>}]} {
    %c128_i32 = arith.constant 128 : i32
    %0 = arith.muli %arg1, %c128_i32 : i32
    %1 = tpu.assume_multiple %0, 128 : i32
    %c0 = arith.constant 0 : index
    %c0_0 = arith.constant 0 : index
    %c0_1 = arith.constant 0 : index
    %2 = vector.load %arg3[%c0, %c0_0, %c0_1] : memref<5x32x80xbf16, #tpu.memory_space<vmem>>, vector<1x32x80xbf16>
    %3 = vector.shape_cast %2 : vector<1x32x80xbf16> to vector<32x80xbf16>
    %c1 = arith.constant 1 : index
    %c0_2 = arith.constant 0 : index
    %c0_3 = arith.constant 0 : index
    %4 = vector.load %arg3[%c1, %c0_2, %c0_3] : memref<5x32x80xbf16, #tpu.memory_space<vmem>>, vector<1x32x80xbf16>
    %5 = vector.shape_cast %4 : vector<1x32x80xbf16> to vector<32x80xbf16>
    %c2 = arith.constant 2 : index
    %c0_4 = arith.constant 0 : index
    %c0_5 = arith.constant 0 : index
    %6 = vector.load %arg3[%c2, %c0_4, %c0_5] : memref<5x32x80xbf16, #tpu.memory_space<vmem>>, vector<1x32x80xbf16>
    %7 = vector.shape_cast %6 : vector<1x32x80xbf16> to vector<32x80xbf16>
    %c3 = arith.constant 3 : index
    %c0_6 = arith.constant 0 : index
    %c0_7 = arith.constant 0 : index
    %8 = vector.load %arg3[%c3, %c0_6, %c0_7] : memref<5x32x80xbf16, #tpu.memory_space<vmem>>, vector<1x32x80xbf16>
    %9 = vector.shape_cast %8 : vector<1x32x80xbf16> to vector<32x80xbf16>
    %c4 = arith.constant 4 : index
    %c0_8 = arith.constant 0 : index
    %c0_9 = arith.constant 0 : index
    %10 = vector.load %arg3[%c4, %c0_8, %c0_9] : memref<5x32x80xbf16, #tpu.memory_space<vmem>>, vector<1x32x80xbf16>
    %11 = vector.shape_cast %10 : vector<1x32x80xbf16> to vector<32x80xbf16>
    %c0_10 = arith.constant 0 : index
    %c0_11 = arith.constant 0 : index
    %12 = vector.load %arg4[%c0_10, %c0_11] : memref<32x1xf32, #tpu.memory_space<vmem>>, vector<32x1xf32>
    %c0_i32 = arith.constant 0 : i32
    %13 = arith.addi %1, %c0_i32 : i32
    %14 = tpu.assume_multiple %13, 16 : i32
    %c0_12 = arith.constant 0 : index
    %15 = arith.index_cast %14 : i32 to index
    %c0_13 = arith.constant 0 : index
    %16 = vector.load %arg2[%c0_12, %15, %c0_13] : memref<1x320x20xbf16, #tpu.memory_space<vmem>>, vector<1x80x16xbf16>
    %17 = vector.shape_cast %16 : vector<1x80x16xbf16> to vector<80x16xbf16>
    %cst = arith.constant dense<0.000000e+00> : vector<32x16xf32>
    %18 = tpu.matmul %3, %17, %cst {dimension_numbers = #tpu.dot_dimension_numbers<[1], [0], [0], [1], [0, 0, 1, 1], [], []>} : vector<32x80xbf16>, vector<80x16xbf16>, vector<32x16xf32> -> vector<32x16xf32>
    %c0_14 = arith.constant 0 : index
    %19 = arith.index_cast %14 : i32 to index
    %c1_15 = arith.constant 1 : index
    %20 = vector.load %arg2[%c0_14, %19, %c1_15] : memref<1x320x20xbf16, #tpu.memory_space<vmem>>, vector<1x80x16xbf16>
    %21 = vector.shape_cast %20 : vector<1x80x16xbf16> to vector<80x16xbf16>
    %cst_16 = arith.constant dense<0.000000e+00> : vector<32x16xf32>
    %22 = tpu.matmul %5, %21, %cst_16 {dimension_numbers = #tpu.dot_dimension_numbers<[1], [0], [0], [1], [0, 0, 1, 1], [], []>} : vector<32x80xbf16>, vector<80x16xbf16>, vector<32x16xf32> -> vector<32x16xf32>
    %23 = arith.addf %18, %22 : vector<32x16xf32>
    %c0_17 = arith.constant 0 : index
    %24 = arith.index_cast %14 : i32 to index
    %c2_18 = arith.constant 2 : index
    %25 = vector.load %arg2[%c0_17, %24, %c2_18] : memref<1x320x20xbf16, #tpu.memory_space<vmem>>, vector<1x80x16xbf16>
    %26 = vector.shape_cast %25 : vector<1x80x16xbf16> to vector<80x16xbf16>
    %cst_19 = arith.constant dense<0.000000e+00> : vector<32x16xf32>
    %27 = tpu.matmul %7, %26, %cst_19 {dimension_numbers = #tpu.dot_dimension_numbers<[1], [0], [0], [1], [0, 0, 1, 1], [], []>} : vector<32x80xbf16>, vector<80x16xbf16>, vector<32x16xf32> -> vector<32x16xf32>
    %28 = arith.addf %23, %27 : vector<32x16xf32>
    %c0_20 = arith.constant 0 : index
    %29 = arith.index_cast %14 : i32 to index
    %c3_21 = arith.constant 3 : index
    %30 = vector.load %arg2[%c0_20, %29, %c3_21] : memref<1x320x20xbf16, #tpu.memory_space<vmem>>, vector<1x80x16xbf16>
    %31 = vector.shape_cast %30 : vector<1x80x16xbf16> to vector<80x16xbf16>
    %cst_22 = arith.constant dense<0.000000e+00> : vector<32x16xf32>
    %32 = tpu.matmul %9, %31, %cst_22 {dimension_numbers = #tpu.dot_dimension_numbers<[1], [0], [0], [1], [0, 0, 1, 1], [], []>} : vector<32x80xbf16>, vector<80x16xbf16>, vector<32x16xf32> -> vector<32x16xf32>
    %33 = arith.addf %28, %32 : vector<32x16xf32>
    %c0_23 = arith.constant 0 : index
    %34 = arith.index_cast %14 : i32 to index
    %c4_24 = arith.constant 4 : index
    %35 = vector.load %arg2[%c0_23, %34, %c4_24] : memref<1x320x20xbf16, #tpu.memory_space<vmem>>, vector<1x80x16xbf16>
    %36 = vector.shape_cast %35 : vector<1x80x16xbf16> to vector<80x16xbf16>
    %cst_25 = arith.constant dense<0.000000e+00> : vector<32x16xf32>
    %37 = tpu.matmul %11, %36, %cst_25 {dimension_numbers = #tpu.dot_dimension_numbers<[1], [0], [0], [1], [0, 0, 1, 1], [], []>} : vector<32x80xbf16>, vector<80x16xbf16>, vector<32x16xf32> -> vector<32x16xf32>
    %38 = arith.addf %33, %37 : vector<32x16xf32>
    %39 = vector.broadcast %12 : vector<32x1xf32> to vector<32x16xf32>
    %40 = arith.addf %38, %39 : vector<32x16xf32>
    %cst_26 = arith.constant 2.000000e-01 : f32
    %41 = vector.broadcast %cst_26 : f32 to vector<32x16xf32>
    %42 = arith.mulf %41, %40 : vector<32x16xf32>
    %43 = arith.maximumf %40, %42 : vector<32x16xf32>
    %c0_27 = arith.constant 0 : index
    %c0_28 = arith.constant 0 : index
    %c0_29 = arith.constant 0 : index
    %c0_30 = arith.constant 0 : index
    %44 = vector.load %arg5[%c0_27, %c0_28, %c0_29, %c0_30] : memref<1x32x8x16xf32, #tpu.memory_space<vmem>>, vector<1x32x1x16xf32>
    %45 = vector.shape_cast %44 : vector<1x32x1x16xf32> to vector<32x16xf32>
    %46 = vector.shape_cast %43 : vector<32x16xf32> to vector<1x32x1x16xf32>
    tpu.vector_store %arg5[%c0_27, %c0_28, %c0_29, %c0_30], %46 {strides = array<i32>} : memref<1x32x8x16xf32, #tpu.memory_space<vmem>>, vector<1x32x1x16xf32>,
    %c16_i32 = arith.constant 16 : i32
    %47 = arith.addi %1, %c16_i32 : i32
    %48 = tpu.assume_multiple %47, 16 : i32
    %c0_31 = arith.constant 0 : index
    %49 = arith.index_cast %48 : i32 to index
    %c0_32 = arith.constant 0 : index
    %50 = vector.load %arg2[%c0_31, %49, %c0_32] : memref<1x320x20xbf16, #tpu.memory_space<vmem>>, vector<1x80x16xbf16>
    %51 = vector.shape_cast %50 : vector<1x80x16xbf16> to vector<80x16xbf16>
    %cst_33 = arith.constant dense<0.000000e+00> : vector<32x16xf32>
    %52 = tpu.matmul %3, %51, %cst_33 {dimension_numbers = #tpu.dot_dimension_numbers<[1], [0], [0], [1], [0, 0, 1, 1], [], []>} : vector<32x80xbf16>, vector<80x16xbf16>, vector<32x16xf32> -> vector<32x16xf32>
    %c0_34 = arith.constant 0 : index
    %53 = arith.index_cast %48 : i32 to index
    %c1_35 = arith.constant 1 : index
    %54 = vector.load %arg2[%c0_34, %53, %c1_35] : memref<1x320x20xbf16, #tpu.memory_space<vmem>>, vector<1x80x16xbf16>
    %55 = vector.shape_cast %54 : vector<1x80x16xbf16> to vector<80x16xbf16>
    %cst_36 = arith.constant dense<0.000000e+00> : vector<32x16xf32>
    %56 = tpu.matmul %5, %55, %cst_36 {dimension_numbers = #tpu.dot_dimension_numbers<[1], [0], [0], [1], [0, 0, 1, 1], [], []>} : vector<32x80xbf16>, vector<80x16xbf16>, vector<32x16xf32> -> vector<32x16xf32>
    %57 = arith.addf %52, %56 : vector<32x16xf32>
    %c0_37 = arith.constant 0 : index
    %58 = arith.index_cast %48 : i32 to index
    %c2_38 = arith.constant 2 : index
    %59 = vector.load %arg2[%c0_37, %58, %c2_38] : memref<1x320x20xbf16, #tpu.memory_space<vmem>>, vector<1x80x16xbf16>
    %60 = vector.shape_cast %59 : vector<1x80x16xbf16> to vector<80x16xbf16>
    %cst_39 = arith.constant dense<0.000000e+00> : vector<32x16xf32>
    %61 = tpu.matmul %7, %60, %cst_39 {dimension_numbers = #tpu.dot_dimension_numbers<[1], [0], [0], [1], [0, 0, 1, 1], [], []>} : vector<32x80xbf16>, vector<80x16xbf16>, vector<32x16xf32> -> vector<32x16xf32>
    %62 = arith.addf %57, %61 : vector<32x16xf32>
    %c0_40 = arith.constant 0 : index
    %63 = arith.index_cast %48 : i32 to index
    %c3_41 = arith.constant 3 : index
    %64 = vector.load %arg2[%c0_40, %63, %c3_41] : memref<1x320x20xbf16, #tpu.memory_space<vmem>>, vector<1x80x16xbf16>
    %65 = vector.shape_cast %64 : vector<1x80x16xbf16> to vector<80x16xbf16>
    %cst_42 = arith.constant dense<0.000000e+00> : vector<32x16xf32>
    %66 = tpu.matmul %9, %65, %cst_42 {dimension_numbers = #tpu.dot_dimension_numbers<[1], [0], [0], [1], [0, 0, 1, 1], [], []>} : vector<32x80xbf16>, vector<80x16xbf16>, vector<32x16xf32> -> vector<32x16xf32>
    %67 = arith.addf %62, %66 : vector<32x16xf32>
    %c0_43 = arith.constant 0 : index
    %68 = arith.index_cast %48 : i32 to index
    %c4_44 = arith.constant 4 : index
    %69 = vector.load %arg2[%c0_43, %68, %c4_44] : memref<1x320x20xbf16, #tpu.memory_space<vmem>>, vector<1x80x16xbf16>
    %70 = vector.shape_cast %69 : vector<1x80x16xbf16> to vector<80x16xbf16>
    %cst_45 = arith.constant dense<0.000000e+00> : vector<32x16xf32>
    %71 = tpu.matmul %11, %70, %cst_45 {dimension_numbers = #tpu.dot_dimension_numbers<[1], [0], [0], [1], [0, 0, 1, 1], [], []>} : vector<32x80xbf16>, vector<80x16xbf16>, vector<32x16xf32> -> vector<32x16xf32>
    %72 = arith.addf %67, %71 : vector<32x16xf32>
    %73 = vector.broadcast %12 : vector<32x1xf32> to vector<32x16xf32>
    %74 = arith.addf %72, %73 : vector<32x16xf32>
    %cst_46 = arith.constant 2.000000e-01 : f32
    %75 = vector.broadcast %cst_46 : f32 to vector<32x16xf32>
    %76 = arith.mulf %75, %74 : vector<32x16xf32>
    %77 = arith.maximumf %74, %76 : vector<32x16xf32>
    %c0_47 = arith.constant 0 : index
    %c0_48 = arith.constant 0 : index
    %c1_49 = arith.constant 1 : index
    %c0_50 = arith.constant 0 : index
    %78 = vector.load %arg5[%c0_47, %c0_48, %c1_49, %c0_50] : memref<1x32x8x16xf32, #tpu.memory_space<vmem>>, vector<1x32x1x16xf32>
    %79 = vector.shape_cast %78 : vector<1x32x1x16xf32> to vector<32x16xf32>
    %80 = vector.shape_cast %77 : vector<32x16xf32> to vector<1x32x1x16xf32>
    tpu.vector_store %arg5[%c0_47, %c0_48, %c1_49, %c0_50], %80 {strides = array<i32>} : memref<1x32x8x16xf32, #tpu.memory_space<vmem>>, vector<1x32x1x16xf32>,
    %c32_i32 = arith.constant 32 : i32
    %81 = arith.addi %1, %c32_i32 : i32
    %82 = tpu.assume_multiple %81, 16 : i32
    %c0_51 = arith.constant 0 : index
    %83 = arith.index_cast %82 : i32 to index
    %c0_52 = arith.constant 0 : index
    %84 = vector.load %arg2[%c0_51, %83, %c0_52] : memref<1x320x20xbf16, #tpu.memory_space<vmem>>, vector<1x80x16xbf16>
    %85 = vector.shape_cast %84 : vector<1x80x16xbf16> to vector<80x16xbf16>
    %cst_53 = arith.constant dense<0.000000e+00> : vector<32x16xf32>
    %86 = tpu.matmul %3, %85, %cst_53 {dimension_numbers = #tpu.dot_dimension_numbers<[1], [0], [0], [1], [0, 0, 1, 1], [], []>} : vector<32x80xbf16>, vector<80x16xbf16>, vector<32x16xf32> -> vector<32x16xf32>
    %c0_54 = arith.constant 0 : index
    %87 = arith.index_cast %82 : i32 to index
    %c1_55 = arith.constant 1 : index
    %88 = vector.load %arg2[%c0_54, %87, %c1_55] : memref<1x320x20xbf16, #tpu.memory_space<vmem>>, vector<1x80x16xbf16>
    %89 = vector.shape_cast %88 : vector<1x80x16xbf16> to vector<80x16xbf16>
    %cst_56 = arith.constant dense<0.000000e+00> : vector<32x16xf32>
    %90 = tpu.matmul %5, %89, %cst_56 {dimension_numbers = #tpu.dot_dimension_numbers<[1], [0], [0], [1], [0, 0, 1, 1], [], []>} : vector<32x80xbf16>, vector<80x16xbf16>, vector<32x16xf32> -> vector<32x16xf32>
    %91 = arith.addf %86, %90 : vector<32x16xf32>
    %c0_57 = arith.constant 0 : index
    %92 = arith.index_cast %82 : i32 to index
    %c2_58 = arith.constant 2 : index
    %93 = vector.load %arg2[%c0_57, %92, %c2_58] : memref<1x320x20xbf16, #tpu.memory_space<vmem>>, vector<1x80x16xbf16>
    %94 = vector.shape_cast %93 : vector<1x80x16xbf16> to vector<80x16xbf16>
    %cst_59 = arith.constant dense<0.000000e+00> : vector<32x16xf32>
    %95 = tpu.matmul %7, %94, %cst_59 {dimension_numbers = #tpu.dot_dimension_numbers<[1], [0], [0], [1], [0, 0, 1, 1], [], []>} : vector<32x80xbf16>, vector<80x16xbf16>, vector<32x16xf32> -> vector<32x16xf32>
    %96 = arith.addf %91, %95 : vector<32x16xf32>
    %c0_60 = arith.constant 0 : index
    %97 = arith.index_cast %82 : i32 to index
    %c3_61 = arith.constant 3 : index
    %98 = vector.load %arg2[%c0_60, %97, %c3_61] : memref<1x320x20xbf16, #tpu.memory_space<vmem>>, vector<1x80x16xbf16>
    %99 = vector.shape_cast %98 : vector<1x80x16xbf16> to vector<80x16xbf16>
    %cst_62 = arith.constant dense<0.000000e+00> : vector<32x16xf32>
    %100 = tpu.matmul %9, %99, %cst_62 {dimension_numbers = #tpu.dot_dimension_numbers<[1], [0], [0], [1], [0, 0, 1, 1], [], []>} : vector<32x80xbf16>, vector<80x16xbf16>, vector<32x16xf32> -> vector<32x16xf32>
    %101 = arith.addf %96, %100 : vector<32x16xf32>
    %c0_63 = arith.constant 0 : index
    %102 = arith.index_cast %82 : i32 to index
    %c4_64 = arith.constant 4 : index
    %103 = vector.load %arg2[%c0_63, %102, %c4_64] : memref<1x320x20xbf16, #tpu.memory_space<vmem>>, vector<1x80x16xbf16>
    %104 = vector.shape_cast %103 : vector<1x80x16xbf16> to vector<80x16xbf16>
    %cst_65 = arith.constant dense<0.000000e+00> : vector<32x16xf32>
    %105 = tpu.matmul %11, %104, %cst_65 {dimension_numbers = #tpu.dot_dimension_numbers<[1], [0], [0], [1], [0, 0, 1, 1], [], []>} : vector<32x80xbf16>, vector<80x16xbf16>, vector<32x16xf32> -> vector<32x16xf32>
    %106 = arith.addf %101, %105 : vector<32x16xf32>
    %107 = vector.broadcast %12 : vector<32x1xf32> to vector<32x16xf32>
    %108 = arith.addf %106, %107 : vector<32x16xf32>
    %cst_66 = arith.constant 2.000000e-01 : f32
    %109 = vector.broadcast %cst_66 : f32 to vector<32x16xf32>
    %110 = arith.mulf %109, %108 : vector<32x16xf32>
    %111 = arith.maximumf %108, %110 : vector<32x16xf32>
    %c0_67 = arith.constant 0 : index
    %c0_68 = arith.constant 0 : index
    %c2_69 = arith.constant 2 : index
    %c0_70 = arith.constant 0 : index
    %112 = vector.load %arg5[%c0_67, %c0_68, %c2_69, %c0_70] : memref<1x32x8x16xf32, #tpu.memory_space<vmem>>, vector<1x32x1x16xf32>
    %113 = vector.shape_cast %112 : vector<1x32x1x16xf32> to vector<32x16xf32>
    %114 = vector.shape_cast %111 : vector<32x16xf32> to vector<1x32x1x16xf32>
    tpu.vector_store %arg5[%c0_67, %c0_68, %c2_69, %c0_70], %114 {strides = array<i32>} : memref<1x32x8x16xf32, #tpu.memory_space<vmem>>, vector<1x32x1x16xf32>,
    %c48_i32 = arith.constant 48 : i32
    %115 = arith.addi %1, %c48_i32 : i32
    %116 = tpu.assume_multiple %115, 16 : i32
    %c0_71 = arith.constant 0 : index
    %117 = arith.index_cast %116 : i32 to index
    %c0_72 = arith.constant 0 : index
    %118 = vector.load %arg2[%c0_71, %117, %c0_72] : memref<1x320x20xbf16, #tpu.memory_space<vmem>>, vector<1x80x16xbf16>
    %119 = vector.shape_cast %118 : vector<1x80x16xbf16> to vector<80x16xbf16>
    %cst_73 = arith.constant dense<0.000000e+00> : vector<32x16xf32>
    %120 = tpu.matmul %3, %119, %cst_73 {dimension_numbers = #tpu.dot_dimension_numbers<[1], [0], [0], [1], [0, 0, 1, 1], [], []>} : vector<32x80xbf16>, vector<80x16xbf16>, vector<32x16xf32> -> vector<32x16xf32>
    %c0_74 = arith.constant 0 : index
    %121 = arith.index_cast %116 : i32 to index
    %c1_75 = arith.constant 1 : index
    %122 = vector.load %arg2[%c0_74, %121, %c1_75] : memref<1x320x20xbf16, #tpu.memory_space<vmem>>, vector<1x80x16xbf16>
    %123 = vector.shape_cast %122 : vector<1x80x16xbf16> to vector<80x16xbf16>
    %cst_76 = arith.constant dense<0.000000e+00> : vector<32x16xf32>
    %124 = tpu.matmul %5, %123, %cst_76 {dimension_numbers = #tpu.dot_dimension_numbers<[1], [0], [0], [1], [0, 0, 1, 1], [], []>} : vector<32x80xbf16>, vector<80x16xbf16>, vector<32x16xf32> -> vector<32x16xf32>
    %125 = arith.addf %120, %124 : vector<32x16xf32>
    %c0_77 = arith.constant 0 : index
    %126 = arith.index_cast %116 : i32 to index
    %c2_78 = arith.constant 2 : index
    %127 = vector.load %arg2[%c0_77, %126, %c2_78] : memref<1x320x20xbf16, #tpu.memory_space<vmem>>, vector<1x80x16xbf16>
    %128 = vector.shape_cast %127 : vector<1x80x16xbf16> to vector<80x16xbf16>
    %cst_79 = arith.constant dense<0.000000e+00> : vector<32x16xf32>
    %129 = tpu.matmul %7, %128, %cst_79 {dimension_numbers = #tpu.dot_dimension_numbers<[1], [0], [0], [1], [0, 0, 1, 1], [], []>} : vector<32x80xbf16>, vector<80x16xbf16>, vector<32x16xf32> -> vector<32x16xf32>
    %130 = arith.addf %125, %129 : vector<32x16xf32>
    %c0_80 = arith.constant 0 : index
    %131 = arith.index_cast %116 : i32 to index
    %c3_81 = arith.constant 3 : index
    %132 = vector.load %arg2[%c0_80, %131, %c3_81] : memref<1x320x20xbf16, #tpu.memory_space<vmem>>, vector<1x80x16xbf16>
    %133 = vector.shape_cast %132 : vector<1x80x16xbf16> to vector<80x16xbf16>
    %cst_82 = arith.constant dense<0.000000e+00> : vector<32x16xf32>
    %134 = tpu.matmul %9, %133, %cst_82 {dimension_numbers = #tpu.dot_dimension_numbers<[1], [0], [0], [1], [0, 0, 1, 1], [], []>} : vector<32x80xbf16>, vector<80x16xbf16>, vector<32x16xf32> -> vector<32x16xf32>
    %135 = arith.addf %130, %134 : vector<32x16xf32>
    %c0_83 = arith.constant 0 : index
    %136 = arith.index_cast %116 : i32 to index
    %c4_84 = arith.constant 4 : index
    %137 = vector.load %arg2[%c0_83, %136, %c4_84] : memref<1x320x20xbf16, #tpu.memory_space<vmem>>, vector<1x80x16xbf16>
    %138 = vector.shape_cast %137 : vector<1x80x16xbf16> to vector<80x16xbf16>
    %cst_85 = arith.constant dense<0.000000e+00> : vector<32x16xf32>
    %139 = tpu.matmul %11, %138, %cst_85 {dimension_numbers = #tpu.dot_dimension_numbers<[1], [0], [0], [1], [0, 0, 1, 1], [], []>} : vector<32x80xbf16>, vector<80x16xbf16>, vector<32x16xf32> -> vector<32x16xf32>
    %140 = arith.addf %135, %139 : vector<32x16xf32>
    %141 = vector.broadcast %12 : vector<32x1xf32> to vector<32x16xf32>
    %142 = arith.addf %140, %141 : vector<32x16xf32>
    %cst_86 = arith.constant 2.000000e-01 : f32
    %143 = vector.broadcast %cst_86 : f32 to vector<32x16xf32>
    %144 = arith.mulf %143, %142 : vector<32x16xf32>
    %145 = arith.maximumf %142, %144 : vector<32x16xf32>
    %c0_87 = arith.constant 0 : index
    %c0_88 = arith.constant 0 : index
    %c3_89 = arith.constant 3 : index
    %c0_90 = arith.constant 0 : index
    %146 = vector.load %arg5[%c0_87, %c0_88, %c3_89, %c0_90] : memref<1x32x8x16xf32, #tpu.memory_space<vmem>>, vector<1x32x1x16xf32>
    %147 = vector.shape_cast %146 : vector<1x32x1x16xf32> to vector<32x16xf32>
    %148 = vector.shape_cast %145 : vector<32x16xf32> to vector<1x32x1x16xf32>
    tpu.vector_store %arg5[%c0_87, %c0_88, %c3_89, %c0_90], %148 {strides = array<i32>} : memref<1x32x8x16xf32, #tpu.memory_space<vmem>>, vector<1x32x1x16xf32>,
    %c64_i32 = arith.constant 64 : i32
    %149 = arith.addi %1, %c64_i32 : i32
    %150 = tpu.assume_multiple %149, 16 : i32
    %c0_91 = arith.constant 0 : index
    %151 = arith.index_cast %150 : i32 to index
    %c0_92 = arith.constant 0 : index
    %152 = vector.load %arg2[%c0_91, %151, %c0_92] : memref<1x320x20xbf16, #tpu.memory_space<vmem>>, vector<1x80x16xbf16>
    %153 = vector.shape_cast %152 : vector<1x80x16xbf16> to vector<80x16xbf16>
    %cst_93 = arith.constant dense<0.000000e+00> : vector<32x16xf32>
    %154 = tpu.matmul %3, %153, %cst_93 {dimension_numbers = #tpu.dot_dimension_numbers<[1], [0], [0], [1], [0, 0, 1, 1], [], []>} : vector<32x80xbf16>, vector<80x16xbf16>, vector<32x16xf32> -> vector<32x16xf32>
    %c0_94 = arith.constant 0 : index
    %155 = arith.index_cast %150 : i32 to index
    %c1_95 = arith.constant 1 : index
    %156 = vector.load %arg2[%c0_94, %155, %c1_95] : memref<1x320x20xbf16, #tpu.memory_space<vmem>>, vector<1x80x16xbf16>
    %157 = vector.shape_cast %156 : vector<1x80x16xbf16> to vector<80x16xbf16>
    %cst_96 = arith.constant dense<0.000000e+00> : vector<32x16xf32>
    %158 = tpu.matmul %5, %157, %cst_96 {dimension_numbers = #tpu.dot_dimension_numbers<[1], [0], [0], [1], [0, 0, 1, 1], [], []>} : vector<32x80xbf16>, vector<80x16xbf16>, vector<32x16xf32> -> vector<32x16xf32>
    %159 = arith.addf %154, %158 : vector<32x16xf32>
    %c0_97 = arith.constant 0 : index
    %160 = arith.index_cast %150 : i32 to index
    %c2_98 = arith.constant 2 : index
    %161 = vector.load %arg2[%c0_97, %160, %c2_98] : memref<1x320x20xbf16, #tpu.memory_space<vmem>>, vector<1x80x16xbf16>
    %162 = vector.shape_cast %161 : vector<1x80x16xbf16> to vector<80x16xbf16>
    %cst_99 = arith.constant dense<0.000000e+00> : vector<32x16xf32>
    %163 = tpu.matmul %7, %162, %cst_99 {dimension_numbers = #tpu.dot_dimension_numbers<[1], [0], [0], [1], [0, 0, 1, 1], [], []>} : vector<32x80xbf16>, vector<80x16xbf16>, vector<32x16xf32> -> vector<32x16xf32>
    %164 = arith.addf %159, %163 : vector<32x16xf32>
    %c0_100 = arith.constant 0 : index
    %165 = arith.index_cast %150 : i32 to index
    %c3_101 = arith.constant 3 : index
    %166 = vector.load %arg2[%c0_100, %165, %c3_101] : memref<1x320x20xbf16, #tpu.memory_space<vmem>>, vector<1x80x16xbf16>
    %167 = vector.shape_cast %166 : vector<1x80x16xbf16> to vector<80x16xbf16>
    %cst_102 = arith.constant dense<0.000000e+00> : vector<32x16xf32>
    %168 = tpu.matmul %9, %167, %cst_102 {dimension_numbers = #tpu.dot_dimension_numbers<[1], [0], [0], [1], [0, 0, 1, 1], [], []>} : vector<32x80xbf16>, vector<80x16xbf16>, vector<32x16xf32> -> vector<32x16xf32>
    %169 = arith.addf %164, %168 : vector<32x16xf32>
    %c0_103 = arith.constant 0 : index
    %170 = arith.index_cast %150 : i32 to index
    %c4_104 = arith.constant 4 : index
    %171 = vector.load %arg2[%c0_103, %170, %c4_104] : memref<1x320x20xbf16, #tpu.memory_space<vmem>>, vector<1x80x16xbf16>
    %172 = vector.shape_cast %171 : vector<1x80x16xbf16> to vector<80x16xbf16>
    %cst_105 = arith.constant dense<0.000000e+00> : vector<32x16xf32>
    %173 = tpu.matmul %11, %172, %cst_105 {dimension_numbers = #tpu.dot_dimension_numbers<[1], [0], [0], [1], [0, 0, 1, 1], [], []>} : vector<32x80xbf16>, vector<80x16xbf16>, vector<32x16xf32> -> vector<32x16xf32>
    %174 = arith.addf %169, %173 : vector<32x16xf32>
    %175 = vector.broadcast %12 : vector<32x1xf32> to vector<32x16xf32>
    %176 = arith.addf %174, %175 : vector<32x16xf32>
    %cst_106 = arith.constant 2.000000e-01 : f32
    %177 = vector.broadcast %cst_106 : f32 to vector<32x16xf32>
    %178 = arith.mulf %177, %176 : vector<32x16xf32>
    %179 = arith.maximumf %176, %178 : vector<32x16xf32>
    %c0_107 = arith.constant 0 : index
    %c0_108 = arith.constant 0 : index
    %c4_109 = arith.constant 4 : index
    %c0_110 = arith.constant 0 : index
    %180 = vector.load %arg5[%c0_107, %c0_108, %c4_109, %c0_110] : memref<1x32x8x16xf32, #tpu.memory_space<vmem>>, vector<1x32x1x16xf32>
    %181 = vector.shape_cast %180 : vector<1x32x1x16xf32> to vector<32x16xf32>
    %182 = vector.shape_cast %179 : vector<32x16xf32> to vector<1x32x1x16xf32>
    tpu.vector_store %arg5[%c0_107, %c0_108, %c4_109, %c0_110], %182 {strides = array<i32>} : memref<1x32x8x16xf32, #tpu.memory_space<vmem>>, vector<1x32x1x16xf32>,
    %c80_i32 = arith.constant 80 : i32
    %183 = arith.addi %1, %c80_i32 : i32
    %184 = tpu.assume_multiple %183, 16 : i32
    %c0_111 = arith.constant 0 : index
    %185 = arith.index_cast %184 : i32 to index
    %c0_112 = arith.constant 0 : index
    %186 = vector.load %arg2[%c0_111, %185, %c0_112] : memref<1x320x20xbf16, #tpu.memory_space<vmem>>, vector<1x80x16xbf16>
    %187 = vector.shape_cast %186 : vector<1x80x16xbf16> to vector<80x16xbf16>
    %cst_113 = arith.constant dense<0.000000e+00> : vector<32x16xf32>
    %188 = tpu.matmul %3, %187, %cst_113 {dimension_numbers = #tpu.dot_dimension_numbers<[1], [0], [0], [1], [0, 0, 1, 1], [], []>} : vector<32x80xbf16>, vector<80x16xbf16>, vector<32x16xf32> -> vector<32x16xf32>
    %c0_114 = arith.constant 0 : index
    %189 = arith.index_cast %184 : i32 to index
    %c1_115 = arith.constant 1 : index
    %190 = vector.load %arg2[%c0_114, %189, %c1_115] : memref<1x320x20xbf16, #tpu.memory_space<vmem>>, vector<1x80x16xbf16>
    %191 = vector.shape_cast %190 : vector<1x80x16xbf16> to vector<80x16xbf16>
    %cst_116 = arith.constant dense<0.000000e+00> : vector<32x16xf32>
    %192 = tpu.matmul %5, %191, %cst_116 {dimension_numbers = #tpu.dot_dimension_numbers<[1], [0], [0], [1], [0, 0, 1, 1], [], []>} : vector<32x80xbf16>, vector<80x16xbf16>, vector<32x16xf32> -> vector<32x16xf32>
    %193 = arith.addf %188, %192 : vector<32x16xf32>
    %c0_117 = arith.constant 0 : index
    %194 = arith.index_cast %184 : i32 to index
    %c2_118 = arith.constant 2 : index
    %195 = vector.load %arg2[%c0_117, %194, %c2_118] : memref<1x320x20xbf16, #tpu.memory_space<vmem>>, vector<1x80x16xbf16>
    %196 = vector.shape_cast %195 : vector<1x80x16xbf16> to vector<80x16xbf16>
    %cst_119 = arith.constant dense<0.000000e+00> : vector<32x16xf32>
    %197 = tpu.matmul %7, %196, %cst_119 {dimension_numbers = #tpu.dot_dimension_numbers<[1], [0], [0], [1], [0, 0, 1, 1], [], []>} : vector<32x80xbf16>, vector<80x16xbf16>, vector<32x16xf32> -> vector<32x16xf32>
    %198 = arith.addf %193, %197 : vector<32x16xf32>
    %c0_120 = arith.constant 0 : index
    %199 = arith.index_cast %184 : i32 to index
    %c3_121 = arith.constant 3 : index
    %200 = vector.load %arg2[%c0_120, %199, %c3_121] : memref<1x320x20xbf16, #tpu.memory_space<vmem>>, vector<1x80x16xbf16>
    %201 = vector.shape_cast %200 : vector<1x80x16xbf16> to vector<80x16xbf16>
    %cst_122 = arith.constant dense<0.000000e+00> : vector<32x16xf32>
    %202 = tpu.matmul %9, %201, %cst_122 {dimension_numbers = #tpu.dot_dimension_numbers<[1], [0], [0], [1], [0, 0, 1, 1], [], []>} : vector<32x80xbf16>, vector<80x16xbf16>, vector<32x16xf32> -> vector<32x16xf32>
    %203 = arith.addf %198, %202 : vector<32x16xf32>
    %c0_123 = arith.constant 0 : index
    %204 = arith.index_cast %184 : i32 to index
    %c4_124 = arith.constant 4 : index
    %205 = vector.load %arg2[%c0_123, %204, %c4_124] : memref<1x320x20xbf16, #tpu.memory_space<vmem>>, vector<1x80x16xbf16>
    %206 = vector.shape_cast %205 : vector<1x80x16xbf16> to vector<80x16xbf16>
    %cst_125 = arith.constant dense<0.000000e+00> : vector<32x16xf32>
    %207 = tpu.matmul %11, %206, %cst_125 {dimension_numbers = #tpu.dot_dimension_numbers<[1], [0], [0], [1], [0, 0, 1, 1], [], []>} : vector<32x80xbf16>, vector<80x16xbf16>, vector<32x16xf32> -> vector<32x16xf32>
    %208 = arith.addf %203, %207 : vector<32x16xf32>
    %209 = vector.broadcast %12 : vector<32x1xf32> to vector<32x16xf32>
    %210 = arith.addf %208, %209 : vector<32x16xf32>
    %cst_126 = arith.constant 2.000000e-01 : f32
    %211 = vector.broadcast %cst_126 : f32 to vector<32x16xf32>
    %212 = arith.mulf %211, %210 : vector<32x16xf32>
    %213 = arith.maximumf %210, %212 : vector<32x16xf32>
    %c0_127 = arith.constant 0 : index
    %c0_128 = arith.constant 0 : index
    %c5 = arith.constant 5 : index
    %c0_129 = arith.constant 0 : index
    %214 = vector.load %arg5[%c0_127, %c0_128, %c5, %c0_129] : memref<1x32x8x16xf32, #tpu.memory_space<vmem>>, vector<1x32x1x16xf32>
    %215 = vector.shape_cast %214 : vector<1x32x1x16xf32> to vector<32x16xf32>
    %216 = vector.shape_cast %213 : vector<32x16xf32> to vector<1x32x1x16xf32>
    tpu.vector_store %arg5[%c0_127, %c0_128, %c5, %c0_129], %216 {strides = array<i32>} : memref<1x32x8x16xf32, #tpu.memory_space<vmem>>, vector<1x32x1x16xf32>,
    %c96_i32 = arith.constant 96 : i32
    %217 = arith.addi %1, %c96_i32 : i32
    %218 = tpu.assume_multiple %217, 16 : i32
    %c0_130 = arith.constant 0 : index
    %219 = arith.index_cast %218 : i32 to index
    %c0_131 = arith.constant 0 : index
    %220 = vector.load %arg2[%c0_130, %219, %c0_131] : memref<1x320x20xbf16, #tpu.memory_space<vmem>>, vector<1x80x16xbf16>
    %221 = vector.shape_cast %220 : vector<1x80x16xbf16> to vector<80x16xbf16>
    %cst_132 = arith.constant dense<0.000000e+00> : vector<32x16xf32>
    %222 = tpu.matmul %3, %221, %cst_132 {dimension_numbers = #tpu.dot_dimension_numbers<[1], [0], [0], [1], [0, 0, 1, 1], [], []>} : vector<32x80xbf16>, vector<80x16xbf16>, vector<32x16xf32> -> vector<32x16xf32>
    %c0_133 = arith.constant 0 : index
    %223 = arith.index_cast %218 : i32 to index
    %c1_134 = arith.constant 1 : index
    %224 = vector.load %arg2[%c0_133, %223, %c1_134] : memref<1x320x20xbf16, #tpu.memory_space<vmem>>, vector<1x80x16xbf16>
    %225 = vector.shape_cast %224 : vector<1x80x16xbf16> to vector<80x16xbf16>
    %cst_135 = arith.constant dense<0.000000e+00> : vector<32x16xf32>
    %226 = tpu.matmul %5, %225, %cst_135 {dimension_numbers = #tpu.dot_dimension_numbers<[1], [0], [0], [1], [0, 0, 1, 1], [], []>} : vector<32x80xbf16>, vector<80x16xbf16>, vector<32x16xf32> -> vector<32x16xf32>
    %227 = arith.addf %222, %226 : vector<32x16xf32>
    %c0_136 = arith.constant 0 : index
    %228 = arith.index_cast %218 : i32 to index
    %c2_137 = arith.constant 2 : index
    %229 = vector.load %arg2[%c0_136, %228, %c2_137] : memref<1x320x20xbf16, #tpu.memory_space<vmem>>, vector<1x80x16xbf16>
    %230 = vector.shape_cast %229 : vector<1x80x16xbf16> to vector<80x16xbf16>
    %cst_138 = arith.constant dense<0.000000e+00> : vector<32x16xf32>
    %231 = tpu.matmul %7, %230, %cst_138 {dimension_numbers = #tpu.dot_dimension_numbers<[1], [0], [0], [1], [0, 0, 1, 1], [], []>} : vector<32x80xbf16>, vector<80x16xbf16>, vector<32x16xf32> -> vector<32x16xf32>
    %232 = arith.addf %227, %231 : vector<32x16xf32>
    %c0_139 = arith.constant 0 : index
    %233 = arith.index_cast %218 : i32 to index
    %c3_140 = arith.constant 3 : index
    %234 = vector.load %arg2[%c0_139, %233, %c3_140] : memref<1x320x20xbf16, #tpu.memory_space<vmem>>, vector<1x80x16xbf16>
    %235 = vector.shape_cast %234 : vector<1x80x16xbf16> to vector<80x16xbf16>
    %cst_141 = arith.constant dense<0.000000e+00> : vector<32x16xf32>
    %236 = tpu.matmul %9, %235, %cst_141 {dimension_numbers = #tpu.dot_dimension_numbers<[1], [0], [0], [1], [0, 0, 1, 1], [], []>} : vector<32x80xbf16>, vector<80x16xbf16>, vector<32x16xf32> -> vector<32x16xf32>
    %237 = arith.addf %232, %236 : vector<32x16xf32>
    %c0_142 = arith.constant 0 : index
    %238 = arith.index_cast %218 : i32 to index
    %c4_143 = arith.constant 4 : index
    %239 = vector.load %arg2[%c0_142, %238, %c4_143] : memref<1x320x20xbf16, #tpu.memory_space<vmem>>, vector<1x80x16xbf16>
    %240 = vector.shape_cast %239 : vector<1x80x16xbf16> to vector<80x16xbf16>
    %cst_144 = arith.constant dense<0.000000e+00> : vector<32x16xf32>
    %241 = tpu.matmul %11, %240, %cst_144 {dimension_numbers = #tpu.dot_dimension_numbers<[1], [0], [0], [1], [0, 0, 1, 1], [], []>} : vector<32x80xbf16>, vector<80x16xbf16>, vector<32x16xf32> -> vector<32x16xf32>
    %242 = arith.addf %237, %241 : vector<32x16xf32>
    %243 = vector.broadcast %12 : vector<32x1xf32> to vector<32x16xf32>
    %244 = arith.addf %242, %243 : vector<32x16xf32>
    %cst_145 = arith.constant 2.000000e-01 : f32
    %245 = vector.broadcast %cst_145 : f32 to vector<32x16xf32>
    %246 = arith.mulf %245, %244 : vector<32x16xf32>
    %247 = arith.maximumf %244, %246 : vector<32x16xf32>
    %c0_146 = arith.constant 0 : index
    %c0_147 = arith.constant 0 : index
    %c6 = arith.constant 6 : index
    %c0_148 = arith.constant 0 : index
    %248 = vector.load %arg5[%c0_146, %c0_147, %c6, %c0_148] : memref<1x32x8x16xf32, #tpu.memory_space<vmem>>, vector<1x32x1x16xf32>
    %249 = vector.shape_cast %248 : vector<1x32x1x16xf32> to vector<32x16xf32>
    %250 = vector.shape_cast %247 : vector<32x16xf32> to vector<1x32x1x16xf32>
    tpu.vector_store %arg5[%c0_146, %c0_147, %c6, %c0_148], %250 {strides = array<i32>} : memref<1x32x8x16xf32, #tpu.memory_space<vmem>>, vector<1x32x1x16xf32>,
    %c112_i32 = arith.constant 112 : i32
    %251 = arith.addi %1, %c112_i32 : i32
    %252 = tpu.assume_multiple %251, 16 : i32
    %c0_149 = arith.constant 0 : index
    %253 = arith.index_cast %252 : i32 to index
    %c0_150 = arith.constant 0 : index
    %254 = vector.load %arg2[%c0_149, %253, %c0_150] : memref<1x320x20xbf16, #tpu.memory_space<vmem>>, vector<1x80x16xbf16>
    %255 = vector.shape_cast %254 : vector<1x80x16xbf16> to vector<80x16xbf16>
    %cst_151 = arith.constant dense<0.000000e+00> : vector<32x16xf32>
    %256 = tpu.matmul %3, %255, %cst_151 {dimension_numbers = #tpu.dot_dimension_numbers<[1], [0], [0], [1], [0, 0, 1, 1], [], []>} : vector<32x80xbf16>, vector<80x16xbf16>, vector<32x16xf32> -> vector<32x16xf32>
    %c0_152 = arith.constant 0 : index
    %257 = arith.index_cast %252 : i32 to index
    %c1_153 = arith.constant 1 : index
    %258 = vector.load %arg2[%c0_152, %257, %c1_153] : memref<1x320x20xbf16, #tpu.memory_space<vmem>>, vector<1x80x16xbf16>
    %259 = vector.shape_cast %258 : vector<1x80x16xbf16> to vector<80x16xbf16>
    %cst_154 = arith.constant dense<0.000000e+00> : vector<32x16xf32>
    %260 = tpu.matmul %5, %259, %cst_154 {dimension_numbers = #tpu.dot_dimension_numbers<[1], [0], [0], [1], [0, 0, 1, 1], [], []>} : vector<32x80xbf16>, vector<80x16xbf16>, vector<32x16xf32> -> vector<32x16xf32>
    %261 = arith.addf %256, %260 : vector<32x16xf32>
    %c0_155 = arith.constant 0 : index
    %262 = arith.index_cast %252 : i32 to index
    %c2_156 = arith.constant 2 : index
    %263 = vector.load %arg2[%c0_155, %262, %c2_156] : memref<1x320x20xbf16, #tpu.memory_space<vmem>>, vector<1x80x16xbf16>
    %264 = vector.shape_cast %263 : vector<1x80x16xbf16> to vector<80x16xbf16>
    %cst_157 = arith.constant dense<0.000000e+00> : vector<32x16xf32>
    %265 = tpu.matmul %7, %264, %cst_157 {dimension_numbers = #tpu.dot_dimension_numbers<[1], [0], [0], [1], [0, 0, 1, 1], [], []>} : vector<32x80xbf16>, vector<80x16xbf16>, vector<32x16xf32> -> vector<32x16xf32>
    %266 = arith.addf %261, %265 : vector<32x16xf32>
    %c0_158 = arith.constant 0 : index
    %267 = arith.index_cast %252 : i32 to index
    %c3_159 = arith.constant 3 : index
    %268 = vector.load %arg2[%c0_158, %267, %c3_159] : memref<1x320x20xbf16, #tpu.memory_space<vmem>>, vector<1x80x16xbf16>
    %269 = vector.shape_cast %268 : vector<1x80x16xbf16> to vector<80x16xbf16>
    %cst_160 = arith.constant dense<0.000000e+00> : vector<32x16xf32>
    %270 = tpu.matmul %9, %269, %cst_160 {dimension_numbers = #tpu.dot_dimension_numbers<[1], [0], [0], [1], [0, 0, 1, 1], [], []>} : vector<32x80xbf16>, vector<80x16xbf16>, vector<32x16xf32> -> vector<32x16xf32>
    %271 = arith.addf %266, %270 : vector<32x16xf32>
    %c0_161 = arith.constant 0 : index
    %272 = arith.index_cast %252 : i32 to index
    %c4_162 = arith.constant 4 : index
    %273 = vector.load %arg2[%c0_161, %272, %c4_162] : memref<1x320x20xbf16, #tpu.memory_space<vmem>>, vector<1x80x16xbf16>
    %274 = vector.shape_cast %273 : vector<1x80x16xbf16> to vector<80x16xbf16>
    %cst_163 = arith.constant dense<0.000000e+00> : vector<32x16xf32>
    %275 = tpu.matmul %11, %274, %cst_163 {dimension_numbers = #tpu.dot_dimension_numbers<[1], [0], [0], [1], [0, 0, 1, 1], [], []>} : vector<32x80xbf16>, vector<80x16xbf16>, vector<32x16xf32> -> vector<32x16xf32>
    %276 = arith.addf %271, %275 : vector<32x16xf32>
    %277 = vector.broadcast %12 : vector<32x1xf32> to vector<32x16xf32>
    %278 = arith.addf %276, %277 : vector<32x16xf32>
    %cst_164 = arith.constant 2.000000e-01 : f32
    %279 = vector.broadcast %cst_164 : f32 to vector<32x16xf32>
    %280 = arith.mulf %279, %278 : vector<32x16xf32>
    %281 = arith.maximumf %278, %280 : vector<32x16xf32>
    %c0_165 = arith.constant 0 : index
    %c0_166 = arith.constant 0 : index
    %c7 = arith.constant 7 : index
    %c0_167 = arith.constant 0 : index
    %282 = vector.load %arg5[%c0_165, %c0_166, %c7, %c0_167] : memref<1x32x8x16xf32, #tpu.memory_space<vmem>>, vector<1x32x1x16xf32>
    %283 = vector.shape_cast %282 : vector<1x32x1x16xf32> to vector<32x16xf32>
    %284 = vector.shape_cast %281 : vector<32x16xf32> to vector<1x32x1x16xf32>
    tpu.vector_store %arg5[%c0_165, %c0_166, %c7, %c0_167], %284 {strides = array<i32>} : memref<1x32x8x16xf32, #tpu.memory_space<vmem>>, vector<1x32x1x16xf32>,
    return
  }
  func.func @transform_0(%arg0: i32, %arg1: i32) -> (i32, i32, i32) {
    %c0_i32 = arith.constant 0 : i32
    %c0_i32_0 = arith.constant 0 : i32
    %c0_i32_1 = arith.constant 0 : i32
    return %arg0, %c0_i32, %c0_i32_0 : i32, i32, i32
  }
  func.func @transform_1(%arg0: i32, %arg1: i32) -> (i32, i32, i32) {
    %c0_i32 = arith.constant 0 : i32
    %c0_i32_0 = arith.constant 0 : i32
    %c0_i32_1 = arith.constant 0 : i32
    %c0_i32_2 = arith.constant 0 : i32
    return %c0_i32, %c0_i32_0, %c0_i32_1 : i32, i32, i32
  }
  func.func @transform_2(%arg0: i32, %arg1: i32) -> (i32, i32) {
    %c0_i32 = arith.constant 0 : i32
    %c0_i32_0 = arith.constant 0 : i32
    %c0_i32_1 = arith.constant 0 : i32
    return %c0_i32, %c0_i32_0 : i32, i32
  }
  func.func @transform_3(%arg0: i32, %arg1: i32) -> (i32, i32, i32, i32) {
    %c0_i32 = arith.constant 0 : i32
    %c0_i32_0 = arith.constant 0 : i32
    %c0_i32_1 = arith.constant 0 : i32
    return %arg0, %c0_i32, %arg1, %c0_i32_0 : i32, i32, i32, i32
  }
}

</mosaic_0001>

<bundles_post_ra>
// kernel: p4cz2_forward.1
= control target key start
LH: loop header
LB: loop body
LE: loop exit
PB: predicated region body
PF: predicated region fallthrough
CT: control target
= control target key end

     0   :  { %8 = vsyncpa [#allocation3], 0  ;;  %s9195_s0 = inlined_call_operand.vmem [shape: bf16[2,320,20], index: 0, kind: input, shape index: {}]   ;;  %s9196_s1 = inlined_call_operand.vmem [shape: bf16[5,32,80], index: 1, kind: input, shape index: {}]   ;;  %s9197_s2 = inlined_call_operand.vmem [shape: f32[32,1], index: 2, kind: input, shape index: {}]   ;;  %s9198_s3 = inlined_call_operand.hbm [shape: f32[2,32,16,16], index: 3, kind: output, shape index: {}]  }
   0x1   :  { %10 = vsyncpa [#allocation3 + $0x1], 0  ;;  %s6928_s12 = smov 0   ;;  %s6930_s13 = smov 0  }
   0x2   :  { %s6932_s14 = smov 0   ;;  %s6934_s15 = smov 0  }
   0x3   :  { %s6936_s16 = smov 0   ;;  %s6938_s17 = smov 0  }
   0x4   :  { %s6940_s18 = smov 0   ;;  %s6942_s19 = smov 0  }
   0x5 LB: > { %s5524_s20 = sadd.s32 4294967295, %s6896_s19   ;;  %s5525_s21 = sadd.s32 4294967294, %s6896_s19   ;;  %s6896_s19 = sphi %s6942_s19, %s16_s19   ;;  %s6892_s18 = sphi %s6940_s18, %s9213_s18   ;;  %s6888_s17 = sphi %s6938_s17, %s9212_s17   ;;  %s6884_s16 = sphi %s6936_s16, %s9211_s16   ;;  %s6880_s15 = sphi %s6934_s15, %s9210_s15   ;;  %s6876_s14 = sphi %s6932_s14, %s9209_s14   ;;  %s6872_s13 = sphi %s6930_s13, %s9208_s13   ;;  %s6868_s12 = sphi %s6928_s12, %s9207_s12  }
   0x6   : > { %s25_s22 = sadd.s32 1, %s6888_s17  ;;  %s28_s23 = sadd.s32 1, %s6892_s18 }
   0x7   : > { %p26_p0 = scmp.ge.s32.totalorder %s25_s22, 2  ;;  %p115_p1 = scmp.ne.s32.totalorder %s6876_s14, %s6872_s13 }
   0x8   : > { %p116_p2 = scmp.eq.s32.totalorder %s5524_s20, 3  ;;  %p121_p5 = scmp.ne.s32.totalorder %s6872_s13, %s6868_s12 }
   0x9   : > { %s9215_s22 = smov (%p26_p0, %s25_s22), 0  ;;  %s9217_s23 = smov (!%p26_p0, %s28_s23), %s6892_s18 }
   0xa   : > { %s101_s24 = ssub.s32 %s6888_s17, %s9215_s22  ;;  %p6979_p3 = por %p116_p2, %p115_p1 }
   0xb   : > { %p30_p4 = scmp.ge.s32.totalorder %s9217_s23, 2  ;;  %p122_p6 = scmp.eq.s32.totalorder %s5525_s21, 3 }
   0xc   : > { %p5528_p7 = scmp.ge.s32.totalorder %s6896_s19, 1  ;;  %p154_p9 = scmp.lt.s32.totalorder %s6896_s19, 5 }
   0xd   : > { %s9219_s23 = smov (%p30_p4, %s9217_s23), 0  ;;  %p6988_p8 = por %p122_p6, %p121_p5 }
   0xe   : > { %s100_s27 = ssub.s32 %s6892_s18, %s9219_s23  ;;  %s105_s28 = sadd.s32 1, %s6876_s14 }
   0xf   : > { %s102_s29 = sor.u32 %s101_s24, %s100_s27  ;;  %p155_p10 = pnand %p5528_p7, %p154_p9 }
  0x10   : > { %p103_p11 = scmp.eq.s32.totalorder %s102_s29, 0  ;;  %p178_p12 = scmp.lt.s32.totalorder (!%p155_p10), %s6884_s16, 1  ;;  %vm277_vm0 = vcmask (!%p155_p10), 654336   ;;  %v7064_v10 = vld [vmem:[%s9196_s1 + $0x10] sm:$0xff] (!%p155_p10)   ;;  %v7233_v31 = vld [vmem:[%s9196_s1 + $0x18] sm:$0xff] (!%p155_p10)   ;;  %v7243_v34 = vld [vmem:[%s9196_s1] sm:$0xff] (!%p155_p10)  }
  0x11   : > { %158 = sbr.rel (%p155_p10) target bundleno = 826 (0x33a), region = 32  ;;  %s7001_s4 = sshll.u32 (!%p155_p10), %s6880_s15, 7  ;;  %5981 = vmatprep.mubr.msk.bf16.mxu0 (!%p155_p10), %vm277_vm0, %v7064_v10  ;;  %6051 = vmatprep.mubr.msk.bf16.mxu1 (!%p155_p10), %vm277_vm0, %v7064_v10  ;;  %v7300_v43 = vld [vmem:[%s9196_s1 + $0x8] sm:$0xff] (!%p155_p10)   ;;  %v7307_v45 = vld [vmem:[%s9196_s1 + $0x20] sm:$0xff] (!%p155_p10)   ;;  %vm919_vm1 = vcmask (!%p155_p10), 122880  }
  0x12   : > { %s6997_s30 = scalar_select %p103_p11, %s6876_s14, %s105_s28  }
  0x13   : > { %s213_s5 = sshra.s32 (!%p155_p10), %s7001_s4, 3  ;;  %s952_s8 = sadd.s32 (!%p155_p10), 16, %s7001_s4 }
  0x14   : > { %s5548_s7 = sshll.u32 (!%p155_p10), %s213_s5, 2  ;;  %s953_s10 = sshra.s32 (!%p155_p10), %s952_s8, 3 }
  0x15   : > { %s5574_s11 = sshll.u32 (!%p155_p10), %s953_s10, 2  ;;  %s2228_s29 = sadd.s32 (!%p155_p10), 48, %s7001_s4 }
  0x16   : > { %s9199_s5 = smov (!%p155_p10), 127  }
  0x18   : > { %s179_s6 = scalar_select %p178_p12, %s6884_s16, 1 }
  0x1a   : > { %s6659_s9 = smul.u32 160, %s179_s6  ;;  %s2229_s6 = sshra.s32 %s2228_s29, 3 }
  0x1c   : > { %s7009_s24 = scalar_lea.vmem %s9195_s0, %s6659_s9  ;;  %s5606_s9 = sshll.u32 %s2229_s6, 2 }
  0x1d   : > { %s216_s27 = scalar_lea.vmem %s7009_s24, %s5548_s7  ;;  %s956_s28 = scalar_lea.vmem %s7009_s24, %s5574_s11 }
  0x1e   : > { %v7013_v0 = vld [vmem:[%s216_s27 + $0x8] sm:$0xff]   ;;  %v7015_v1 = vld [vmem:[%s216_s27] sm:$0xff]   ;;  %s1590_s7 = sadd.s32 32, %s7001_s4  ;;  %v7029_v4 = vld [vmem:[%s956_s28 + $0x10] sm:$0xff]   ;;  %s7036_s11 = scalar_lea.vmem %s7009_s24, %s5606_s9 }
  0x1f   : > { %264 = vrot.lane.b32.xlu1 %v7013_v0, %s9199_s5  ;;  %v7020_v2 = vld [vmem:[%s956_s28 + $0x8] sm:$0xff]   ;;  %262 = vrot.lane.b32.xlu0 %v7015_v1, %s9199_s5  ;;  %v7024_v3 = vld [vmem:[%s956_s28] sm:$0xff]   ;;  %s1591_s8 = sshra.s32 %s1590_s7, 3  ;;  %s2866_s6 = sadd.s32 64, %s7001_s4 }
  0x20   : > { %v7033_v5 = vld [vmem:[%s216_s27 + $0x10] sm:$0xff]   ;;  %s5590_s10 = sshll.u32 %s1591_s8, 2  ;;  %v7040_v6 = vld [vmem:[%s956_s28 + $0x18] sm:$0xff]   ;;  %v7051_v8 = vld [vmem:[%s956_s28 + $0x20] sm:$0xff]   ;;  %s6899_s28 = smov 126  }
  0x21   : > { %s7043_s20 = scalar_lea.vmem %s7009_s24, %s5590_s10  ;;  %v7047_v7 = vld [vmem:[%s216_s27 + $0x18] sm:$0xff]   ;;  %v7055_v9 = vld [vmem:[%s216_s27 + $0x20] sm:$0xff]   ;;  %s3504_s27 = sadd.s32 80, %s7001_s4  ;;  %v7147_v13 = vld [vmem:[%s7036_s11 + $0x8] sm:$0xff]  }
  0x22   : > { %s3505_s7 = sshra.s32 %s3504_s27, 3  ;;  %s2867_s8 = sshra.s32 %s2866_s6, 3  ;;  %v7137_v11 = vld [vmem:[%s7036_s11] sm:$0xff]   ;;  %v7152_v14 = vld [vmem:[%s7043_s20 + $0x8] sm:$0xff]   ;;  %v7157_v15 = vld [vmem:[%s7036_s11 + $0x10] sm:$0xff]  }
  0x23   : > { %994 = vrot.lane.b32.xlu1 %v7020_v2, %s9199_s5  ;;  %992 = vrot.lane.b32.xlu0 %v7024_v3, %s9199_s5  ;;  %s5638_s9 = sshll.u32 %s3505_s7, 2  ;;  %s5622_s10 = sshll.u32 %s2867_s8, 2  ;;  %v7142_v12 = vld [vmem:[%s7043_s20] sm:$0xff]   ;;  %v7162_v16 = vld [vmem:[%s7043_s20 + $0x10] sm:$0xff]  }
  0x24   : > { %s7087_s21 = scalar_lea.vmem %s7009_s24, %s5638_s9  ;;  %s7092_s29 = scalar_lea.vmem %s7009_s24, %s5622_s10  ;;  %v7167_v17 = vld [vmem:[%s7036_s11 + $0x18] sm:$0xff]   ;;  %v7177_v19 = vld [vmem:[%s7036_s11 + $0x20] sm:$0xff]  }
  0x25   : > { %s6900_s27 = smov 125   ;;  %s9201_s6 = smov 124   ;;  %v7172_v18 = vld [vmem:[%s7043_s20 + $0x18] sm:$0xff]   ;;  %v7182_v20 = vld [vmem:[%s7043_s20 + $0x20] sm:$0xff]   ;;  %v7332_v51 = vld [vmem:[%s7087_s21 + $0x8] sm:$0xff]  }
  0x26   : > { %s4780_s11 = sadd.s32 112, %s7001_s4  ;;  %s4142_s20 = sadd.s32 96, %s7001_s4  ;;  %v7314_v47 = vld [vmem:[%s7087_s21] sm:$0xff]   ;;  %v7337_v52 = vld [vmem:[%s7092_s29 + $0x8] sm:$0xff]   ;;  %v7348_v55 = vld [vmem:[%s7087_s21 + $0x10] sm:$0xff]  }
  0x27   : > { %996 = vrot.lane.b32.xlu1 %v7029_v4, %s9199_s5  ;;  %266 = vrot.lane.b32.xlu0 %v7033_v5, %s9199_s5  ;;  %s4781_s7 = sshra.s32 %s4780_s11, 3  ;;  %s4143_s8 = sshra.s32 %s4142_s20, 3  ;;  %v7321_v48 = vld [vmem:[%s7092_s29] sm:$0xff]   ;;  %v7353_v56 = vld [vmem:[%s7092_s29 + $0x10] sm:$0xff]  }
  0x28   : > { %s5670_s9 = sshll.u32 %s4781_s7, 2  ;;  %s5654_s10 = sshll.u32 %s4143_s8, 2  ;;  %v7364_v59 = vld [vmem:[%s7087_s21 + $0x18] sm:$0xff]   ;;  %v7378_v63 = vld [vmem:[%s7087_s21 + $0x20] sm:$0xff]  }
  0x29   : > { %s9205_s7 = smov 124   ;;  %v7369_v60 = vld [vmem:[%s7092_s29 + $0x18] sm:$0xff]   ;;  %s5687_s8 = sshll.u32 %s6884_s16, 6 }
  0x2a   : > { %s9088_s16 = sadd.s32 %s6880_s15, %s5687_s8  ;;  %s6904_s11 = smov [#allocation2]  }
  0x2b   : > { %998 = vrot.lane.b32.xlu1 %v7040_v6, %s9199_s5  ;;  %268 = vrot.lane.b32.xlu0 %v7047_v7, %s9199_s5  ;;  %s5688_s15 = sshll.u32 %s9088_s16, 7  ;;  %s6806_s20 = sshll.u32 %s6904_s11, 4  ;;  %s6807_s20 = int_to_ptr.vmem [resolvable:$false] %s6806_s20 }
  0x2f   : > { %1000 = vrot.lane.b32.xlu1 %v7051_v8, %s9199_s5  ;;  %270 = vrot.lane.b32.xlu0 %v7055_v9, %s9199_s5 }
  0x33   : > { %1110 = vrot.lane.b32.xlu1 %v7024_v3, %s6899_s28  ;;  %413 = vrot.lane.b32.xlu0 %v7015_v1, %s6899_s28 }
  0x37   : > { %1112 = vrot.lane.b32.xlu1 %v7020_v2, %s6899_s28  ;;  %415 = vrot.lane.b32.xlu0 %v7013_v0, %s6899_s28 }
  0x3b   : > { %1114 = vrot.lane.b32.xlu1 %v7029_v4, %s6899_s28  ;;  %417 = vrot.lane.b32.xlu0 %v7033_v5, %s6899_s28 }
  0x3f   : > { %1116 = vrot.lane.b32.xlu1 %v7040_v6, %s6899_s28  ;;  %419 = vrot.lane.b32.xlu0 %v7047_v7, %s6899_s28 }
  0x43   : > { %1118 = vrot.lane.b32.xlu1 %v7051_v8, %s6899_s28  ;;  %421 = vrot.lane.b32.xlu0 %v7055_v9, %s6899_s28 }
  0x47   : > { %1178 = vrot.lane.b32.xlu1 %v7024_v3, %s6900_s27  ;;  %497 = vrot.lane.b32.xlu0 %v7015_v1, %s6900_s27 }
  0x4b   : > { %1180 = vrot.lane.b32.xlu1 %v7020_v2, %s6900_s27  ;;  %499 = vrot.lane.b32.xlu0 %v7013_v0, %s6900_s27 }
  0x4f   : > { %1182 = vrot.lane.b32.xlu1 %v7029_v4, %s6900_s27  ;;  %501 = vrot.lane.b32.xlu0 %v7033_v5, %s6900_s27 }
  0x53   : > { %1184 = vrot.lane.b32.xlu1 %v7040_v6, %s6900_s27  ;;  %503 = vrot.lane.b32.xlu0 %v7047_v7, %s6900_s27 }
  0x57   : > { %1186 = vrot.lane.b32.xlu1 %v7051_v8, %s6900_s27  ;;  %505 = vrot.lane.b32.xlu0 %v7055_v9, %s6900_s27 }
  0x5b   : > { %1246 = vrot.lane.b32.xlu1 %v7024_v3, %s9201_s6  ;;  %581 = vrot.lane.b32.xlu0 %v7015_v1, %s9201_s6 }
  0x5f   : > { %1248 = vrot.lane.b32.xlu1 %v7020_v2, %s9201_s6  ;;  %583 = vrot.lane.b32.xlu0 %v7013_v0, %s9201_s6 }
  0x63   : > { %1250 = vrot.lane.b32.xlu1 %v7029_v4, %s9201_s6  ;;  %585 = vrot.lane.b32.xlu0 %v7033_v5, %s9201_s6 }
  0x67   : > { %1252 = vrot.lane.b32.xlu1 %v7040_v6, %s9201_s6  ;;  %587 = vrot.lane.b32.xlu0 %v7047_v7, %s9201_s6 }
  0x6b   : > { %1254 = vrot.lane.b32.xlu1 %v7051_v8, %s9201_s6  ;;  %589 = vrot.lane.b32.xlu0 %v7055_v9, %s9201_s6  ;;  %s7210_s6 = scalar_lea.vmem %s7009_s24, %s5654_s10 }
  0x6f   : > { %2268 = vrot.lane.b32.xlu1 %v7137_v11, %s9199_s5  ;;  %1630 = vrot.lane.b32.xlu0 %v7142_v12, %s9199_s5 }
  0x73   : > { %2270 = vrot.lane.b32.xlu1 %v7147_v13, %s9199_s5  ;;  %1632 = vrot.lane.b32.xlu0 %v7152_v14, %s9199_s5 }
  0x77   : > { %2272 = vrot.lane.b32.xlu1 %v7157_v15, %s9199_s5  ;;  %1634 = vrot.lane.b32.xlu0 %v7162_v16, %s9199_s5 }
  0x7b   : > { %2274 = vrot.lane.b32.xlu1 %v7167_v17, %s9199_s5  ;;  %1636 = vrot.lane.b32.xlu0 %v7172_v18, %s9199_s5 }
  0x7f   : > { %2276 = vrot.lane.b32.xlu1 %v7177_v19, %s9199_s5  ;;  %1638 = vrot.lane.b32.xlu0 %v7182_v20, %s9199_s5  ;;  %s7205_s5 = scalar_lea.vmem %s7009_s24, %s5670_s9  ;;  %s9206_s24 = smov 127  }
  0x83   : > { %2386 = vrot.lane.b32.xlu1 %v7137_v11, %s6899_s28  ;;  %1748 = vrot.lane.b32.xlu0 %v7142_v12, %s6899_s28 }
  0x87   : > { %2388 = vrot.lane.b32.xlu1 %v7147_v13, %s6899_s28  ;;  %1750 = vrot.lane.b32.xlu0 %v7152_v14, %s6899_s28 }
  0x8b   : > { %2390 = vrot.lane.b32.xlu1 %v7157_v15, %s6899_s28  ;;  %1752 = vrot.lane.b32.xlu0 %v7162_v16, %s6899_s28 }
  0x8f   : > { %2392 = vrot.lane.b32.xlu1 %v7167_v17, %s6899_s28  ;;  %1754 = vrot.lane.b32.xlu0 %v7172_v18, %s6899_s28 }
  0x91   : > { %v265_v21 = vpop.permute.xlu1 %264  ;;  %v263_v22 = vpop.permute.xlu0 %262 }
  0x92   : > { %5971 = vmatprep.subr.bf16.mxu0 %v263_v22 }
  0x93   : > { %2394 = vrot.lane.b32.xlu1 %v7177_v19, %s6899_s28  ;;  %1756 = vrot.lane.b32.xlu0 %v7182_v20, %s6899_s28 }
  0x94   : > { %5972 = vmatpush3.bf16.msra.mxu0 %v263_v22 }
  0x95   : > { %5973 = vmatprep.subr.bf16.mxu0 %v265_v21  ;;  %v995_v23 = vpop.permute.xlu1 %994  ;;  %v993_v24 = vpop.permute.xlu0 %992 }
  0x96   : > { %6041 = vmatprep.subr.bf16.mxu1 %v993_v24 }
  0x97   : > { %2454 = vrot.lane.b32.xlu1 %v7137_v11, %s6900_s27  ;;  %1816 = vrot.lane.b32.xlu0 %v7142_v12, %s6900_s27 }
  0x98   : > { %5974 = vmatpush3.bf16.msra.mxu0 %v265_v21  ;;  %6042 = vmatpush3.bf16.msra.mxu1 %v993_v24  ;;  %v7446_v24 = vld [vmem:[%s9196_s1 + $0x38] sm:$0xff]  }
  0x99   : > { %v997_v25 = vpop.permute.xlu1 %996  ;;  %v267_v26 = vpop.permute.xlu0 %266  ;;  %6043 = vmatprep.subr.bf16.mxu1 %v995_v23 }
  0x9a   : > { %5975 = vmatprep.subr.bf16.mxu0 %v267_v26 }
  0x9b   : > { %2456 = vrot.lane.b32.xlu1 %v7147_v13, %s6900_s27  ;;  %1818 = vrot.lane.b32.xlu0 %v7152_v14, %s6900_s27 }
  0x9c   : > { %5976 = vmatpush3.bf16.msra.mxu0 %v267_v26  ;;  %6044 = vmatpush3.bf16.msra.mxu1 %v995_v23 }
  0x9d   : > { %v999_v27 = vpop.permute.xlu1 %998  ;;  %v269_v28 = vpop.permute.xlu0 %268  ;;  %6045 = vmatprep.subr.bf16.mxu1 %v997_v25 }
  0x9e   : > { %5977 = vmatprep.subr.bf16.mxu0 %v269_v28 }
  0x9f   : > { %2458 = vrot.lane.b32.xlu1 %v7157_v15, %s6900_s27  ;;  %1820 = vrot.lane.b32.xlu0 %v7162_v16, %s6900_s27 }
  0xa0   : > { %5978 = vmatpush3.bf16.msra.mxu0 %v269_v28  ;;  %6046 = vmatpush3.bf16.msra.mxu1 %v997_v25  ;;  %v6902_v25 = vmov 0  }
  0xa1   : > { %v1001_v29 = vpop.permute.xlu1 %1000  ;;  %v271_v30 = vpop.permute.xlu0 %270  ;;  %6047 = vmatprep.subr.bf16.mxu1 %v999_v27  ;;  %6741 = vset.pattern.permute.xlu1 %v6902_v25 }
  0xa2   : > { %5979 = vmatprep.subr.bf16.mxu0 %v271_v30  ;;  %6740 = vset.pattern.permute.xlu0 %v6902_v25  ;;  %v7651_v25 = vld [vmem:[%s7210_s6 + $0x20] sm:$0xff]  }
  0xa3   : > { %2460 = vrot.lane.b32.xlu1 %v7167_v17, %s6900_s27  ;;  %1822 = vrot.lane.b32.xlu0 %v7172_v18, %s6900_s27 }
  0xa4   : > { %5980 = vmatpush3.bf16.msra.mxu0 %v271_v30  ;;  %6048 = vmatpush3.bf16.msra.mxu1 %v999_v27  ;;  %v7453_v27 = vld [vmem:[%s9196_s1 + $0x40] sm:$0xff]  }
  0xa5   : > { %5985 = vmatprep.subr.bf16.mxu0 %v7015_v1  ;;  %v7238_v32 = vpop.permute.xlu1 %1110  ;;  %6049 = vmatprep.subr.bf16.mxu1 %v1001_v29  ;;  %v414_v33 = vpop.permute.xlu0 %413 }
  0xa7   : > { %2462 = vrot.lane.b32.xlu1 %v7177_v19, %s6900_s27  ;;  %5982 = vmatmul.mubr.msk.bf16.vlgmr.msra.gmra.mrb[0].mxu0 %vm277_vm0, %v7233_v31 }
  0xa8   : > { %1824 = vrot.lane.b32.xlu0 %v7182_v20, %s6900_s27  ;;  %5986 = vmatpush3.bf16.msra.mxu0 %v7015_v1  ;;  %v7388_v1 = vld [vmem:[%s9196_s1 + $0x28] sm:$0xff]  }
  0xa9   : > { %6050 = vmatpush3.bf16.msra.mxu1 %v1001_v29  ;;  %5987 = vmatprep.subr.bf16.mxu0 %v7013_v0  ;;  %v7253_v35 = vpop.permute.xlu1 %1112  ;;  %v416_v36 = vpop.permute.xlu0 %415 }
  0xaa   : > { %6055 = vmatprep.subr.bf16.mxu1 %v7024_v3  ;;  %5995 = vmatprep.mubr.msk.bf16.mxu0 %vm277_vm0, %v7243_v34 }
  0xab   : > { %2522 = vrot.lane.b32.xlu1 %v7137_v11, %s9205_s7 }
  0xac   : > { %1884 = vrot.lane.b32.xlu0 %v7142_v12, %s9205_s7  ;;  %5988 = vmatpush3.bf16.msra.mxu0 %v7013_v0  ;;  %v7383_v0 = vld [vmem:[%s7092_s29 + $0x20] sm:$0xff]   ;;  %s9127_s29 = scalar_lea.hbm %s9198_s3, %s5688_s15 }
  0xad   : > { %6052 = vmatmul.mubr.msk.bf16.vlgmr.msra.gmra.mrb[0].mxu1 %vm277_vm0, %v7233_v31  ;;  %5989 = vmatprep.subr.bf16.mxu0 %v7033_v5  ;;  %v7266_v37 = vpop.permute.xlu1 %1114  ;;  %v418_v38 = vpop.permute.xlu0 %417 }
  0xae   : > { %6056 = vmatpush3.bf16.msra.mxu1 %v7024_v3  ;;  %6065 = vmatprep.mubr.msk.bf16.mxu1 %vm277_vm0, %v7243_v34  ;;  %v7395_v3 = vld [vmem:[%s9196_s1 + $0x30] sm:$0xff]  }
  0xaf   : > { %6057 = vmatprep.subr.bf16.mxu1 %v7020_v2  ;;  %2524 = vrot.lane.b32.xlu1 %v7147_v13, %s9205_s7 }
  0xb0   : > { %1886 = vrot.lane.b32.xlu0 %v7152_v14, %s9205_s7  ;;  %5990 = vmatpush3.bf16.msra.mxu0 %v7033_v5 }
  0xb1   : > { %5991 = vmatprep.subr.bf16.mxu0 %v7047_v7  ;;  %v7278_v39 = vpop.permute.xlu1 %1116  ;;  %v420_v40 = vpop.permute.xlu0 %419 }
  0xb2   : > { %6058 = vmatpush3.bf16.msra.mxu1 %v7020_v2 }
  0xb3   : > { %6059 = vmatprep.subr.bf16.mxu1 %v7029_v4  ;;  %2526 = vrot.lane.b32.xlu1 %v7157_v15, %s9205_s7 }
  0xb4   : > { %1888 = vrot.lane.b32.xlu0 %v7162_v16, %s9205_s7  ;;  %5992 = vmatpush3.bf16.msra.mxu0 %v7047_v7 }
  0xb5   : > { %5993 = vmatprep.subr.bf16.mxu0 %v7055_v9  ;;  %v7288_v41 = vpop.permute.xlu1 %1118  ;;  %v422_v42 = vpop.permute.xlu0 %421 }
  0xb6   : > { %6060 = vmatpush3.bf16.msra.mxu1 %v7029_v4 }
  0xb7   : > { %6061 = vmatprep.subr.bf16.mxu1 %v7040_v6  ;;  %2528 = vrot.lane.b32.xlu1 %v7167_v17, %s9205_s7 }
  0xb8   : > { %1890 = vrot.lane.b32.xlu0 %v7172_v18, %s9205_s7  ;;  %5994 = vmatpush3.bf16.msra.mxu0 %v7055_v9 }
  0xb9   : > { %5999 = vmatprep.subr.bf16.mxu0 %v414_v33  ;;  %v7302_v44 = vpop.permute.xlu1 %1178  ;;  %v498_v46 = vpop.permute.xlu0 %497 }
  0xba   : > { %6062 = vmatpush3.bf16.msra.mxu1 %v7040_v6 }
  0xbb   : > { %6063 = vmatprep.subr.bf16.mxu1 %v7051_v8  ;;  %2530 = vrot.lane.b32.xlu1 %v7177_v19, %s9205_s7 }
  0xbc   : > { %1892 = vrot.lane.b32.xlu0 %v7182_v20, %s9205_s7  ;;  %5996 = vmatmul.mubr.msk.bf16.vlgmr.msra.gmra.mrb[0].mxu0 %vm277_vm0, %v7300_v43 }
  0xbd   : > { %6000 = vmatpush3.bf16.msra.mxu0 %v414_v33  ;;  %v7323_v49 = vpop.permute.xlu1 %1180  ;;  %6009 = vmatprep.mubr.msk.bf16.mxu0 %vm277_vm0, %v7307_v45  ;;  %v500_v50 = vpop.permute.xlu0 %499 }
  0xbe   : > { %6064 = vmatpush3.bf16.msra.mxu1 %v7051_v8  ;;  %6001 = vmatprep.subr.bf16.mxu0 %v416_v36 }
  0xbf   : > { %6069 = vmatprep.subr.bf16.mxu1 %v7238_v32  ;;  %3544 = vrot.lane.b32.xlu1 %v7314_v47, %s9206_s24 }
  0xc0   : > { %2906 = vrot.lane.b32.xlu0 %v7321_v48, %s9206_s24 }
  0xc1   : > { %6002 = vmatpush3.bf16.msra.mxu0 %v416_v36  ;;  %6066 = vmatmul.mubr.msk.bf16.vlgmr.msra.gmra.mrb[0].mxu1 %vm277_vm0, %v7300_v43  ;;  %v7341_v53 = vpop.permute.xlu1 %1182  ;;  %v502_v54 = vpop.permute.xlu0 %501 }
  0xc2   : > { %6070 = vmatpush3.bf16.msra.mxu1 %v7238_v32  ;;  %6003 = vmatprep.subr.bf16.mxu0 %v418_v38 }
  0xc3   : > { %6071 = vmatprep.subr.bf16.mxu1 %v7253_v35  ;;  %3546 = vrot.lane.b32.xlu1 %v7332_v51, %s9206_s24 }
  0xc4   : > { %2908 = vrot.lane.b32.xlu0 %v7337_v52, %s9206_s24  ;;  %6079 = vmatprep.mubr.msk.bf16.mxu1 %vm277_vm0, %v7307_v45 }
  0xc5   : > { %6004 = vmatpush3.bf16.msra.mxu0 %v418_v38  ;;  %v7357_v57 = vpop.permute.xlu1 %1184  ;;  %v504_v58 = vpop.permute.xlu0 %503 }
  0xc6   : > { %6072 = vmatpush3.bf16.msra.mxu1 %v7253_v35  ;;  %6005 = vmatprep.subr.bf16.mxu0 %v420_v40 }
  0xc7   : > { %6073 = vmatprep.subr.bf16.mxu1 %v7266_v37  ;;  %3548 = vrot.lane.b32.xlu1 %v7348_v55, %s9206_s24 }
  0xc8   : > { %2910 = vrot.lane.b32.xlu0 %v7353_v56, %s9206_s24 }
  0xc9   : > { %6006 = vmatpush3.bf16.msra.mxu0 %v420_v40  ;;  %v7371_v61 = vpop.permute.xlu1 %1186  ;;  %v506_v62 = vpop.permute.xlu0 %505 }
  0xca   : > { %6074 = vmatpush3.bf16.msra.mxu1 %v7266_v37  ;;  %6007 = vmatprep.subr.bf16.mxu0 %v422_v42 }
  0xcb   : > { %6075 = vmatprep.subr.bf16.mxu1 %v7278_v39  ;;  %3550 = vrot.lane.b32.xlu1 %v7364_v59, %s9206_s24 }
  0xcc   : > { %2912 = vrot.lane.b32.xlu0 %v7369_v60, %s9206_s24 }
  0xcd   : > { %6008 = vmatpush3.bf16.msra.mxu0 %v422_v42  ;;  %v7390_v2 = vpop.permute.xlu1 %1246  ;;  %v582_v4 = vpop.permute.xlu0 %581 }
  0xce   : > { %6076 = vmatpush3.bf16.msra.mxu1 %v7278_v39  ;;  %6013 = vmatprep.subr.bf16.mxu0 %v498_v46  ;;  %v7500_v39 = vld [vmem:[%s9196_s1 + $0x48] sm:$0xff]  }
  0xcf   : > { %6077 = vmatprep.subr.bf16.mxu1 %v7288_v41  ;;  %3552 = vrot.lane.b32.xlu1 %v7378_v63, %s9206_s24 }
  0xd0   : > { %2914 = vrot.lane.b32.xlu0 %v7383_v0, %s9206_s24  ;;  %6010 = vmatmul.mubr.msk.bf16.vlgmr.msra.gmra.mrb[0].mxu0 %vm277_vm0, %v7388_v1 }
  0xd1   : > { %6014 = vmatpush3.bf16.msra.mxu0 %v498_v46  ;;  %v7405_v5 = vpop.permute.xlu1 %1248  ;;  %6023 = vmatprep.mubr.msk.bf16.mxu0 %vm277_vm0, %v7395_v3  ;;  %v584_v6 = vpop.permute.xlu0 %583 }
  0xd2   : > { %6078 = vmatpush3.bf16.msra.mxu1 %v7288_v41  ;;  %6015 = vmatprep.subr.bf16.mxu0 %v500_v50 }
  0xd3   : > { %6083 = vmatprep.subr.bf16.mxu1 %v7302_v44  ;;  %3662 = vrot.lane.b32.xlu1 %v7314_v47, %s6899_s28 }
  0xd4   : > { %3024 = vrot.lane.b32.xlu0 %v7321_v48, %s6899_s28 }
  0xd5   : > { %6016 = vmatpush3.bf16.msra.mxu0 %v500_v50  ;;  %6080 = vmatmul.mubr.msk.bf16.vlgmr.msra.gmra.mrb[0].mxu1 %vm277_vm0, %v7388_v1  ;;  %v7417_v7 = vpop.permute.xlu1 %1250  ;;  %v586_v8 = vpop.permute.xlu0 %585 }
  0xd6   : > { %6084 = vmatpush3.bf16.msra.mxu1 %v7302_v44  ;;  %6017 = vmatprep.subr.bf16.mxu0 %v502_v54 }
  0xd7   : > { %6085 = vmatprep.subr.bf16.mxu1 %v7323_v49  ;;  %3664 = vrot.lane.b32.xlu1 %v7332_v51, %s6899_s28 }
  0xd8   : > { %3026 = vrot.lane.b32.xlu0 %v7337_v52, %s6899_s28  ;;  %6093 = vmatprep.mubr.msk.bf16.mxu1 %vm277_vm0, %v7395_v3 }
  0xd9   : > { %6018 = vmatpush3.bf16.msra.mxu0 %v502_v54  ;;  %v7427_v9 = vpop.permute.xlu1 %1252  ;;  %v588_v21 = vpop.permute.xlu0 %587 }
  0xda   : > { %6086 = vmatpush3.bf16.msra.mxu1 %v7323_v49  ;;  %6019 = vmatprep.subr.bf16.mxu0 %v504_v58 }
  0xdb   : > { %6087 = vmatprep.subr.bf16.mxu1 %v7341_v53  ;;  %3666 = vrot.lane.b32.xlu1 %v7348_v55, %s6899_s28 }
  0xdc   : > { %3028 = vrot.lane.b32.xlu0 %v7353_v56, %s6899_s28 }
  0xdd   : > { %6020 = vmatpush3.bf16.msra.mxu0 %v504_v58  ;;  %v7435_v22 = vpop.permute.xlu1 %1254  ;;  %v590_v23 = vpop.permute.xlu0 %589 }
  0xde   : > { %6088 = vmatpush3.bf16.msra.mxu1 %v7341_v53  ;;  %6021 = vmatprep.subr.bf16.mxu0 %v506_v62 }
  0xdf   : > { %6089 = vmatprep.subr.bf16.mxu1 %v7357_v57  ;;  %3668 = vrot.lane.b32.xlu1 %v7364_v59, %s6899_s28 }
  0xe0   : > { %3030 = vrot.lane.b32.xlu0 %v7369_v60, %s6899_s28 }
  0xe1   : > { %6022 = vmatpush3.bf16.msra.mxu0 %v506_v62  ;;  %v7448_v26 = vpop.permute.xlu1 %2268  ;;  %v1631_v28 = vpop.permute.xlu0 %1630  ;;  %v7573_v62 = vld [vmem:[%s7210_s6] sm:$0xff]  }
  0xe2   : > { %6090 = vmatpush3.bf16.msra.mxu1 %v7357_v57  ;;  %6027 = vmatprep.subr.bf16.mxu0 %v582_v4 }
  0xe3   : > { %6091 = vmatprep.subr.bf16.mxu1 %v7371_v61  ;;  %3670 = vrot.lane.b32.xlu1 %v7378_v63, %s6899_s28 }
  0xe4   : > { %3032 = vrot.lane.b32.xlu0 %v7383_v0, %s6899_s28  ;;  %6024 = vmatmul.mubr.msk.bf16.vlgmr.msra.gmra.mrb[0].mxu0 %vm277_vm0, %v7446_v24 }
  0xe5   : > { %6028 = vmatpush3.bf16.msra.mxu0 %v582_v4  ;;  %v7463_v29 = vpop.permute.xlu1 %2270  ;;  %6037 = vmatprep.mubr.msk.bf16.mxu0 %vm277_vm0, %v7453_v27  ;;  %v1633_v30 = vpop.permute.xlu0 %1632 }
  0xe6   : > { %6092 = vmatpush3.bf16.msra.mxu1 %v7371_v61  ;;  %6029 = vmatprep.subr.bf16.mxu0 %v584_v6  ;;  %v7566_v61 = vld [vmem:[%s7205_s5] sm:$0xff]  }
  0xe7   : > { %6097 = vmatprep.subr.bf16.mxu1 %v7390_v2  ;;  %3730 = vrot.lane.b32.xlu1 %v7314_v47, %s6900_s27 }
  0xe8   : > { %3092 = vrot.lane.b32.xlu0 %v7321_v48, %s6900_s27 }
  0xe9   : > { %6094 = vmatmul.mubr.msk.bf16.vlgmr.msra.gmra.mrb[0].mxu1 %vm277_vm0, %v7446_v24  ;;  %6030 = vmatpush3.bf16.msra.mxu0 %v584_v6  ;;  %v2273_v32 = vpop.permute.xlu1 %2272  ;;  %v1635_v33 = vpop.permute.xlu0 %1634 }
  0xea   : > { %6098 = vmatpush3.bf16.msra.mxu1 %v7390_v2  ;;  %6031 = vmatprep.subr.bf16.mxu0 %v586_v8 }
  0xeb   : > { %6099 = vmatprep.subr.bf16.mxu1 %v7405_v5  ;;  %3732 = vrot.lane.b32.xlu1 %v7332_v51, %s6900_s27 }
  0xec   : > { %3094 = vrot.lane.b32.xlu0 %v7337_v52, %s6900_s27  ;;  %6107 = vmatprep.mubr.msk.bf16.mxu1 %vm277_vm0, %v7453_v27 }
  0xed   : > { %6032 = vmatpush3.bf16.msra.mxu0 %v586_v8  ;;  %v2275_v35 = vpop.permute.xlu1 %2274  ;;  %v1637_v36 = vpop.permute.xlu0 %1636  ;;  %v7608_v8 = vld [vmem:[%s7205_s5 + $0x10] sm:$0xff]  }
  0xee   : > { %6100 = vmatpush3.bf16.msra.mxu1 %v7405_v5  ;;  %6033 = vmatprep.subr.bf16.mxu0 %v588_v21  ;;  %v7588_v5 = vld [vmem:[%s7205_s5 + $0x8] sm:$0xff]  }
  0xef   : > { %6101 = vmatprep.subr.bf16.mxu1 %v7417_v7  ;;  %3734 = vrot.lane.b32.xlu1 %v7348_v55, %s6900_s27 }
  0xf0   : > { %3096 = vrot.lane.b32.xlu0 %v7353_v56, %s6900_s27 }
  0xf1   : > { %6034 = vmatpush3.bf16.msra.mxu0 %v588_v21  ;;  %v7489_v37 = vpop.permute.xlu1 %2276  ;;  %v1639_v38 = vpop.permute.xlu0 %1638  ;;  %v7628_v21 = vld [vmem:[%s7205_s5 + $0x18] sm:$0xff]  }
  0xf2   : > { %6102 = vmatpush3.bf16.msra.mxu1 %v7417_v7  ;;  %6035 = vmatprep.subr.bf16.mxu0 %v590_v23 }
  0xf3   : > { %6103 = vmatprep.subr.bf16.mxu1 %v7427_v9  ;;  %3736 = vrot.lane.b32.xlu1 %v7364_v59, %s6900_s27 }
  0xf4   : > { %3098 = vrot.lane.b32.xlu0 %v7369_v60, %s6900_s27 }
  0xf5   : > { %6036 = vmatpush3.bf16.msra.mxu0 %v590_v23  ;;  %v7502_v40 = vpop.permute.xlu1 %2386  ;;  %v7505_v41 = vpop.permute.xlu0 %1748  ;;  %v7646_v23 = vld [vmem:[%s7205_s5 + $0x20] sm:$0xff]   ;;  %s175_s5 = sand.u32 1, %s6872_s13  }
  0xf6   : > { %6104 = vmatpush3.bf16.msra.mxu1 %v7427_v9  ;;  %6111 = vmatprep.subr.bf16.mxu0 %v1631_v28  ;;  %s9143_s10 = scalar_lea.sflag [#allocation3], %s175_s5 }
  0xf7   : > { %6105 = vmatprep.subr.bf16.mxu1 %v7435_v22  ;;  %3738 = vrot.lane.b32.xlu1 %v7378_v63, %s6900_s27 }
  0xf8   : > { %6038 = vmatmul.mubr.msk.bf16.vlgmr.msra.gmra.mrb[0].mxu0 %vm277_vm0, %v7500_v39  ;;  %3100 = vrot.lane.b32.xlu0 %v7383_v0, %s6900_s27 }
  0xf9   : > { %6112 = vmatpush3.bf16.msra.mxu0 %v1631_v28  ;;  %v7514_v42 = vpop.permute.xlu1 %2388  ;;  %6121 = vmatprep.mubr.msk.bf16.mxu0 %vm277_vm0, %v7064_v10  ;;  %v7519_v44 = vpop.permute.xlu0 %1750 }
  0xfa   : > { %6106 = vmatpush3.bf16.msra.mxu1 %v7435_v22  ;;  %6113 = vmatprep.subr.bf16.mxu0 %v1633_v30 }
  0xfb   : > { %6181 = vmatprep.subr.bf16.mxu1 %v7448_v26  ;;  %3798 = vrot.lane.b32.xlu1 %v7314_v47, %s9205_s7 }
  0xfc   : > { %3160 = vrot.lane.b32.xlu0 %v7321_v48, %s9205_s7 }
  0xfd   : > { %6108 = vmatmul.mubr.msk.bf16.vlgmr.msra.gmra.mrb[0].mxu1 %vm277_vm0, %v7500_v39  ;;  %6114 = vmatpush3.bf16.msra.mxu0 %v1633_v30  ;;  %v7528_v46 = vpop.permute.xlu1 %2390  ;;  %v7531_v49 = vpop.permute.xlu0 %1752 }
  0xfe   : > { %6182 = vmatpush3.bf16.msra.mxu1 %v7448_v26  ;;  %6115 = vmatprep.subr.bf16.mxu0 %v1635_v33 }
  0xff   : > { %6183 = vmatprep.subr.bf16.mxu1 %v7463_v29  ;;  %3800 = vrot.lane.b32.xlu1 %v7332_v51, %s9205_s7 }
 0x100   : > { %3162 = vrot.lane.b32.xlu0 %v7337_v52, %s9205_s7  ;;  %6191 = vmatprep.mubr.msk.bf16.mxu1 %vm277_vm0, %v7064_v10 }
 0x101   : > { %6116 = vmatpush3.bf16.msra.mxu0 %v1635_v33  ;;  %v7540_v50 = vpop.permute.xlu1 %2392  ;;  %v7543_v53 = vpop.permute.xlu0 %1754 }
 0x102   : > { %6184 = vmatpush3.bf16.msra.mxu1 %v7463_v29  ;;  %6117 = vmatprep.subr.bf16.mxu0 %v1637_v36 }
 0x103   : > { %6185 = vmatprep.subr.bf16.mxu1 %v2273_v32  ;;  %3802 = vrot.lane.b32.xlu1 %v7348_v55, %s9205_s7 }
 0x104   : > { %3164 = vrot.lane.b32.xlu0 %v7353_v56, %s9205_s7 }
 0x105   : > { %6118 = vmatpush3.bf16.msra.mxu0 %v1637_v36  ;;  %v7549_v54 = vpop.permute.xlu1 %2394  ;;  %v7551_v10 = vpop.permute.xlu0 %1756 }
 0x106   : > { %6186 = vmatpush3.bf16.msra.mxu1 %v2273_v32  ;;  %6119 = vmatprep.subr.bf16.mxu0 %v1639_v38 }
 0x107   : > { %6187 = vmatprep.subr.bf16.mxu1 %v2275_v35  ;;  %3804 = vrot.lane.b32.xlu1 %v7364_v59, %s9205_s7 }
 0x108   : > { %3166 = vrot.lane.b32.xlu0 %v7369_v60, %s9205_s7 }
 0x109   : > { %6120 = vmatpush3.bf16.msra.mxu0 %v1639_v38  ;;  %v7557_v57 = vpop.permute.xlu1 %2454  ;;  %v7560_v58 = vpop.permute.xlu0 %1816 }
 0x10a   : > { %6188 = vmatpush3.bf16.msra.mxu1 %v2275_v35  ;;  %6125 = vmatprep.subr.bf16.mxu0 %v7142_v12 }
 0x10b   : > { %6189 = vmatprep.subr.bf16.mxu1 %v7489_v37  ;;  %3806 = vrot.lane.b32.xlu1 %v7378_v63, %s9205_s7 }
 0x10c   : > { %3168 = vrot.lane.b32.xlu0 %v7383_v0, %s9205_s7  ;;  %6122 = vmatmul.mubr.msk.bf16.vlgmr.msra.gmra.mrb[4].mxu0 %vm277_vm0, %v7233_v31 }
 0x10d   : > { %6126 = vmatpush3.bf16.msra.mxu0 %v7142_v12  ;;  %v7576_v2 = vpop.permute.xlu1 %2456  ;;  %6135 = vmatprep.mubr.msk.bf16.mxu0 %vm277_vm0, %v7243_v34  ;;  %v7582_v4 = vpop.permute.xlu0 %1818  ;;  %v7593_v12 = vld [vmem:[%s7210_s6 + $0x8] sm:$0xff]  }
 0x10e   : > { %6190 = vmatpush3.bf16.msra.mxu1 %v7489_v37  ;;  %6127 = vmatprep.subr.bf16.mxu0 %v7152_v14 }
 0x10f   : > { %6195 = vmatprep.subr.bf16.mxu1 %v7137_v11  ;;  %4820 = vrot.lane.b32.xlu1 %v7566_v61, %s9206_s24 }
 0x110   : > { %4182 = vrot.lane.b32.xlu0 %v7573_v62, %s9206_s24 }
 0x111   : > { %6192 = vmatmul.mubr.msk.bf16.vlgmr.msra.gmra.mrb[4].mxu1 %vm277_vm0, %v7233_v31  ;;  %6128 = vmatpush3.bf16.msra.mxu0 %v7152_v14  ;;  %v7598_v6 = vpop.permute.xlu1 %2458  ;;  %v7602_v7 = vpop.permute.xlu0 %1820  ;;  %v7613_v14 = vld [vmem:[%s7210_s6 + $0x10] sm:$0xff]  }
 0x112   : > { %6196 = vmatpush3.bf16.msra.mxu1 %v7137_v11  ;;  %6129 = vmatprep.subr.bf16.mxu0 %v7162_v16 }
 0x113   : > { %6197 = vmatprep.subr.bf16.mxu1 %v7147_v13  ;;  %4822 = vrot.lane.b32.xlu1 %v7588_v5, %s9206_s24 }
 0x114   : > { %4184 = vrot.lane.b32.xlu0 %v7593_v12, %s9206_s24  ;;  %6205 = vmatprep.mubr.msk.bf16.mxu1 %vm277_vm0, %v7243_v34 }
 0x115   : > { %6130 = vmatpush3.bf16.msra.mxu0 %v7162_v16  ;;  %v7618_v11 = vpop.permute.xlu1 %2460  ;;  %v7622_v9 = vpop.permute.xlu0 %1822  ;;  %v7633_v16 = vld [vmem:[%s7210_s6 + $0x18] sm:$0xff]  }
 0x116   : > { %6198 = vmatpush3.bf16.msra.mxu1 %v7147_v13  ;;  %6131 = vmatprep.subr.bf16.mxu0 %v7172_v18 }
 0x117   : > { %6199 = vmatprep.subr.bf16.mxu1 %v7157_v15  ;;  %4824 = vrot.lane.b32.xlu1 %v7608_v8, %s9206_s24 }
 0x118   : > { %4186 = vrot.lane.b32.xlu0 %v7613_v14, %s9206_s24 }
 0x119   : > { %6132 = vmatpush3.bf16.msra.mxu0 %v7172_v18  ;;  %v7636_v13 = vpop.permute.xlu1 %2462 }
 0x11a   : > { %6200 = vmatpush3.bf16.msra.mxu1 %v7157_v15  ;;  %6133 = vmatprep.subr.bf16.mxu0 %v7182_v20  ;;  %v7640_v22 = vpop.permute.xlu0 %1824 }
 0x11b   : > { %6201 = vmatprep.subr.bf16.mxu1 %v7167_v17  ;;  %4826 = vrot.lane.b32.xlu1 %v7628_v21, %s9206_s24 }
 0x11c   : > { %4188 = vrot.lane.b32.xlu0 %v7633_v16, %s9206_s24 }
 0x11d   : > { %6134 = vmatpush3.bf16.msra.mxu0 %v7182_v20  ;;  %v7654_v18 = vpop.permute.xlu1 %2522 }
 0x11e   : > { %6202 = vmatpush3.bf16.msra.mxu1 %v7167_v17  ;;  %6139 = vmatprep.subr.bf16.mxu0 %v7505_v41  ;;  %v7658_v15 = vpop.permute.xlu0 %1884 }
 0x11f   : > { %6203 = vmatprep.subr.bf16.mxu1 %v7177_v19  ;;  %4828 = vrot.lane.b32.xlu1 %v7646_v23, %s9206_s24 }
 0x120   : > { %4190 = vrot.lane.b32.xlu0 %v7651_v25, %s9206_s24  ;;  %6136 = vmatmul.mubr.msk.bf16.vlgmr.msra.gmra.mrb[4].mxu0 %vm277_vm0, %v7300_v43 }
 0x121   : > { %6140 = vmatpush3.bf16.msra.mxu0 %v7505_v41  ;;  %v7668_v20 = vpop.permute.xlu1 %2524  ;;  %6149 = vmatprep.mubr.msk.bf16.mxu0 %vm277_vm0, %v7307_v45 }
 0x122   : > { %6204 = vmatpush3.bf16.msra.mxu1 %v7177_v19  ;;  %6141 = vmatprep.subr.bf16.mxu0 %v7519_v44  ;;  %v7674_v17 = vpop.permute.xlu0 %1886 }
 0x123   : > { %6209 = vmatprep.subr.bf16.mxu1 %v7502_v40  ;;  %4938 = vrot.lane.b32.xlu1 %v7566_v61, %s6899_s28 }
 0x124   : > { %4300 = vrot.lane.b32.xlu0 %v7573_v62, %s6899_s28 }
 0x125   : > { %6206 = vmatmul.mubr.msk.bf16.vlgmr.msra.gmra.mrb[4].mxu1 %vm277_vm0, %v7300_v43  ;;  %6142 = vmatpush3.bf16.msra.mxu0 %v7519_v44  ;;  %v7684_v26 = vpop.permute.xlu1 %2526 }
 0x126   : > { %6210 = vmatpush3.bf16.msra.mxu1 %v7502_v40  ;;  %6143 = vmatprep.subr.bf16.mxu0 %v7531_v49  ;;  %v7688_v19 = vpop.permute.xlu0 %1888 }
 0x127   : > { %6211 = vmatprep.subr.bf16.mxu1 %v7514_v42  ;;  %4940 = vrot.lane.b32.xlu1 %v7588_v5, %s6899_s28 }
 0x128   : > { %4302 = vrot.lane.b32.xlu0 %v7593_v12, %s6899_s28  ;;  %6219 = vmatprep.mubr.msk.bf16.mxu1 %vm277_vm0, %v7307_v45 }
 0x129   : > { %6144 = vmatpush3.bf16.msra.mxu0 %v7531_v49  ;;  %v7698_v28 = vpop.permute.xlu1 %2528 }
 0x12a   : > { %6212 = vmatpush3.bf16.msra.mxu1 %v7514_v42  ;;  %6145 = vmatprep.subr.bf16.mxu0 %v7543_v53  ;;  %v7702_v29 = vpop.permute.xlu0 %1890 }
 0x12b   : > { %6213 = vmatprep.subr.bf16.mxu1 %v7528_v46  ;;  %4942 = vrot.lane.b32.xlu1 %v7608_v8, %s6899_s28 }
 0x12c   : > { %4304 = vrot.lane.b32.xlu0 %v7613_v14, %s6899_s28 }
 0x12d   : > { %6146 = vmatpush3.bf16.msra.mxu0 %v7543_v53  ;;  %v7710_v30 = vpop.permute.xlu1 %2530 }
 0x12e   : > { %6214 = vmatpush3.bf16.msra.mxu1 %v7528_v46  ;;  %6147 = vmatprep.subr.bf16.mxu0 %v7551_v10  ;;  %v7714_v32 = vpop.permute.xlu0 %1892 }
 0x12f   : > { %6215 = vmatprep.subr.bf16.mxu1 %v7540_v50  ;;  %4944 = vrot.lane.b32.xlu1 %v7628_v21, %s6899_s28 }
 0x130   : > { %4306 = vrot.lane.b32.xlu0 %v7633_v16, %s6899_s28 }
 0x131   : > { %6148 = vmatpush3.bf16.msra.mxu0 %v7551_v10  ;;  %v7722_v33 = vpop.permute.xlu1 %3544 }
 0x132   : > { %6216 = vmatpush3.bf16.msra.mxu1 %v7540_v50  ;;  %6153 = vmatprep.subr.bf16.mxu0 %v7560_v58  ;;  %v7726_v35 = vpop.permute.xlu0 %2906 }
 0x133   : > { %6217 = vmatprep.subr.bf16.mxu1 %v7549_v54  ;;  %4946 = vrot.lane.b32.xlu1 %v7646_v23, %s6899_s28 }
 0x134   : > { %4308 = vrot.lane.b32.xlu0 %v7651_v25, %s6899_s28  ;;  %6150 = vmatmul.mubr.msk.bf16.vlgmr.msra.gmra.mrb[4].mxu0 %vm277_vm0, %v7388_v1  ;;  %s8214_s28 = sshll.u32 %s175_s5, 8 }
 0x135   : > { %6154 = vmatpush3.bf16.msra.mxu0 %v7560_v58  ;;  %v7736_v36 = vpop.permute.xlu1 %3546  ;;  %6163 = vmatprep.mubr.msk.bf16.mxu0 %vm277_vm0, %v7395_v3 }
 0x136   : > { %6218 = vmatpush3.bf16.msra.mxu1 %v7549_v54  ;;  %6155 = vmatprep.subr.bf16.mxu0 %v7582_v4  ;;  %v7742_v37 = vpop.permute.xlu0 %2908 }
 0x137   : > { %6223 = vmatprep.subr.bf16.mxu1 %v7557_v57  ;;  %5006 = vrot.lane.b32.xlu1 %v7566_v61, %s6900_s27 }
 0x138   : > { %4368 = vrot.lane.b32.xlu0 %v7573_v62, %s6900_s27 }
 0x139   : > { %6220 = vmatmul.mubr.msk.bf16.vlgmr.msra.gmra.mrb[4].mxu1 %vm277_vm0, %v7388_v1  ;;  %6156 = vmatpush3.bf16.msra.mxu0 %v7582_v4  ;;  %v7752_v38 = vpop.permute.xlu1 %3548 }
 0x13a   : > { %6224 = vmatpush3.bf16.msra.mxu1 %v7557_v57  ;;  %6157 = vmatprep.subr.bf16.mxu0 %v7602_v7  ;;  %v7756_v40 = vpop.permute.xlu0 %2910 }
 0x13b   : > { %6225 = vmatprep.subr.bf16.mxu1 %v7576_v2  ;;  %5008 = vrot.lane.b32.xlu1 %v7588_v5, %s6900_s27 }
 0x13c   : > { %4370 = vrot.lane.b32.xlu0 %v7593_v12, %s6900_s27  ;;  %6233 = vmatprep.mubr.msk.bf16.mxu1 %vm277_vm0, %v7395_v3 }
 0x13d   : > { %6158 = vmatpush3.bf16.msra.mxu0 %v7602_v7  ;;  %v7766_v41 = vpop.permute.xlu1 %3550 }
 0x13e   : > { %6226 = vmatpush3.bf16.msra.mxu1 %v7576_v2  ;;  %6159 = vmatprep.subr.bf16.mxu0 %v7622_v9  ;;  %v7770_v42 = vpop.permute.xlu0 %2912 }
 0x13f   : > { %6227 = vmatprep.subr.bf16.mxu1 %v7598_v6  ;;  %5010 = vrot.lane.b32.xlu1 %v7608_v8, %s6900_s27 }
 0x140   : > { %4372 = vrot.lane.b32.xlu0 %v7613_v14, %s6900_s27 }
 0x141   : > { %6160 = vmatpush3.bf16.msra.mxu0 %v7622_v9  ;;  %v7778_v44 = vpop.permute.xlu1 %3552  ;;  %v210_v9 = vld [vmem:[%s9197_s2 + $0x8] sm:$0xff] }
 0x142   : > { %6228 = vmatpush3.bf16.msra.mxu1 %v7598_v6  ;;  %6161 = vmatprep.subr.bf16.mxu0 %v7640_v22  ;;  %v7782_v46 = vpop.permute.xlu0 %2914 }
 0x143   : > { %6229 = vmatprep.subr.bf16.mxu1 %v7618_v11  ;;  %5012 = vrot.lane.b32.xlu1 %v7628_v21, %s6900_s27 }
 0x144   : > { %4374 = vrot.lane.b32.xlu0 %v7633_v16, %s6900_s27 }
 0x145   : > { %6162 = vmatpush3.bf16.msra.mxu0 %v7640_v22  ;;  %v7790_v49 = vpop.permute.xlu1 %3662 }
 0x146   : > { %6230 = vmatpush3.bf16.msra.mxu1 %v7618_v11  ;;  %6167 = vmatprep.subr.bf16.mxu0 %v7658_v15  ;;  %v7794_v50 = vpop.permute.xlu0 %3024 }
 0x147   : > { %6231 = vmatprep.subr.bf16.mxu1 %v7636_v13  ;;  %5014 = vrot.lane.b32.xlu1 %v7646_v23, %s6900_s27 }
 0x148   : > { %4376 = vrot.lane.b32.xlu0 %v7651_v25, %s6900_s27  ;;  %6164 = vmatmul.mubr.msk.bf16.vlgmr.msra.gmra.mrb[4].mxu0 %vm277_vm0, %v7446_v24  ;;  %s8256_s27 = scalar_lea.vmem [#allocation2], %s8214_s28  ;;  %s6808_s28 = scalar_lea.vmem %s6807_s20, 8192 }
 0x149   : > { %6168 = vmatpush3.bf16.msra.mxu0 %v7658_v15  ;;  %v7804_v53 = vpop.permute.xlu1 %3664  ;;  %6177 = vmatprep.mubr.msk.bf16.mxu0 %vm277_vm0, %v7453_v27 }
 0x14a   : > { %6232 = vmatpush3.bf16.msra.mxu1 %v7636_v13  ;;  %6169 = vmatprep.subr.bf16.mxu0 %v7674_v17  ;;  %v7810_v54 = vpop.permute.xlu0 %3026  ;;  %v209_v13 = vld [vmem:[%s9197_s2] sm:$0xff] }
 0x14b   : > { %6237 = vmatprep.subr.bf16.mxu1 %v7654_v18  ;;  %5074 = vrot.lane.b32.xlu1 %v7566_v61, %s9205_s7 }
 0x14c   : > { %4436 = vrot.lane.b32.xlu0 %v7573_v62, %s9205_s7 }
 0x14d   : > { %6234 = vmatmul.mubr.msk.bf16.vlgmr.msra.gmra.mrb[4].mxu1 %vm277_vm0, %v7446_v24  ;;  %6170 = vmatpush3.bf16.msra.mxu0 %v7674_v17  ;;  %v7820_v10 = vpop.permute.xlu1 %3666  ;;  %v212_v17 = vld [vmem:[%s9197_s2 + $0x18] sm:$0xff] }
 0x14e   : > { %6238 = vmatpush3.bf16.msra.mxu1 %v7654_v18  ;;  %6171 = vmatprep.subr.bf16.mxu0 %v7688_v19  ;;  %v7824_v57 = vpop.permute.xlu0 %3028  ;;  %v7883_v18 = vld [vmem:[%s9196_s1 + $0x10] sm:$0xff]  }
 0x14f   : > { %6239 = vmatprep.subr.bf16.mxu1 %v7668_v20  ;;  %5076 = vrot.lane.b32.xlu1 %v7588_v5, %s9205_s7 }
 0x150   : > { %4438 = vrot.lane.b32.xlu0 %v7593_v12, %s9205_s7  ;;  %6247 = vmatprep.mubr.msk.bf16.mxu1 %vm277_vm0, %v7453_v27 }
 0x151   : > { %6172 = vmatpush3.bf16.msra.mxu0 %v7688_v19  ;;  %v7834_v58 = vpop.permute.xlu1 %3668 }
 0x152   : > { %6240 = vmatpush3.bf16.msra.mxu1 %v7668_v20  ;;  %6173 = vmatprep.subr.bf16.mxu0 %v7702_v29  ;;  %v7838_v2 = vpop.permute.xlu0 %3030  ;;  %v211_v20 = vld [vmem:[%s9197_s2 + $0x10] sm:$0xff] }
 0x153   : > { %6241 = vmatprep.subr.bf16.mxu1 %v7684_v26  ;;  %5078 = vrot.lane.b32.xlu1 %v7608_v8, %s9205_s7 }
 0x154   : > { %4440 = vrot.lane.b32.xlu0 %v7613_v14, %s9205_s7 }
 0x155   : > { %6174 = vmatpush3.bf16.msra.mxu0 %v7702_v29  ;;  %v7846_v4 = vpop.permute.xlu1 %3670 }
 0x156   : > { %6242 = vmatpush3.bf16.msra.mxu1 %v7684_v26  ;;  %6175 = vmatprep.subr.bf16.mxu0 %v7714_v32  ;;  %v7850_v6 = vpop.permute.xlu0 %3032 }
 0x157   : > { %6243 = vmatprep.subr.bf16.mxu1 %v7698_v28  ;;  %5080 = vrot.lane.b32.xlu1 %v7628_v21, %s9205_s7 }
 0x158   : > { %4442 = vrot.lane.b32.xlu0 %v7633_v16, %s9205_s7 }
 0x159   : > { %6176 = vmatpush3.bf16.msra.mxu0 %v7714_v32  ;;  %v7858_v7 = vpop.permute.xlu1 %3730 }
 0x15a   : > { %6244 = vmatpush3.bf16.msra.mxu1 %v7698_v28  ;;  %6251 = vmatprep.subr.bf16.mxu0 %v7726_v35  ;;  %v7862_v11 = vpop.permute.xlu0 %3092 }
 0x15b   : > { %6245 = vmatprep.subr.bf16.mxu1 %v7710_v30  ;;  %5082 = vrot.lane.b32.xlu1 %v7646_v23, %s9205_s7 }
 0x15c   : > { %6178 = vmatmul.mubr.msk.bf16.vlgmr.msra.gmra.mrb[4].mxu0 %vm277_vm0, %v7500_v39  ;;  %4444 = vrot.lane.b32.xlu0 %v7651_v25, %s9205_s7  ;;  %s5433_s7 = sshll.u32 %s8256_s27, 4  ;;  %s9131_s7 = int_to_ptr.vmem [resolvable:$true] %s5433_s7 }
 0x15d   : > { %6252 = vmatpush3.bf16.msra.mxu0 %v7726_v35  ;;  %v7878_v22 = vpop.permute.xlu1 %3732  ;;  %6261 = vmatprep.mubr.msk.bf16.mxu0 %vm277_vm0, %v7883_v18  ;;  %s6802_s4 = scalar_lea.vmem %s9131_s7, 4096  ;;  %p6809_p2 = scmp.lt.s32.totalorder %s9131_s7, %s6807_s20 }
 0x15e   : > { %6246 = vmatpush3.bf16.msra.mxu1 %v7710_v30  ;;  %6253 = vmatprep.subr.bf16.mxu0 %v7742_v37  ;;  %v7889_v15 = vpop.permute.xlu0 %3094  ;;  %p6803_p13 = scmp.ne.s32.totalorder %s9131_s7, %s6802_s4  ;;  %p6810_p4 = scmp.lt.s32.totalorder %s6808_s28, %s6802_s4 }
 0x15f   : > { %6321 = vmatprep.subr.bf16.mxu1 %v7722_v33  ;;  %662 = vperm.xlu1 %6741, %v210_v9  }
 0x160   : > { %657 = vperm.xlu0 %6740, %v209_v13   ;;  %p6804_p0 = pnand %p6803_p13, %p6979_p3  ;;  %p6811_p5 = por %p6810_p4, %p6809_p2 }
 0x161   : > { %6248 = vmatmul.mubr.msk.bf16.vlgmr.msra.gmra.mrb[4].mxu1 %vm277_vm0, %v7500_v39  ;;  %6254 = vmatpush3.bf16.msra.mxu0 %v7742_v37  ;;  %v7901_v26 = vpop.permute.xlu1 %3734 }
 0x162   : > { %6322 = vmatpush3.bf16.msra.mxu1 %v7722_v33  ;;  %6255 = vmatprep.subr.bf16.mxu0 %v7756_v40  ;;  %v7905_v19 = vpop.permute.xlu0 %3096  ;;  %p6805_p1 = pneg %p6804_p0 }
 0x163   : > { %6323 = vmatprep.subr.bf16.mxu1 %v7736_v36  ;;  %667 = vperm.xlu1 %6741, %v211_v20  }
 0x164   : > { %672 = vperm.xlu0 %6740, %v212_v17   ;;  %6331 = vmatprep.mubr.msk.bf16.mxu1 %vm277_vm0, %v7883_v18  ;;  %p6812_p6 = pnand %p6811_p5, %p6805_p1 }
 0x165   : > { %6256 = vmatpush3.bf16.msra.mxu0 %v7756_v40  ;;  %v7911_v28 = vpop.permute.xlu1 %3736 }
 0x166   : > { %6324 = vmatpush3.bf16.msra.mxu1 %v7736_v36  ;;  %6257 = vmatprep.subr.bf16.mxu0 %v7770_v42  ;;  %v7915_v29 = vpop.permute.xlu0 %3098 }
 0x167   : > { %6325 = vmatprep.subr.bf16.mxu1 %v7752_v38 }
 0x169   : > { %6258 = vmatpush3.bf16.msra.mxu0 %v7770_v42  ;;  %v7919_v30 = vpop.permute.xlu1 %3738 }
 0x16a   : > { %6326 = vmatpush3.bf16.msra.mxu1 %v7752_v38  ;;  %6259 = vmatprep.subr.bf16.mxu0 %v7782_v46  ;;  %v7923_v32 = vpop.permute.xlu0 %3100 }
 0x16b   : > { %6327 = vmatprep.subr.bf16.mxu1 %v7766_v41 }
 0x16d   : > { %6260 = vmatpush3.bf16.msra.mxu0 %v7782_v46  ;;  %v7927_v33 = vpop.permute.xlu1 %3798 }
 0x16e   : > { %6328 = vmatpush3.bf16.msra.mxu1 %v7766_v41  ;;  %6265 = vmatprep.subr.bf16.mxu0 %v7321_v48  ;;  %v7931_v35 = vpop.permute.xlu0 %3160 }
 0x16f   : > { %6329 = vmatprep.subr.bf16.mxu1 %v7778_v44 }
 0x170   : > { %6262 = vmatmul.mubr.msk.bf16.vlgmr.msra.gmra.mrb[8].mxu0 %vm277_vm0, %v7233_v31 }
 0x171   : > { %6266 = vmatpush3.bf16.msra.mxu0 %v7321_v48  ;;  %v7937_v36 = vpop.permute.xlu1 %3800  ;;  %6275 = vmatprep.mubr.msk.bf16.mxu0 %vm277_vm0, %v7243_v34 }
 0x172   : > { %6330 = vmatpush3.bf16.msra.mxu1 %v7778_v44  ;;  %6267 = vmatprep.subr.bf16.mxu0 %v7337_v52  ;;  %v7943_v37 = vpop.permute.xlu0 %3162 }
 0x173   : > { %6335 = vmatprep.subr.bf16.mxu1 %v7314_v47 }
 0x175   : > { %6268 = vmatpush3.bf16.msra.mxu0 %v7337_v52  ;;  %6332 = vmatmul.mubr.msk.bf16.vlgmr.msra.gmra.mrb[8].mxu1 %vm277_vm0, %v7233_v31  ;;  %v7949_v38 = vpop.permute.xlu1 %3802 }
 0x176   : > { %6336 = vmatpush3.bf16.msra.mxu1 %v7314_v47  ;;  %6269 = vmatprep.subr.bf16.mxu0 %v7353_v56  ;;  %v7953_v48 = vpop.permute.xlu0 %3164 }
 0x177   : > { %6337 = vmatprep.subr.bf16.mxu1 %v7332_v51  ;;  %6345 = vmatprep.mubr.msk.bf16.mxu1 %vm277_vm0, %v7243_v34 }
 0x179   : > { %6270 = vmatpush3.bf16.msra.mxu0 %v7353_v56  ;;  %v7959_v40 = vpop.permute.xlu1 %3804 }
 0x17a   : > { %6338 = vmatpush3.bf16.msra.mxu1 %v7332_v51  ;;  %6271 = vmatprep.subr.bf16.mxu0 %v7369_v60  ;;  %v7963_v31 = vpop.permute.xlu0 %3166 }
 0x17b   : > { %6339 = vmatprep.subr.bf16.mxu1 %v7348_v55 }
 0x17d   : > { %6272 = vmatpush3.bf16.msra.mxu0 %v7369_v60  ;;  %v7967_v47 = vpop.permute.xlu1 %3806 }
 0x17e   : > { %6340 = vmatpush3.bf16.msra.mxu1 %v7348_v55  ;;  %6273 = vmatprep.subr.bf16.mxu0 %v7383_v0  ;;  %v7971_v34 = vpop.permute.xlu0 %3168 }
 0x17f   : > { %6341 = vmatprep.subr.bf16.mxu1 %v7364_v59 }
 0x181   : > { %6274 = vmatpush3.bf16.msra.mxu0 %v7383_v0  ;;  %v7975_v51 = vpop.permute.xlu1 %4820 }
 0x182   : > { %6342 = vmatpush3.bf16.msra.mxu1 %v7364_v59  ;;  %6279 = vmatprep.subr.bf16.mxu0 %v7794_v50  ;;  %v7979_v52 = vpop.permute.xlu0 %4182 }
 0x183   : > { %6343 = vmatprep.subr.bf16.mxu1 %v7378_v63 }
 0x184   : > { %6276 = vmatmul.mubr.msk.bf16.vlgmr.msra.gmra.mrb[8].mxu0 %vm277_vm0, %v7300_v43 }
 0x185   : > { %6280 = vmatpush3.bf16.msra.mxu0 %v7794_v50  ;;  %v7985_v55 = vpop.permute.xlu1 %4822  ;;  %6289 = vmatprep.mubr.msk.bf16.mxu0 %vm277_vm0, %v7307_v45 }
 0x186   : > { %6344 = vmatpush3.bf16.msra.mxu1 %v7378_v63  ;;  %6281 = vmatprep.subr.bf16.mxu0 %v7810_v54  ;;  %v7991_v56 = vpop.permute.xlu0 %4184 }
 0x187   : > { %6349 = vmatprep.subr.bf16.mxu1 %v7790_v49 }
 0x189   : > { %6282 = vmatpush3.bf16.msra.mxu0 %v7810_v54  ;;  %6346 = vmatmul.mubr.msk.bf16.vlgmr.msra.gmra.mrb[8].mxu1 %vm277_vm0, %v7300_v43  ;;  %v7997_v59 = vpop.permute.xlu1 %4824 }
 0x18a   : > { %6350 = vmatpush3.bf16.msra.mxu1 %v7790_v49  ;;  %6283 = vmatprep.subr.bf16.mxu0 %v7824_v57  ;;  %v8001_v60 = vpop.permute.xlu0 %4186 }
 0x18b   : > { %6351 = vmatprep.subr.bf16.mxu1 %v7804_v53  ;;  %6359 = vmatprep.mubr.msk.bf16.mxu1 %vm277_vm0, %v7307_v45 }
 0x18d   : > { %6284 = vmatpush3.bf16.msra.mxu0 %v7824_v57  ;;  %v8007_v63 = vpop.permute.xlu1 %4826 }
 0x18e   : > { %6352 = vmatpush3.bf16.msra.mxu1 %v7804_v53  ;;  %6285 = vmatprep.subr.bf16.mxu0 %v7838_v2  ;;  %v8011_v43 = vpop.permute.xlu0 %4188 }
 0x18f   : > { %6353 = vmatprep.subr.bf16.mxu1 %v7820_v10 }
 0x191   : > { %6286 = vmatpush3.bf16.msra.mxu0 %v7838_v2  ;;  %v8015_v0 = vpop.permute.xlu1 %4828 }
 0x192   : > { %6354 = vmatpush3.bf16.msra.mxu1 %v7820_v10  ;;  %6287 = vmatprep.subr.bf16.mxu0 %v7850_v6  ;;  %v8019_v45 = vpop.permute.xlu0 %4190 }
 0x193   : > { %6355 = vmatprep.subr.bf16.mxu1 %v7834_v58 }
 0x195   : > { %6288 = vmatpush3.bf16.msra.mxu0 %v7850_v6  ;;  %v8023_v41 = vpop.permute.xlu1 %4938 }
 0x196   : > { %6356 = vmatpush3.bf16.msra.mxu1 %v7834_v58  ;;  %6293 = vmatprep.subr.bf16.mxu0 %v7862_v11  ;;  %v8027_v42 = vpop.permute.xlu0 %4300 }
 0x197   : > { %6357 = vmatprep.subr.bf16.mxu1 %v7846_v4 }
 0x198   : > { %6290 = vmatmul.mubr.msk.bf16.vlgmr.msra.gmra.mrb[8].mxu0 %vm277_vm0, %v7388_v1 }
 0x199   : > { %6294 = vmatpush3.bf16.msra.mxu0 %v7862_v11  ;;  %v8033_v44 = vpop.permute.xlu1 %4940  ;;  %6303 = vmatprep.mubr.msk.bf16.mxu0 %vm277_vm0, %v7395_v3 }
 0x19a   : > { %6358 = vmatpush3.bf16.msra.mxu1 %v7846_v4  ;;  %6295 = vmatprep.subr.bf16.mxu0 %v7889_v15  ;;  %v8039_v46 = vpop.permute.xlu0 %4302 }
 0x19b   : > { %6363 = vmatprep.subr.bf16.mxu1 %v7858_v7 }
 0x19d   : > { %6296 = vmatpush3.bf16.msra.mxu0 %v7889_v15  ;;  %6360 = vmatmul.mubr.msk.bf16.vlgmr.msra.gmra.mrb[8].mxu1 %vm277_vm0, %v7388_v1  ;;  %v8045_v49 = vpop.permute.xlu1 %4942 }
 0x19e   : > { %6364 = vmatpush3.bf16.msra.mxu1 %v7858_v7  ;;  %6297 = vmatprep.subr.bf16.mxu0 %v7905_v19  ;;  %v8049_v50 = vpop.permute.xlu0 %4304 }
 0x19f   : > { %6365 = vmatprep.subr.bf16.mxu1 %v7878_v22  ;;  %6373 = vmatprep.mubr.msk.bf16.mxu1 %vm277_vm0, %v7395_v3 }
 0x1a1   : > { %6298 = vmatpush3.bf16.msra.mxu0 %v7905_v19  ;;  %v8055_v53 = vpop.permute.xlu1 %4944 }
 0x1a2   : > { %6366 = vmatpush3.bf16.msra.mxu1 %v7878_v22  ;;  %6299 = vmatprep.subr.bf16.mxu0 %v7915_v29  ;;  %v8059_v1 = vpop.permute.xlu0 %4306 }
 0x1a3   : > { %6367 = vmatprep.subr.bf16.mxu1 %v7901_v26 }
 0x1a5   : > { %6300 = vmatpush3.bf16.msra.mxu0 %v7915_v29  ;;  %v8063_v54 = vpop.permute.xlu1 %4946 }
 0x1a6   : > { %6368 = vmatpush3.bf16.msra.mxu1 %v7901_v26  ;;  %6301 = vmatprep.subr.bf16.mxu0 %v7923_v32  ;;  %v8067_v3 = vpop.permute.xlu0 %4308 }
 0x1a7   : > { %6369 = vmatprep.subr.bf16.mxu1 %v7911_v28 }
 0x1a9   : > { %6302 = vmatpush3.bf16.msra.mxu0 %v7923_v32  ;;  %v8071_v10 = vpop.permute.xlu1 %5006 }
 0x1aa   : > { %6370 = vmatpush3.bf16.msra.mxu1 %v7911_v28  ;;  %6307 = vmatprep.subr.bf16.mxu0 %v7931_v35  ;;  %v8075_v57 = vpop.permute.xlu0 %4368 }
 0x1ab   : > { %6371 = vmatprep.subr.bf16.mxu1 %v7919_v30 }
 0x1ac   : > { %6304 = vmatmul.mubr.msk.bf16.vlgmr.msra.gmra.mrb[8].mxu0 %vm277_vm0, %v7446_v24 }
 0x1ad   : > { %6308 = vmatpush3.bf16.msra.mxu0 %v7931_v35  ;;  %v8081_v58 = vpop.permute.xlu1 %5008  ;;  %6317 = vmatprep.mubr.msk.bf16.mxu0 %vm277_vm0, %v7453_v27 }
 0x1ae   : > { %6372 = vmatpush3.bf16.msra.mxu1 %v7919_v30  ;;  %6309 = vmatprep.subr.bf16.mxu0 %v7943_v37  ;;  %v8087_v2 = vpop.permute.xlu0 %4370 }
 0x1af   : > { %6377 = vmatprep.subr.bf16.mxu1 %v7927_v33 }
 0x1b1   : > { %6310 = vmatpush3.bf16.msra.mxu0 %v7943_v37  ;;  %6374 = vmatmul.mubr.msk.bf16.vlgmr.msra.gmra.mrb[8].mxu1 %vm277_vm0, %v7446_v24  ;;  %v8093_v4 = vpop.permute.xlu1 %5010  ;;  %v6794_v37 = vld [vmem:[%s9196_s1] sm:$0xff]  }
 0x1b2   : > { %6378 = vmatpush3.bf16.msra.mxu1 %v7927_v33  ;;  %6311 = vmatprep.subr.bf16.mxu0 %v7953_v48  ;;  %v8097_v6 = vpop.permute.xlu0 %4372 }
 0x1b3   : > { %6379 = vmatprep.subr.bf16.mxu1 %v7937_v36  ;;  %6387 = vmatprep.mubr.msk.bf16.mxu1 %vm277_vm0, %v7453_v27 }
 0x1b5   : > { %6312 = vmatpush3.bf16.msra.mxu0 %v7953_v48  ;;  %v8103_v7 = vpop.permute.xlu1 %5012 }
 0x1b6   : > { %6380 = vmatpush3.bf16.msra.mxu1 %v7937_v36  ;;  %6313 = vmatprep.subr.bf16.mxu0 %v7963_v31  ;;  %v8107_v24 = vpop.permute.xlu0 %4374  ;;  %v6793_v36 = vld [vmem:[%s9196_s1 + $0x18] sm:$0xff]  }
 0x1b7   : > { %6381 = vmatprep.subr.bf16.mxu1 %v7949_v38 }
 0x1b9   : > { %6314 = vmatpush3.bf16.msra.mxu0 %v7963_v31  ;;  %v8113_v11 = vpop.permute.xlu1 %5014  ;;  %v695_v31 = vlaneseq }
 0x1ba   : > { %6382 = vmatpush3.bf16.msra.mxu1 %v7949_v38  ;;  %6315 = vmatprep.subr.bf16.mxu0 %v7971_v34  ;;  %v8116_v27 = vpop.permute.xlu0 %4376 }
 0x1bb   : > { %6383 = vmatprep.subr.bf16.mxu1 %v7959_v40 }
 0x1bd   : > { %6316 = vmatpush3.bf16.msra.mxu0 %v7971_v34  ;;  %v8124_v9 = vpop.permute.xlu1 %5074 }
 0x1be   : > { %6384 = vmatpush3.bf16.msra.mxu1 %v7959_v40  ;;  %6391 = vmatprep.subr.bf16.mxu0 %v7979_v52  ;;  %v8127_v13 = vpop.permute.xlu0 %4436 }
 0x1bf   : > { %6385 = vmatprep.subr.bf16.mxu1 %v7967_v47 }
 0x1c0   : > { %6318 = vmatmul.mubr.msk.bf16.vlgmr.msra.gmra.mrb[8].mxu0 %vm277_vm0, %v7500_v39 }
 0x1c1   : > { %6392 = vmatpush3.bf16.msra.mxu0 %v7979_v52  ;;  %6401 = vmatprep.mubr.msk.bf16.mxu0 %vm277_vm0, %v7883_v18  ;;  %v8139_v22 = vpop.permute.xlu1 %5076 }
 0x1c2   : > { %6386 = vmatpush3.bf16.msra.mxu1 %v7967_v47  ;;  %6393 = vmatprep.subr.bf16.mxu0 %v7991_v56  ;;  %v8142_v15 = vpop.permute.xlu0 %4438 }
 0x1c3   : > { %6461 = vmatprep.subr.bf16.mxu1 %v7975_v51 }
 0x1c5   : > { %6388 = vmatmul.mubr.msk.bf16.vlgmr.msra.gmra.mrb[8].mxu1 %vm277_vm0, %v7500_v39  ;;  %6394 = vmatpush3.bf16.msra.mxu0 %v7991_v56  ;;  %v8152_v17 = vpop.permute.xlu1 %5078 }
 0x1c6   : > { %6462 = vmatpush3.bf16.msra.mxu1 %v7975_v51  ;;  %6395 = vmatprep.subr.bf16.mxu0 %v8001_v60  ;;  %v8157_v19 = vpop.permute.xlu0 %4440 }
 0x1c7   : > { %6463 = vmatprep.subr.bf16.mxu1 %v7985_v55  ;;  %6471 = vmatprep.mubr.msk.bf16.mxu1 %vm277_vm0, %v7883_v18 }
 0x1c9   : > { %6396 = vmatpush3.bf16.msra.mxu0 %v8001_v60  ;;  %v8165_v32 = vpop.permute.xlu1 %5080 }
 0x1ca   : > { %6464 = vmatpush3.bf16.msra.mxu1 %v7985_v55  ;;  %6397 = vmatprep.subr.bf16.mxu0 %v8011_v43  ;;  %v8168_v35 = vpop.permute.xlu0 %4442 }
 0x1cb   : > { %v8149_v39 = vpop.f32.mrb[0].mxu0  ;;  %6465 = vmatprep.subr.bf16.mxu1 %v7997_v59 }
 0x1cc   : > { %v636_v20 = vpop.f32.mrb[1].mxu0 }
 0x1cd   : > { %v8154_v26 = vpop.f32.mrb[2].mxu0  ;;  %6398 = vmatpush3.bf16.msra.mxu0 %v8011_v43  ;;  %v8182_v38 = vpop.permute.xlu1 %5082 }
 0x1ce   : > { %6466 = vmatpush3.bf16.msra.mxu1 %v7997_v59  ;;  %v639_v18 = vpop.f32.mrb[3].mxu0  ;;  %6399 = vmatprep.subr.bf16.mxu0 %v8019_v45  ;;  %v8186_v48 = vpop.permute.xlu0 %4444 }
 0x1cf   : > { %6467 = vmatprep.subr.bf16.mxu1 %v8007_v63 }
 0x1d0   : > { %v6109_v28 = vpop.f32.mrb[0].mxu1 }
 0x1d1   : > { %v1295_v29 = vpop.f32.mrb[1].mxu1  ;;  %6400 = vmatpush3.bf16.msra.mxu0 %v8019_v45 }
 0x1d2   : > { %v6110_v30 = vpop.f32.mrb[2].mxu1  ;;  %6468 = vmatpush3.bf16.msra.mxu1 %v8007_v63  ;;  %6405 = vmatprep.subr.bf16.mxu0 %v7573_v62 }
 0x1d3   : > { %v1298_v33 = vpop.f32.mrb[3].mxu1  ;;  %6469 = vmatprep.subr.bf16.mxu1 %v8015_v0 }
 0x1d4   : > { %6402 = vmatmul.mubr.msk.bf16.vlgmr.msra.gmra.mrb[12].mxu0 %vm277_vm0, %v6793_v36 }
 0x1d5   : > { %6406 = vmatpush3.bf16.msra.mxu0 %v7573_v62  ;;  %6415 = vmatprep.mubr.msk.bf16.mxu0 %vm277_vm0, %v6794_v37  ;;  %v6903_v62 = vmov 1966171168  }
 0x1d6   : > { %6470 = vmatpush3.bf16.msra.mxu1 %v8015_v0  ;;  %6407 = vmatprep.subr.bf16.mxu0 %v7593_v12  ;;  %v693_v40 = vunpack.c.l.s4 %v6903_v62 }
 0x1d7   : > { %6475 = vmatprep.subr.bf16.mxu1 %v7566_v61 }
 0x1d8   : > { %v694_v47 = vunpack.c.0.s8 %v693_v40 }
 0x1d9   : > { %6408 = vmatpush3.bf16.msra.mxu0 %v7593_v12  ;;  %6472 = vmatmul.mubr.msk.bf16.vlgmr.msra.gmra.mrb[12].mxu1 %vm277_vm0, %v6793_v36  ;;  %v696_v12 = vshrl.u32 %v695_v31, 7 }
 0x1da   : > { %6476 = vmatpush3.bf16.msra.mxu1 %v7566_v61  ;;  %6409 = vmatprep.subr.bf16.mxu0 %v7613_v14 }
 0x1db   : > { %6477 = vmatprep.subr.bf16.mxu1 %v7588_v5  ;;  %6485 = vmatprep.mubr.msk.bf16.mxu1 %vm277_vm0, %v6794_v37  ;;  %v8205_v56 = vsub.s32 %v694_v47, %v696_v12 }
 0x1dd   : > { %6410 = vmatpush3.bf16.msra.mxu0 %v7613_v14 }
 0x1de   : > { %6478 = vmatpush3.bf16.msra.mxu1 %v7588_v5  ;;  %v8194_v34 = vpop.permute.xlu1 %662  ;;  %6411 = vmatprep.subr.bf16.mxu0 %v7633_v16 }
 0x1df   : > { %v676_v51 = vadd.f32 %v8194_v34, %v639_v18  ;;  %v1315_v61 = vadd.f32 %v1298_v33, %v8194_v34  ;;  %6479 = vmatprep.subr.bf16.mxu1 %v7608_v8  ;;  %v8200_v52 = vpop.permute.xlu0 %657 }
 0x1e0   : > { %v675_v14 = vadd.f32 %v8200_v52, %v636_v20  ;;  %v1314_v55 = vadd.f32 %v1295_v29, %v8200_v52 }
 0x1e1   : > { %v680_v5 = vmul.f32 0.2, %v676_v51  ;;  %v1319_v59 = vmul.f32 0.2, %v1315_v61  ;;  %6412 = vmatpush3.bf16.msra.mxu0 %v7633_v16 }
 0x1e2   : > { %v679_v60 = vmul.f32 0.2, %v675_v14  ;;  %v1318_v63 = vmul.f32 0.2, %v1314_v55  ;;  %6480 = vmatpush3.bf16.msra.mxu1 %v7608_v8  ;;  %v8209_v43 = vpop.permute.xlu1 %667  ;;  %6413 = vmatprep.subr.bf16.mxu0 %v7651_v25 }
 0x1e3   : > { %v684_v0 = vmax.f32 %v676_v51, %v680_v5  ;;  %v1323_v45 = vmax.f32 %v1315_v61, %v1319_v59  ;;  %v8218_v20 = vadd.f32 %v8149_v39, %v8209_v43  ;;  %v8221_v16 = vadd.f32 %v6109_v28, %v8209_v43  ;;  %6481 = vmatprep.subr.bf16.mxu1 %v7628_v21  ;;  %v8224_v18 = vpop.permute.xlu0 %672 }
 0x1e4   : > { %v683_v8 = vmax.f32 %v675_v14, %v679_v60  ;;  %v8226_v29 = vmax.f32 %v1314_v55, %v1318_v63  ;;  %v8230_v33 = vadd.f32 %v8154_v26, %v8224_v18  ;;  %v8233_v36 = vadd.f32 %v6110_v30, %v8224_v18 }
 0x1e5   : > { %v740_v37 = vcombine.high %v684_v0, %v684_v0  ;;  %v747_v39 = vrot.slane %v684_v0, %v8205_v56  ;;  %v1379_v62 = vcombine.high %v1323_v45, %v1323_v45  ;;  %v1386_v28 = vrot.slane %v1323_v45, %v8205_v56  ;;  %6414 = vmatpush3.bf16.msra.mxu0 %v7651_v25  ;;  %v6795_v0 = vld [vmem:[%s9196_s1 + $0x8] sm:$0xff]  }
 0x1e6   : > { %v691_v40 = vcombine.high %v683_v8, %v683_v8  ;;  %v698_v31 = vrot.slane %v683_v8, %v8205_v56  ;;  %v1330_v47 = vcombine.high %v8226_v29, %v8226_v29  ;;  %v8243_v26 = vrot.slane %v8226_v29, %v8205_v56  ;;  %6482 = vmatpush3.bf16.msra.mxu1 %v7628_v21 }
 0x1e7   : > { %v754_v30 = vrot.slane %v740_v37, %v8205_v56  ;;  %v755_v12 = vcombine.high %v747_v39, %v747_v39  ;;  %v763_v51 = vrot.slane %v747_v39, %v8205_v56  ;;  %v1393_v25 = vrot.slane %v1379_v62, %v8205_v56  ;;  %6419 = vmatprep.subr.bf16.mxu0 %v8027_v42 }
 0x1e8   : > { %v1394_v61 = vcombine.high %v1386_v28, %v1386_v28  ;;  %v1402_v14 = vrot.slane %v1386_v28, %v8205_v56  ;;  %v705_v55 = vrot.slane %v691_v40, %v8205_v56  ;;  %v706_v5 = vcombine.high %v698_v31, %v698_v31  ;;  %6483 = vmatprep.subr.bf16.mxu1 %v7646_v23 }
 0x1e9   : > { %v756_v59 = vcombine.high %v754_v30, %v754_v30  ;;  %v770_v21 = vrot.slane %v754_v30, %v8205_v56  ;;  %v777_v60 = vrot.slane %v755_v12, %v8205_v56  ;;  %v785_v63 = vcombine.high %v763_v51, %v763_v51  ;;  %928 = vst.msk [vmem:[%s8256_s27 + $0x40] sm:$0x1] %vm919_vm1, %v763_v51 }
 0x1ea   : > { %6416 = vmatmul.mubr.msk.bf16.vlgmr.msra.gmra.mrb[12].mxu0 %vm277_vm0, %v6795_v0  ;;  %v1395_v45 = vcombine.high %v1393_v25, %v1393_v25  ;;  %v1409_v8 = vrot.slane %v1393_v25, %v8205_v56  ;;  %v1416_v29 = vrot.slane %v1394_v61, %v8205_v56  ;;  %v1424_v37 = vcombine.high %v1402_v14, %v1402_v14 }
 0x1eb   : > { %1566 = vst.msk [vmem:[%s8256_s27 + $0x41] sm:$0x1] %vm919_vm1, %v1402_v14  ;;  %6420 = vmatpush3.bf16.msra.mxu0 %v8027_v42  ;;  %v784_v39 = vrot.slane %v756_v59, %v8205_v56  ;;  %v786_v62 = vcombine.high %v770_v21, %v770_v21  ;;  %v787_v28 = vcombine.high %v777_v60, %v777_v60  ;;  %929 = vst.msk [vmem:[%s8256_s27 + $0x48] sm:$0x1] %vm919_vm1, %v777_v60 }
 0x1ec   : > { %930 = vst.msk [vmem:[%s8256_s27 + $0x50] sm:$0x1] %vm919_vm1, %v785_v63  ;;  %932 = vst.msk [vmem:[%s8256_s27 + $0x60] sm:$0x1] %vm919_vm1, %v770_v21  ;;  %v707_v40 = vcombine.high %v705_v55, %v705_v55  ;;  %6484 = vmatpush3.bf16.msra.mxu1 %v7646_v23  ;;  %v1423_v30 = vrot.slane %v1395_v45, %v8205_v56  ;;  %v1425_v12 = vcombine.high %v1409_v8, %v1409_v8 }
 0x1ed   : > { %v1426_v42 = vcombine.high %v1416_v29, %v1416_v29  ;;  %1567 = vst.msk [vmem:[%s8256_s27 + $0x49] sm:$0x1] %vm919_vm1, %v1416_v29  ;;  %1568 = vst.msk [vmem:[%s8256_s27 + $0x51] sm:$0x1] %vm919_vm1, %v1424_v37  ;;  %v714_v51 = vrot.slane %v698_v31, %v8205_v56  ;;  %6421 = vmatprep.subr.bf16.mxu0 %v8039_v46  ;;  %v788_v25 = vcombine.high %v784_v39, %v784_v39 }
 0x1ee   : > { %1570 = vst.msk [vmem:[%s8256_s27 + $0x61] sm:$0x1] %vm919_vm1, %v1409_v8  ;;  %931 = vst.msk [vmem:[%s8256_s27 + $0x58] sm:$0x1] %vm919_vm1, %v787_v28  ;;  %v721_v23 = vrot.slane %v705_v55, %v8205_v56  ;;  %v728_v61 = vrot.slane %v706_v5, %v8205_v56  ;;  %v735_v14 = vrot.slane %v707_v40, %v8205_v56  ;;  %6489 = vmatprep.subr.bf16.mxu1 %v8023_v41 }
 0x1ef   : > { %933 = vst.msk [vmem:[%s8256_s27 + $0x68] sm:$0x1] %vm919_vm1, %v784_v39  ;;  %934 = vst.msk [vmem:[%s8256_s27 + $0x70] sm:$0x1] %vm919_vm1, %v786_v62  ;;  %v1427_v31 = vcombine.high %v1423_v30, %v1423_v30  ;;  %v736_v59 = vcombine.high %v714_v51, %v714_v51  ;;  %v1344_v55 = vrot.slane %v1330_v47, %v8205_v56  ;;  %6422 = vmatpush3.bf16.msra.mxu0 %v8039_v46  ;;  %v6796_v39 = vld [vmem:[%s9196_s1 + $0x20] sm:$0xff]  }
 0x1f0   : > { %1569 = vst.msk [vmem:[%s8256_s27 + $0x59] sm:$0x1] %vm919_vm1, %v1426_v42  ;;  %1571 = vst.msk [vmem:[%s8256_s27 + $0x69] sm:$0x1] %vm919_vm1, %v1423_v30  ;;  %v1345_v5 = vcombine.high %v8243_v26, %v8243_v26  ;;  %v737_v21 = vcombine.high %v721_v23, %v721_v23  ;;  %v738_v60 = vcombine.high %v728_v61, %v728_v61  ;;  %6486 = vmatmul.mubr.msk.bf16.vlgmr.msra.gmra.mrb[12].mxu1 %vm277_vm0, %v6795_v0 }
 0x1f1   : > { %1572 = vst.msk [vmem:[%s8256_s27 + $0x71] sm:$0x1] %vm919_vm1, %v1425_v12  ;;  %920 = vst.msk [vmem:[%s8256_s27] sm:$0x1] %vm919_vm1, %v714_v51  ;;  %v739_v63 = vcombine.high %v735_v14, %v735_v14  ;;  %v1353_v47 = vrot.slane %v8243_v26, %v8205_v56  ;;  %v1346_v46 = vcombine.high %v1344_v55, %v1344_v55  ;;  %v681_v29 = vmul.f32 0.2, %v8218_v20 }
 0x1f2   : > { %935 = vst.msk [vmem:[%s8256_s27 + $0x78] sm:$0x1] %vm919_vm1, %v788_v25  ;;  %921 = vst.msk [vmem:[%s8256_s27 + $0x8] sm:$0x1] %vm919_vm1, %v728_v61  ;;  %v1360_v45 = vrot.slane %v1344_v55, %v8205_v56  ;;  %v1367_v8 = vrot.slane %v1345_v5, %v8205_v56  ;;  %6490 = vmatpush3.bf16.msra.mxu1 %v8023_v41  ;;  %6423 = vmatprep.subr.bf16.mxu0 %v8049_v50  ;;  %v1320_v0 = vmul.f32 0.2, %v8221_v16 }
 0x1f3   : > { %924 = vst.msk [vmem:[%s8256_s27 + $0x20] sm:$0x1] %vm919_vm1, %v721_v23  ;;  %925 = vst.msk [vmem:[%s8256_s27 + $0x28] sm:$0x1] %vm919_vm1, %v735_v14  ;;  %v1375_v26 = vcombine.high %v1353_v47, %v1353_v47  ;;  %v682_v37 = vmul.f32 0.2, %v8230_v33  ;;  %6491 = vmatprep.subr.bf16.mxu1 %v8033_v44  ;;  %6429 = vmatprep.mubr.msk.bf16.mxu0 %vm277_vm0, %v6796_v39  ;;  %v1374_v62 = vrot.slane %v1346_v46, %v8205_v56 }
 0x1f4   : > { %1573 = vst.msk [vmem:[%s8256_s27 + $0x79] sm:$0x1] %vm919_vm1, %v1427_v31  ;;  %922 = vst.msk [vmem:[%s8256_s27 + $0x10] sm:$0x1] %vm919_vm1, %v736_v59  ;;  %v1321_v41 = vmul.f32 0.2, %v8233_v36  ;;  %v1376_v28 = vcombine.high %v1360_v45, %v1360_v45  ;;  %v1377_v40 = vcombine.high %v1367_v8, %v1367_v8  ;;  %v685_v30 = vmax.f32 %v8218_v20, %v681_v29 }
 0x1f5   : > { %923 = vst.msk [vmem:[%s8256_s27 + $0x18] sm:$0x1] %vm919_vm1, %v738_v60  ;;  %926 = vst.msk [vmem:[%s8256_s27 + $0x30] sm:$0x1] %vm919_vm1, %v737_v21  ;;  %6424 = vmatpush3.bf16.msra.mxu0 %v8049_v50  ;;  %v1324_v12 = vmax.f32 %v8221_v16, %v1320_v0  ;;  %v686_v42 = vmax.f32 %v8230_v33, %v682_v37  ;;  %6499 = vmatprep.mubr.msk.bf16.mxu1 %vm277_vm0, %v6796_v39 }
 0x1f6   : > { %927 = vst.msk [vmem:[%s8256_s27 + $0x38] sm:$0x1] %vm919_vm1, %v739_v63  ;;  %1558 = vst.msk [vmem:[%s8256_s27 + $0x1] sm:$0x1] %vm919_vm1, %v1353_v47  ;;  %v8356_v51 = vmax.f32 %v8233_v36, %v1321_v41  ;;  %6425 = vmatprep.subr.bf16.mxu0 %v8059_v1  ;;  %v1378_v25 = vcombine.high %v1374_v62, %v1374_v62  ;;  %v789_v50 = vcombine.high %v685_v30, %v685_v30 }
 0x1f7   : > { %1559 = vst.msk [vmem:[%s8256_s27 + $0x9] sm:$0x1] %vm919_vm1, %v1367_v8  ;;  %1562 = vst.msk [vmem:[%s8256_s27 + $0x21] sm:$0x1] %vm919_vm1, %v1360_v45  ;;  %v796_v20 = vrot.slane %v685_v30, %v8205_v56  ;;  %6492 = vmatpush3.bf16.msra.mxu1 %v8033_v44  ;;  %v1428_v16 = vcombine.high %v1324_v12, %v1324_v12  ;;  %v1435_v33 = vrot.slane %v1324_v12, %v8205_v56 }
 0x1f8   : > { %1560 = vst.msk [vmem:[%s8256_s27 + $0x11] sm:$0x1] %vm919_vm1, %v1375_v26  ;;  %1561 = vst.msk [vmem:[%s8256_s27 + $0x19] sm:$0x1] %vm919_vm1, %v1377_v40  ;;  %v838_v36 = vcombine.high %v686_v42, %v686_v42  ;;  %v845_v23 = vrot.slane %v686_v42, %v8205_v56  ;;  %6493 = vmatprep.subr.bf16.mxu1 %v8045_v49  ;;  %v803_v61 = vrot.slane %v789_v50, %v8205_v56 }
 0x1f9   : > { %1563 = vst.msk [vmem:[%s8256_s27 + $0x29] sm:$0x1] %vm919_vm1, %v1374_v62  ;;  %1564 = vst.msk [vmem:[%s8256_s27 + $0x31] sm:$0x1] %vm919_vm1, %v1376_v28  ;;  %v804_v14 = vcombine.high %v796_v20, %v796_v20  ;;  %v812_v31 = vrot.slane %v796_v20, %v8205_v56  ;;  %v1477_v59 = vcombine.high %v8356_v51, %v8356_v51  ;;  %6426 = vmatpush3.bf16.msra.mxu0 %v8059_v1 }
 0x1fa   : > { %1565 = vst.msk [vmem:[%s8256_s27 + $0x39] sm:$0x1] %vm919_vm1, %v1378_v25  ;;  %v1442_v44 = vrot.slane %v1428_v16, %v8205_v56  ;;  %v1443_v55 = vcombine.high %v1435_v33, %v1435_v33  ;;  %v1451_v5 = vrot.slane %v1435_v33, %v8205_v56  ;;  %v852_v21 = vrot.slane %v838_v36, %v8205_v56 }
 0x1fb   : > { %6427 = vmatprep.subr.bf16.mxu0 %v8067_v3  ;;  %v805_v60 = vcombine.high %v803_v61, %v803_v61  ;;  %v819_v63 = vrot.slane %v803_v61, %v8205_v56  ;;  %v826_v47 = vrot.slane %v804_v14, %v8205_v56  ;;  %v834_v46 = vcombine.high %v812_v31, %v812_v31 }
 0x1fc   : > { %936 = vst.msk [vmem:[%s8256_s27 + $0x80] sm:$0x1] %vm919_vm1, %v812_v31  ;;  %6494 = vmatpush3.bf16.msra.mxu1 %v8045_v49  ;;  %v1444_v1 = vcombine.high %v1442_v44, %v1442_v44  ;;  %v1458_v45 = vrot.slane %v1442_v44, %v8205_v56  ;;  %v1465_v8 = vrot.slane %v1443_v55, %v8205_v56  ;;  %1574 = vst.msk [vmem:[%s8256_s27 + $0x81] sm:$0x1] %vm919_vm1, %v1451_v5 }
 0x1fd   : > { %v1473_v29 = vcombine.high %v1451_v5, %v1451_v5  ;;  %6495 = vmatprep.subr.bf16.mxu1 %v8055_v53  ;;  %v833_v26 = vrot.slane %v805_v60, %v8205_v56  ;;  %v835_v0 = vcombine.high %v819_v63, %v819_v63  ;;  %v836_v37 = vcombine.high %v826_v47, %v826_v47 }
 0x1fe   : > { %937 = vst.msk [vmem:[%s8256_s27 + $0x88] sm:$0x1] %vm919_vm1, %v826_v47  ;;  %938 = vst.msk [vmem:[%s8256_s27 + $0x90] sm:$0x1] %vm919_vm1, %v834_v46  ;;  %v853_v49 = vcombine.high %v845_v23, %v845_v23  ;;  %6428 = vmatpush3.bf16.msra.mxu0 %v8067_v3  ;;  %v1472_v41 = vrot.slane %v1444_v1, %v8205_v56  ;;  %v1474_v39 = vcombine.high %v1458_v45, %v1458_v45 }
 0x1ff   : > { %940 = vst.msk [vmem:[%s8256_s27 + $0xa0] sm:$0x1] %vm919_vm1, %v819_v63  ;;  %v1475_v62 = vcombine.high %v1465_v8, %v1465_v8  ;;  %1575 = vst.msk [vmem:[%s8256_s27 + $0x89] sm:$0x1] %vm919_vm1, %v1465_v8  ;;  %v854_v28 = vcombine.high %v852_v21, %v852_v21  ;;  %6433 = vmatprep.subr.bf16.mxu0 %v8075_v57  ;;  %v837_v40 = vcombine.high %v833_v26, %v833_v26 }
 0x200   : > { %1576 = vst.msk [vmem:[%s8256_s27 + $0x91] sm:$0x1] %vm919_vm1, %v1473_v29  ;;  %1578 = vst.msk [vmem:[%s8256_s27 + $0xa1] sm:$0x1] %vm919_vm1, %v1458_v45  ;;  %v861_v3 = vrot.slane %v845_v23, %v8205_v56  ;;  %v868_v30 = vrot.slane %v852_v21, %v8205_v56  ;;  %v875_v12 = vrot.slane %v853_v49, %v8205_v56  ;;  %6496 = vmatpush3.bf16.msra.mxu1 %v8055_v53 }
 0x201   : > { %939 = vst.msk [vmem:[%s8256_s27 + $0x98] sm:$0x1] %vm919_vm1, %v836_v37  ;;  %941 = vst.msk [vmem:[%s8256_s27 + $0xa8] sm:$0x1] %vm919_vm1, %v833_v26  ;;  %v1476_v42 = vcombine.high %v1472_v41, %v1472_v41  ;;  %v882_v25 = vrot.slane %v854_v28, %v8205_v56  ;;  %v1484_v50 = vrot.slane %v8356_v51, %v8205_v56  ;;  %6497 = vmatprep.subr.bf16.mxu1 %v8063_v54  ;;  %v6797_v51 = vld [vmem:[%s9196_s1 + $0x28] sm:$0xff]  }
 0x202   : > { %942 = vst.msk [vmem:[%s8256_s27 + $0xb0] sm:$0x1] %vm919_vm1, %v835_v0  ;;  %1577 = vst.msk [vmem:[%s8256_s27 + $0x99] sm:$0x1] %vm919_vm1, %v1475_v62  ;;  %v1491_v20 = vrot.slane %v1477_v59, %v8205_v56  ;;  %v883_v53 = vcombine.high %v861_v3, %v861_v3  ;;  %v884_v16 = vcombine.high %v868_v30, %v868_v30  ;;  %6430 = vmatmul.mubr.msk.bf16.vlgmr.msra.gmra.mrb[12].mxu0 %vm277_vm0, %v6797_v51 }
 0x203   : > { %1579 = vst.msk [vmem:[%s8256_s27 + $0xa9] sm:$0x1] %vm919_vm1, %v1472_v41  ;;  %1580 = vst.msk [vmem:[%s8256_s27 + $0xb1] sm:$0x1] %vm919_vm1, %v1474_v39  ;;  %v885_v33 = vcombine.high %v875_v12, %v875_v12  ;;  %v886_v36 = vcombine.high %v882_v25, %v882_v25  ;;  %v1492_v23 = vcombine.high %v1484_v50, %v1484_v50  ;;  %6434 = vmatpush3.bf16.msra.mxu0 %v8075_v57 }
 0x204   : > { %943 = vst.msk [vmem:[%s8256_s27 + $0xb8] sm:$0x1] %vm919_vm1, %v837_v40  ;;  %944 = vst.msk [vmem:[%s8256_s27 + $0xc0] sm:$0x1] %vm919_vm1, %v861_v3  ;;  %v1493_v61 = vcombine.high %v1491_v20, %v1491_v20  ;;  %v1500_v14 = vrot.slane %v1484_v50, %v8205_v56  ;;  %v1507_v31 = vrot.slane %v1491_v20, %v8205_v56  ;;  %6498 = vmatpush3.bf16.msra.mxu1 %v8063_v54  ;;  %v6798_v54 = vld [vmem:[%s9196_s1 + $0x30] sm:$0xff]  }
 0x205   : > { %945 = vst.msk [vmem:[%s8256_s27 + $0xc8] sm:$0x1] %vm919_vm1, %v875_v12  ;;  %948 = vst.msk [vmem:[%s8256_s27 + $0xe0] sm:$0x1] %vm919_vm1, %v868_v30  ;;  %6435 = vmatprep.subr.bf16.mxu0 %v8087_v2  ;;  %v1514_v57 = vrot.slane %v1492_v23, %v8205_v56  ;;  %6503 = vmatprep.subr.bf16.mxu1 %v8071_v10 }
 0x206   : > { %1581 = vst.msk [vmem:[%s8256_s27 + $0xb9] sm:$0x1] %vm919_vm1, %v1476_v42  ;;  %949 = vst.msk [vmem:[%s8256_s27 + $0xe8] sm:$0x1] %vm919_vm1, %v882_v25  ;;  %v1521_v59 = vrot.slane %v1493_v61, %v8205_v56  ;;  %v1522_v44 = vcombine.high %v1500_v14, %v1500_v14  ;;  %6443 = vmatprep.mubr.msk.bf16.mxu0 %vm277_vm0, %v6798_v54  ;;  %v1523_v55 = vcombine.high %v1507_v31, %v1507_v31 }
 0x207   : > { %946 = vst.msk [vmem:[%s8256_s27 + $0xd0] sm:$0x1] %vm919_vm1, %v883_v53  ;;  %947 = vst.msk [vmem:[%s8256_s27 + $0xd8] sm:$0x1] %vm919_vm1, %v885_v33  ;;  %v1524_v5 = vcombine.high %v1514_v57, %v1514_v57  ;;  %6436 = vmatpush3.bf16.msra.mxu0 %v8087_v2  ;;  %6500 = vmatmul.mubr.msk.bf16.vlgmr.msra.gmra.mrb[12].mxu1 %vm277_vm0, %v6797_v51  ;;  %v6801_v2 = vld [vmem:[%s9196_s1 + $0x48] sm:$0xff]  }
 0x208   : > { %950 = vst.msk [vmem:[%s8256_s27 + $0xf0] sm:$0x1] %vm919_vm1, %v884_v16  ;;  %951 = vst.msk [vmem:[%s8256_s27 + $0xf8] sm:$0x1] %vm919_vm1, %v886_v36  ;;  %v1525_v21 = vcombine.high %v1521_v59, %v1521_v59  ;;  %6504 = vmatpush3.bf16.msra.mxu1 %v8071_v10  ;;  %6437 = vmatprep.subr.bf16.mxu0 %v8097_v6  ;;  %v6799_v10 = vld [vmem:[%s9196_s1 + $0x38] sm:$0xff]  }
 0x209   : > { %1582 = vst.msk [vmem:[%s8256_s27 + $0xc1] sm:$0x1] %vm919_vm1, %v1500_v14  ;;  %1586 = vst.msk [vmem:[%s8256_s27 + $0xe1] sm:$0x1] %vm919_vm1, %v1507_v31  ;;  %6505 = vmatprep.subr.bf16.mxu1 %v8081_v58  ;;  %6513 = vmatprep.mubr.msk.bf16.mxu1 %vm277_vm0, %v6798_v54 }
 0x20a   : > { %1583 = vst.msk [vmem:[%s8256_s27 + $0xc9] sm:$0x1] %vm919_vm1, %v1514_v57  ;;  %1584 = vst.msk [vmem:[%s8256_s27 + $0xd1] sm:$0x1] %vm919_vm1, %v1522_v44 }
 0x20b   : > { %1587 = vst.msk [vmem:[%s8256_s27 + $0xe9] sm:$0x1] %vm919_vm1, %v1521_v59  ;;  %1588 = vst.msk [vmem:[%s8256_s27 + $0xf1] sm:$0x1] %vm919_vm1, %v1523_v55  ;;  %6438 = vmatpush3.bf16.msra.mxu0 %v8097_v6 }
 0x20c   : > { %1585 = vst.msk [vmem:[%s8256_s27 + $0xd9] sm:$0x1] %vm919_vm1, %v1524_v5  ;;  %1589 = vst.msk [vmem:[%s8256_s27 + $0xf9] sm:$0x1] %vm919_vm1, %v1525_v21  ;;  %6506 = vmatpush3.bf16.msra.mxu1 %v8081_v58  ;;  %6439 = vmatprep.subr.bf16.mxu0 %v8107_v24  ;;  %v6800_v58 = vld [vmem:[%s9196_s1 + $0x40] sm:$0xff]  }
 0x20d   : > { %6507 = vmatprep.subr.bf16.mxu1 %v8093_v4 }
 0x20f   : > { %6440 = vmatpush3.bf16.msra.mxu0 %v8107_v24 }
 0x210   : > { %6508 = vmatpush3.bf16.msra.mxu1 %v8093_v4  ;;  %6441 = vmatprep.subr.bf16.mxu0 %v8116_v27 }
 0x211   : > { %6509 = vmatprep.subr.bf16.mxu1 %v8103_v7 }
 0x213   : > { %6442 = vmatpush3.bf16.msra.mxu0 %v8116_v27 }
 0x214   : > { %6510 = vmatpush3.bf16.msra.mxu1 %v8103_v7  ;;  %6447 = vmatprep.subr.bf16.mxu0 %v8127_v13 }
 0x215   : > { %6511 = vmatprep.subr.bf16.mxu1 %v8113_v11 }
 0x216   : > { %6444 = vmatmul.mubr.msk.bf16.vlgmr.msra.gmra.mrb[12].mxu0 %vm277_vm0, %v6799_v10 }
 0x217   : > { %6448 = vmatpush3.bf16.msra.mxu0 %v8127_v13  ;;  %6457 = vmatprep.mubr.msk.bf16.mxu0 %vm277_vm0, %v6800_v58 }
 0x218   : > { %6512 = vmatpush3.bf16.msra.mxu1 %v8113_v11  ;;  %6449 = vmatprep.subr.bf16.mxu0 %v8142_v15 }
 0x219   : > { %6517 = vmatprep.subr.bf16.mxu1 %v8124_v9 }
 0x21b   : > { %6450 = vmatpush3.bf16.msra.mxu0 %v8142_v15  ;;  %6514 = vmatmul.mubr.msk.bf16.vlgmr.msra.gmra.mrb[12].mxu1 %vm277_vm0, %v6799_v10 }
 0x21c   : > { %6518 = vmatpush3.bf16.msra.mxu1 %v8124_v9  ;;  %6451 = vmatprep.subr.bf16.mxu0 %v8157_v19 }
 0x21d   : > { %6519 = vmatprep.subr.bf16.mxu1 %v8139_v22  ;;  %6527 = vmatprep.mubr.msk.bf16.mxu1 %vm277_vm0, %v6800_v58 }
 0x21f   : > { %6452 = vmatpush3.bf16.msra.mxu0 %v8157_v19 }
 0x220   : > { %6520 = vmatpush3.bf16.msra.mxu1 %v8139_v22  ;;  %6453 = vmatprep.subr.bf16.mxu0 %v8168_v35 }
 0x221   : > { %6521 = vmatprep.subr.bf16.mxu1 %v8152_v17 }
 0x223   : > { %6454 = vmatpush3.bf16.msra.mxu0 %v8168_v35 }
 0x224   : > { %6522 = vmatpush3.bf16.msra.mxu1 %v8152_v17  ;;  %6455 = vmatprep.subr.bf16.mxu0 %v8186_v48 }
 0x225   : > { %6523 = vmatprep.subr.bf16.mxu1 %v8165_v32 }
 0x227   : > { %6456 = vmatpush3.bf16.msra.mxu0 %v8186_v48 }
 0x228   : > { %6524 = vmatpush3.bf16.msra.mxu1 %v8165_v32 }
 0x229   : > { %6525 = vmatprep.subr.bf16.mxu1 %v8182_v38 }
 0x22a   : > { %6458 = vmatmul.mubr.msk.bf16.vlgmr.msra.gmra.mrb[12].mxu0 %vm277_vm0, %v6801_v2 }
 0x22c   : > { %6526 = vmatpush3.bf16.msra.mxu1 %v8182_v38 }
 0x22f   : > { %6528 = vmatmul.mubr.msk.bf16.vlgmr.msra.gmra.mrb[12].mxu1 %vm277_vm0, %v6801_v2  ;;  %v6179_v4 = vpop.f32.mrb[4].mxu0 }
 0x230   : > { %v1954_v6 = vadd.f32 %v6179_v4, %v8209_v43  ;;  %v1933_v7 = vpop.f32.mrb[5].mxu0 }
 0x231   : > { %v1952_v24 = vadd.f32 %v1933_v7, %v8200_v52  ;;  %v6180_v11 = vpop.f32.mrb[6].mxu0 }
 0x232   : > { %v1958_v27 = vmul.f32 0.2, %v1954_v6  ;;  %v1955_v9 = vadd.f32 %v6180_v11, %v8224_v18  ;;  %v1936_v13 = vpop.f32.mrb[7].mxu0 }
 0x233   : > { %v1956_v22 = vmul.f32 0.2, %v1952_v24  ;;  %v1953_v15 = vadd.f32 %v1936_v13, %v8194_v34 }
 0x234   : > { %v1962_v17 = vmax.f32 %v1954_v6, %v1958_v27  ;;  %v1959_v19 = vmul.f32 0.2, %v1955_v9  ;;  %v6249_v32 = vpop.f32.mrb[4].mxu1 }
 0x235   : > { %v1960_v35 = vmax.f32 %v1952_v24, %v1956_v22  ;;  %v1957_v38 = vmul.f32 0.2, %v1953_v15  ;;  %v8539_v48 = vadd.f32 %v6249_v32, %v8209_v43  ;;  %v2571_v60 = vpop.f32.mrb[5].mxu1 }
 0x236   : > { %v2066_v63 = vcombine.high %v1962_v17, %v1962_v17  ;;  %v2073_v47 = vrot.slane %v1962_v17, %v8205_v56  ;;  %v1963_v46 = vmax.f32 %v1955_v9, %v1959_v19  ;;  %v8543_v1 = vadd.f32 %v2571_v60, %v8200_v52  ;;  %v8545_v45 = vpop.f32.mrb[6].mxu1 }
 0x237   : > { %v1968_v8 = vcombine.high %v1960_v35, %v1960_v35  ;;  %v1975_v29 = vrot.slane %v1960_v35, %v8205_v56  ;;  %v1961_v26 = vmax.f32 %v1953_v15, %v1957_v38  ;;  %v2596_v0 = vmul.f32 0.2, %v8539_v48  ;;  %v8549_v37 = vpop.f32.mrb[7].mxu1 }
 0x238   : > { %v2080_v49 = vrot.slane %v2066_v63, %v8205_v56  ;;  %v2081_v41 = vcombine.high %v2073_v47, %v2073_v47  ;;  %v2089_v39 = vrot.slane %v2073_v47, %v8205_v56  ;;  %v2115_v62 = vcombine.high %v1963_v46, %v1963_v46 }
 0x239   : > { %v1982_v28 = vrot.slane %v1968_v8, %v8205_v56  ;;  %v1983_v40 = vcombine.high %v1975_v29, %v1975_v29  ;;  %v1991_v3 = vrot.slane %v1975_v29, %v8205_v56  ;;  %v2122_v30 = vrot.slane %v1963_v46, %v8205_v56 }
 0x23a   : > { %v2082_v12 = vcombine.high %v2080_v49, %v2080_v49  ;;  %v2096_v42 = vrot.slane %v2080_v49, %v8205_v56  ;;  %v2103_v25 = vrot.slane %v2081_v41, %v8205_v56  ;;  %v2111_v50 = vcombine.high %v2089_v39, %v2089_v39  ;;  %2212 = vst.msk [vmem:[%s8256_s27 + $0x82] sm:$0x1] %vm919_vm1, %v2089_v39 }
 0x23b   : > { %v1984_v20 = vcombine.high %v1982_v28, %v1982_v28  ;;  %v1998_v53 = vrot.slane %v1982_v28, %v8205_v56  ;;  %v2005_v16 = vrot.slane %v1983_v40, %v8205_v56  ;;  %v2013_v33 = vcombine.high %v1991_v3, %v1991_v3  ;;  %2196 = vst.msk [vmem:[%s8256_s27 + $0x2] sm:$0x1] %vm919_vm1, %v1991_v3 }
 0x23c   : > { %v2110_v51 = vrot.slane %v2082_v12, %v8205_v56  ;;  %v2112_v36 = vcombine.high %v2096_v42, %v2096_v42  ;;  %v2113_v23 = vcombine.high %v2103_v25, %v2103_v25  ;;  %2213 = vst.msk [vmem:[%s8256_s27 + $0x8a] sm:$0x1] %vm919_vm1, %v2103_v25  ;;  %2214 = vst.msk [vmem:[%s8256_s27 + $0x92] sm:$0x1] %vm919_vm1, %v2111_v50  ;;  %v2594_v19 = vmul.f32 0.2, %v8543_v1 }
 0x23d   : > { %2216 = vst.msk [vmem:[%s8256_s27 + $0xa2] sm:$0x1] %vm919_vm1, %v2096_v42  ;;  %v2129_v61 = vrot.slane %v2115_v62, %v8205_v56  ;;  %v2012_v14 = vrot.slane %v1984_v20, %v8205_v56  ;;  %v2014_v31 = vcombine.high %v1998_v53, %v1998_v53  ;;  %v2015_v57 = vcombine.high %v2005_v16, %v2005_v16 }
 0x23e   : > { %2197 = vst.msk [vmem:[%s8256_s27 + $0xa] sm:$0x1] %vm919_vm1, %v2005_v16  ;;  %2198 = vst.msk [vmem:[%s8256_s27 + $0x12] sm:$0x1] %vm919_vm1, %v2013_v33  ;;  %v2130_v59 = vcombine.high %v2122_v30, %v2122_v30  ;;  %v2114_v44 = vcombine.high %v2110_v51, %v2110_v51  ;;  %v2138_v55 = vrot.slane %v2122_v30, %v8205_v56 }
 0x23f   : > { %2200 = vst.msk [vmem:[%s8256_s27 + $0x22] sm:$0x1] %vm919_vm1, %v1998_v53  ;;  %2215 = vst.msk [vmem:[%s8256_s27 + $0x9a] sm:$0x1] %vm919_vm1, %v2113_v23  ;;  %v2131_v54 = vcombine.high %v2129_v61, %v2129_v61  ;;  %v2145_v5 = vrot.slane %v2129_v61, %v8205_v56  ;;  %v2016_v21 = vcombine.high %v2012_v14, %v2012_v14 }
 0x240   : > { %2217 = vst.msk [vmem:[%s8256_s27 + $0xaa] sm:$0x1] %vm919_vm1, %v2110_v51  ;;  %2218 = vst.msk [vmem:[%s8256_s27 + $0xb2] sm:$0x1] %vm919_vm1, %v2112_v36  ;;  %v2152_v10 = vrot.slane %v2130_v59, %v8205_v56  ;;  %v2017_v58 = vcombine.high %v1961_v26, %v1961_v26  ;;  %v2024_v2 = vrot.slane %v1961_v26, %v8205_v56 }
 0x241   : > { %2199 = vst.msk [vmem:[%s8256_s27 + $0x1a] sm:$0x1] %vm919_vm1, %v2015_v57  ;;  %2201 = vst.msk [vmem:[%s8256_s27 + $0x2a] sm:$0x1] %vm919_vm1, %v2012_v14  ;;  %v2159_v4 = vrot.slane %v2131_v54, %v8205_v56  ;;  %v2160_v6 = vcombine.high %v2138_v55, %v2138_v55  ;;  %v2161_v7 = vcombine.high %v2145_v5, %v2145_v5 }
 0x242   : > { %2202 = vst.msk [vmem:[%s8256_s27 + $0x32] sm:$0x1] %vm919_vm1, %v2014_v31  ;;  %2219 = vst.msk [vmem:[%s8256_s27 + $0xba] sm:$0x1] %vm919_vm1, %v2114_v44  ;;  %v2600_v24 = vmax.f32 %v8539_v48, %v2596_v0  ;;  %v2162_v11 = vcombine.high %v2152_v10, %v2152_v10  ;;  %v2031_v27 = vrot.slane %v2017_v58, %v8205_v56 }
 0x243   : > { %2220 = vst.msk [vmem:[%s8256_s27 + $0xc2] sm:$0x1] %vm919_vm1, %v2138_v55  ;;  %2224 = vst.msk [vmem:[%s8256_s27 + $0xe2] sm:$0x1] %vm919_vm1, %v2145_v5  ;;  %v2032_v9 = vcombine.high %v2024_v2, %v2024_v2  ;;  %v2040_v13 = vrot.slane %v2024_v2, %v8205_v56  ;;  %v2163_v22 = vcombine.high %v2159_v4, %v2159_v4 }
 0x244   : > { %2203 = vst.msk [vmem:[%s8256_s27 + $0x3a] sm:$0x1] %vm919_vm1, %v2016_v21  ;;  %2221 = vst.msk [vmem:[%s8256_s27 + $0xca] sm:$0x1] %vm919_vm1, %v2152_v10  ;;  %v2704_v15 = vcombine.high %v2600_v24, %v2600_v24  ;;  %v2711_v17 = vrot.slane %v2600_v24, %v8205_v56  ;;  %v2033_v32 = vcombine.high %v2031_v27, %v2031_v27 }
 0x245   : > { %2222 = vst.msk [vmem:[%s8256_s27 + $0xd2] sm:$0x1] %vm919_vm1, %v2160_v6  ;;  %2225 = vst.msk [vmem:[%s8256_s27 + $0xea] sm:$0x1] %vm919_vm1, %v2159_v4  ;;  %v2047_v35 = vrot.slane %v2031_v27, %v8205_v56  ;;  %v2054_v38 = vrot.slane %v2032_v9, %v8205_v56  ;;  %v2062_v48 = vcombine.high %v2040_v13, %v2040_v13 }
 0x246   : > { %2226 = vst.msk [vmem:[%s8256_s27 + $0xf2] sm:$0x1] %vm919_vm1, %v2161_v7  ;;  %2223 = vst.msk [vmem:[%s8256_s27 + $0xda] sm:$0x1] %vm919_vm1, %v2162_v11  ;;  %v2718_v60 = vrot.slane %v2704_v15, %v8205_v56  ;;  %v2719_v63 = vcombine.high %v2711_v17, %v2711_v17  ;;  %v2727_v47 = vrot.slane %v2711_v17, %v8205_v56 }
 0x247   : > { %2204 = vst.msk [vmem:[%s8256_s27 + $0x42] sm:$0x1] %vm919_vm1, %v2040_v13  ;;  %2227 = vst.msk [vmem:[%s8256_s27 + $0xfa] sm:$0x1] %vm919_vm1, %v2163_v22  ;;  %v2598_v46 = vmax.f32 %v8543_v1, %v2594_v19  ;;  %v2061_v8 = vrot.slane %v2033_v32, %v8205_v56  ;;  %v2063_v29 = vcombine.high %v2047_v35, %v2047_v35 }
 0x248   : > { %v2064_v26 = vcombine.high %v2054_v38, %v2054_v38  ;;  %2205 = vst.msk [vmem:[%s8256_s27 + $0x4a] sm:$0x1] %vm919_vm1, %v2054_v38  ;;  %2206 = vst.msk [vmem:[%s8256_s27 + $0x52] sm:$0x1] %vm919_vm1, %v2062_v48  ;;  %v2593_v0 = vadd.f32 %v8545_v45, %v8224_v18  ;;  %v2720_v49 = vcombine.high %v2718_v60, %v2718_v60 }
 0x249   : > { %2208 = vst.msk [vmem:[%s8256_s27 + $0x62] sm:$0x1] %vm919_vm1, %v2047_v35  ;;  %v2734_v41 = vrot.slane %v2718_v60, %v8205_v56  ;;  %v2741_v1 = vrot.slane %v2719_v63, %v8205_v56  ;;  %v2749_v39 = vcombine.high %v2727_v47, %v2727_v47  ;;  %2850 = vst.msk [vmem:[%s8256_s27 + $0x83] sm:$0x1] %vm919_vm1, %v2727_v47 }
 0x24a   : > { %v2065_v62 = vcombine.high %v2061_v8, %v2061_v8  ;;  %2207 = vst.msk [vmem:[%s8256_s27 + $0x5a] sm:$0x1] %vm919_vm1, %v2064_v26  ;;  %2209 = vst.msk [vmem:[%s8256_s27 + $0x6a] sm:$0x1] %vm919_vm1, %v2061_v8  ;;  %v2606_v45 = vcombine.high %v2598_v46, %v2598_v46  ;;  %v2613_v28 = vrot.slane %v2598_v46, %v8205_v56  ;;  %v2597_v40 = vmul.f32 0.2, %v2593_v0 }
 0x24b   : > { %2210 = vst.msk [vmem:[%s8256_s27 + $0x72] sm:$0x1] %vm919_vm1, %v2063_v29  ;;  %v2748_v3 = vrot.slane %v2720_v49, %v8205_v56  ;;  %v2750_v30 = vcombine.high %v2734_v41, %v2734_v41  ;;  %v2751_v12 = vcombine.high %v2741_v1, %v2741_v1  ;;  %2851 = vst.msk [vmem:[%s8256_s27 + $0x8b] sm:$0x1] %vm919_vm1, %v2741_v1 }
 0x24c   : > { %2852 = vst.msk [vmem:[%s8256_s27 + $0x93] sm:$0x1] %vm919_vm1, %v2749_v39  ;;  %2854 = vst.msk [vmem:[%s8256_s27 + $0xa3] sm:$0x1] %vm919_vm1, %v2734_v41  ;;  %v2591_v42 = vadd.f32 %v8549_v37, %v8194_v34  ;;  %v2620_v25 = vrot.slane %v2606_v45, %v8205_v56  ;;  %v2621_v50 = vcombine.high %v2613_v28, %v2613_v28 }
 0x24d   : > { %2211 = vst.msk [vmem:[%s8256_s27 + $0x7a] sm:$0x1] %vm919_vm1, %v2065_v62  ;;  %v2629_v20 = vrot.slane %v2613_v28, %v8205_v56  ;;  %v2601_v53 = vmax.f32 %v2593_v0, %v2597_v40  ;;  %v2752_v16 = vcombine.high %v2748_v3, %v2748_v3  ;;  %2853 = vst.msk [vmem:[%s8256_s27 + $0x9b] sm:$0x1] %vm919_vm1, %v2751_v12 }
 0x24e   : > { %2855 = vst.msk [vmem:[%s8256_s27 + $0xab] sm:$0x1] %vm919_vm1, %v2748_v3  ;;  %2856 = vst.msk [vmem:[%s8256_s27 + $0xb3] sm:$0x1] %vm919_vm1, %v2750_v30  ;;  %v2595_v37 = vmul.f32 0.2, %v2591_v42  ;;  %v2622_v33 = vcombine.high %v2620_v25, %v2620_v25  ;;  %v2636_v51 = vrot.slane %v2620_v25, %v8205_v56  ;;  %v2643_v36 = vrot.slane %v2621_v50, %v8205_v56 }
 0x24f   : > { %v2651_v23 = vcombine.high %v2629_v20, %v2629_v20  ;;  %2834 = vst.msk [vmem:[%s8256_s27 + $0x3] sm:$0x1] %vm919_vm1, %v2629_v20  ;;  %2857 = vst.msk [vmem:[%s8256_s27 + $0xbb] sm:$0x1] %vm919_vm1, %v2752_v16  ;;  %v2753_v61 = vcombine.high %v2601_v53, %v2601_v53  ;;  %v2760_v14 = vrot.slane %v2601_v53, %v8205_v56 }
 0x250   : > { %v2599_v31 = vmax.f32 %v2591_v42, %v2595_v37  ;;  %v2650_v57 = vrot.slane %v2622_v33, %v8205_v56  ;;  %v2652_v59 = vcombine.high %v2636_v51, %v2636_v51  ;;  %v2653_v44 = vcombine.high %v2643_v36, %v2643_v36  ;;  %2835 = vst.msk [vmem:[%s8256_s27 + $0xb] sm:$0x1] %vm919_vm1, %v2643_v36 }
 0x251   : > { %2836 = vst.msk [vmem:[%s8256_s27 + $0x13] sm:$0x1] %vm919_vm1, %v2651_v23  ;;  %2838 = vst.msk [vmem:[%s8256_s27 + $0x23] sm:$0x1] %vm919_vm1, %v2636_v51  ;;  %v2767_v54 = vrot.slane %v2753_v61, %v8205_v56  ;;  %v2768_v55 = vcombine.high %v2760_v14, %v2760_v14  ;;  %v2776_v5 = vrot.slane %v2760_v14, %v8205_v56 }
 0x252   : > { %v2655_v21 = vcombine.high %v2599_v31, %v2599_v31  ;;  %v2654_v10 = vcombine.high %v2650_v57, %v2650_v57  ;;  %2837 = vst.msk [vmem:[%s8256_s27 + $0x1b] sm:$0x1] %vm919_vm1, %v2653_v44  ;;  %2839 = vst.msk [vmem:[%s8256_s27 + $0x2b] sm:$0x1] %vm919_vm1, %v2650_v57  ;;  %v2662_v58 = vrot.slane %v2599_v31, %v8205_v56 }
 0x253   : > { %2840 = vst.msk [vmem:[%s8256_s27 + $0x33] sm:$0x1] %vm919_vm1, %v2652_v59  ;;  %v2769_v2 = vcombine.high %v2767_v54, %v2767_v54  ;;  %v2783_v4 = vrot.slane %v2767_v54, %v8205_v56  ;;  %v2790_v6 = vrot.slane %v2768_v55, %v8205_v56  ;;  %v2798_v7 = vcombine.high %v2776_v5, %v2776_v5 }
 0x254   : > { %2858 = vst.msk [vmem:[%s8256_s27 + $0xc3] sm:$0x1] %vm919_vm1, %v2776_v5  ;;  %2841 = vst.msk [vmem:[%s8256_s27 + $0x3b] sm:$0x1] %vm919_vm1, %v2654_v10  ;;  %v2669_v24 = vrot.slane %v2655_v21, %v8205_v56  ;;  %v2670_v11 = vcombine.high %v2662_v58, %v2662_v58  ;;  %v2678_v27 = vrot.slane %v2662_v58, %v8205_v56 }
 0x255   : > { %v2797_v9 = vrot.slane %v2769_v2, %v8205_v56  ;;  %v2799_v13 = vcombine.high %v2783_v4, %v2783_v4  ;;  %v2800_v22 = vcombine.high %v2790_v6, %v2790_v6  ;;  %2859 = vst.msk [vmem:[%s8256_s27 + $0xcb] sm:$0x1] %vm919_vm1, %v2790_v6  ;;  %2860 = vst.msk [vmem:[%s8256_s27 + $0xd3] sm:$0x1] %vm919_vm1, %v2798_v7 }
 0x256   : > { %2862 = vst.msk [vmem:[%s8256_s27 + $0xe3] sm:$0x1] %vm919_vm1, %v2783_v4  ;;  %v2671_v15 = vcombine.high %v2669_v24, %v2669_v24  ;;  %v2685_v17 = vrot.slane %v2669_v24, %v8205_v56  ;;  %v2692_v19 = vrot.slane %v2670_v11, %v8205_v56  ;;  %v2700_v32 = vcombine.high %v2678_v27, %v2678_v27 }
 0x257   : > { %2842 = vst.msk [vmem:[%s8256_s27 + $0x43] sm:$0x1] %vm919_vm1, %v2678_v27  ;;  %v2801_v35 = vcombine.high %v2797_v9, %v2797_v9  ;;  %2861 = vst.msk [vmem:[%s8256_s27 + $0xdb] sm:$0x1] %vm919_vm1, %v2800_v22 }
 0x258   : > { %2863 = vst.msk [vmem:[%s8256_s27 + $0xeb] sm:$0x1] %vm919_vm1, %v2797_v9  ;;  %2864 = vst.msk [vmem:[%s8256_s27 + $0xf3] sm:$0x1] %vm919_vm1, %v2799_v13  ;;  %v2699_v38 = vrot.slane %v2671_v15, %v8205_v56  ;;  %v2701_v48 = vcombine.high %v2685_v17, %v2685_v17  ;;  %v2702_v60 = vcombine.high %v2692_v19, %v2692_v19 }
 0x259   : > { %2843 = vst.msk [vmem:[%s8256_s27 + $0x4b] sm:$0x1] %vm919_vm1, %v2692_v19  ;;  %2844 = vst.msk [vmem:[%s8256_s27 + $0x53] sm:$0x1] %vm919_vm1, %v2700_v32 }
 0x25a   : > { %2846 = vst.msk [vmem:[%s8256_s27 + $0x63] sm:$0x1] %vm919_vm1, %v2685_v17  ;;  %2865 = vst.msk [vmem:[%s8256_s27 + $0xfb] sm:$0x1] %vm919_vm1, %v2801_v35  ;;  %v2703_v63 = vcombine.high %v2699_v38, %v2699_v38 }
 0x25b   : > { %2845 = vst.msk [vmem:[%s8256_s27 + $0x5b] sm:$0x1] %vm919_vm1, %v2702_v60  ;;  %2847 = vst.msk [vmem:[%s8256_s27 + $0x6b] sm:$0x1] %vm919_vm1, %v2699_v38 }
 0x25c   : > { %2848 = vst.msk [vmem:[%s8256_s27 + $0x73] sm:$0x1] %vm919_vm1, %v2701_v48  ;;  %2849 = vst.msk [vmem:[%s8256_s27 + $0x7b] sm:$0x1] %vm919_vm1, %v2703_v63 }
 0x293   : > { %v6319_v47 = vpop.f32.mrb[8].mxu0 }
 0x294   : > { %v3230_v46 = vadd.f32 %v6319_v47, %v8209_v43  ;;  %v3209_v8 = vpop.f32.mrb[9].mxu0 }
 0x295   : > { %v3228_v29 = vadd.f32 %v3209_v8, %v8200_v52  ;;  %v6320_v26 = vpop.f32.mrb[10].mxu0 }
 0x296   : > { %v3234_v0 = vmul.f32 0.2, %v3230_v46  ;;  %v3231_v49 = vadd.f32 %v6320_v26, %v8224_v18  ;;  %v3212_v41 = vpop.f32.mrb[11].mxu0 }
 0x297   : > { %v3232_v1 = vmul.f32 0.2, %v3228_v29  ;;  %v3229_v39 = vadd.f32 %v3212_v41, %v8194_v34 }
 0x298   : > { %v3238_v62 = vmax.f32 %v3230_v46, %v3234_v0  ;;  %v3235_v45 = vmul.f32 0.2, %v3231_v49  ;;  %v6389_v28 = vpop.f32.mrb[8].mxu1 }
 0x299   : > { %v3236_v40 = vmax.f32 %v3228_v29, %v3232_v1  ;;  %v3233_v3 = vmul.f32 0.2, %v3229_v39  ;;  %v8737_v30 = vadd.f32 %v6389_v28, %v8209_v43  ;;  %v3847_v12 = vpop.f32.mrb[9].mxu1 }
 0x29a   : > { %v3342_v42 = vcombine.high %v3238_v62, %v3238_v62  ;;  %v3349_v25 = vrot.slane %v3238_v62, %v8205_v56  ;;  %v3239_v50 = vmax.f32 %v3231_v49, %v3235_v45  ;;  %v8741_v20 = vadd.f32 %v3847_v12, %v8200_v52  ;;  %v8743_v53 = vpop.f32.mrb[10].mxu1 }
 0x29b   : > { %v3244_v16 = vcombine.high %v3236_v40, %v3236_v40  ;;  %v3251_v37 = vrot.slane %v3236_v40, %v8205_v56  ;;  %v3237_v33 = vmax.f32 %v3229_v39, %v3233_v3  ;;  %v3872_v51 = vmul.f32 0.2, %v8737_v30  ;;  %v8747_v36 = vpop.f32.mrb[11].mxu1 }
 0x29c   : > { %v3356_v23 = vrot.slane %v3342_v42, %v8205_v56  ;;  %v3357_v61 = vcombine.high %v3349_v25, %v3349_v25  ;;  %v3365_v14 = vrot.slane %v3349_v25, %v8205_v56  ;;  %v3391_v31 = vcombine.high %v3239_v50, %v3239_v50 }
 0x29d   : > { %v3258_v57 = vrot.slane %v3244_v16, %v8205_v56  ;;  %v3259_v59 = vcombine.high %v3251_v37, %v3251_v37  ;;  %v3267_v44 = vrot.slane %v3251_v37, %v8205_v56  ;;  %v3398_v54 = vrot.slane %v3239_v50, %v8205_v56 }
 0x29e   : > { %v3358_v55 = vcombine.high %v3356_v23, %v3356_v23  ;;  %v3372_v5 = vrot.slane %v3356_v23, %v8205_v56  ;;  %v3379_v21 = vrot.slane %v3357_v61, %v8205_v56  ;;  %v3387_v10 = vcombine.high %v3365_v14, %v3365_v14  ;;  %3488 = vst.msk [vmem:[%s8256_s27 + $0x84] sm:$0x1] %vm919_vm1, %v3365_v14 }
 0x29f   : > { %v3260_v58 = vcombine.high %v3258_v57, %v3258_v57  ;;  %v3274_v2 = vrot.slane %v3258_v57, %v8205_v56  ;;  %v3281_v4 = vrot.slane %v3259_v59, %v8205_v56  ;;  %v3289_v6 = vcombine.high %v3267_v44, %v3267_v44  ;;  %3472 = vst.msk [vmem:[%s8256_s27 + $0x4] sm:$0x1] %vm919_vm1, %v3267_v44 }
 0x2a0   : > { %v3386_v7 = vrot.slane %v3358_v55, %v8205_v56  ;;  %v3388_v24 = vcombine.high %v3372_v5, %v3372_v5  ;;  %v3389_v11 = vcombine.high %v3379_v21, %v3379_v21  ;;  %3489 = vst.msk [vmem:[%s8256_s27 + $0x8c] sm:$0x1] %vm919_vm1, %v3379_v21  ;;  %3490 = vst.msk [vmem:[%s8256_s27 + $0x94] sm:$0x1] %vm919_vm1, %v3387_v10  ;;  %v3870_v45 = vmul.f32 0.2, %v8741_v20 }
 0x2a1   : > { %3492 = vst.msk [vmem:[%s8256_s27 + $0xa4] sm:$0x1] %vm919_vm1, %v3372_v5  ;;  %v3405_v27 = vrot.slane %v3391_v31, %v8205_v56  ;;  %v3288_v9 = vrot.slane %v3260_v58, %v8205_v56  ;;  %v3290_v13 = vcombine.high %v3274_v2, %v3274_v2  ;;  %v3291_v22 = vcombine.high %v3281_v4, %v3281_v4 }
 0x2a2   : > { %3473 = vst.msk [vmem:[%s8256_s27 + $0xc] sm:$0x1] %vm919_vm1, %v3281_v4  ;;  %3474 = vst.msk [vmem:[%s8256_s27 + $0x14] sm:$0x1] %vm919_vm1, %v3289_v6  ;;  %v3406_v15 = vcombine.high %v3398_v54, %v3398_v54  ;;  %v3390_v17 = vcombine.high %v3386_v7, %v3386_v7  ;;  %v3414_v32 = vrot.slane %v3398_v54, %v8205_v56 }
 0x2a3   : > { %3476 = vst.msk [vmem:[%s8256_s27 + $0x24] sm:$0x1] %vm919_vm1, %v3274_v2  ;;  %3491 = vst.msk [vmem:[%s8256_s27 + $0x9c] sm:$0x1] %vm919_vm1, %v3389_v11  ;;  %v3407_v19 = vcombine.high %v3405_v27, %v3405_v27  ;;  %v3421_v35 = vrot.slane %v3405_v27, %v8205_v56  ;;  %v3292_v38 = vcombine.high %v3288_v9, %v3288_v9 }
 0x2a4   : > { %3493 = vst.msk [vmem:[%s8256_s27 + $0xac] sm:$0x1] %vm919_vm1, %v3386_v7  ;;  %3494 = vst.msk [vmem:[%s8256_s27 + $0xb4] sm:$0x1] %vm919_vm1, %v3388_v24  ;;  %v3428_v48 = vrot.slane %v3406_v15, %v8205_v56  ;;  %v3293_v60 = vcombine.high %v3237_v33, %v3237_v33  ;;  %v3300_v63 = vrot.slane %v3237_v33, %v8205_v56 }
 0x2a5   : > { %3475 = vst.msk [vmem:[%s8256_s27 + $0x1c] sm:$0x1] %vm919_vm1, %v3291_v22  ;;  %3477 = vst.msk [vmem:[%s8256_s27 + $0x2c] sm:$0x1] %vm919_vm1, %v3288_v9  ;;  %v3435_v47 = vrot.slane %v3407_v19, %v8205_v56  ;;  %v3436_v46 = vcombine.high %v3414_v32, %v3414_v32  ;;  %v3437_v8 = vcombine.high %v3421_v35, %v3421_v35 }
 0x2a6   : > { %3478 = vst.msk [vmem:[%s8256_s27 + $0x34] sm:$0x1] %vm919_vm1, %v3290_v13  ;;  %3495 = vst.msk [vmem:[%s8256_s27 + $0xbc] sm:$0x1] %vm919_vm1, %v3390_v17  ;;  %v3876_v29 = vmax.f32 %v8737_v30, %v3872_v51  ;;  %v3438_v26 = vcombine.high %v3428_v48, %v3428_v48  ;;  %v3307_v0 = vrot.slane %v3293_v60, %v8205_v56 }
 0x2a7   : > { %3496 = vst.msk [vmem:[%s8256_s27 + $0xc4] sm:$0x1] %vm919_vm1, %v3414_v32  ;;  %3500 = vst.msk [vmem:[%s8256_s27 + $0xe4] sm:$0x1] %vm919_vm1, %v3421_v35  ;;  %v3308_v49 = vcombine.high %v3300_v63, %v3300_v63  ;;  %v3316_v41 = vrot.slane %v3300_v63, %v8205_v56  ;;  %v3439_v1 = vcombine.high %v3435_v47, %v3435_v47 }
 0x2a8   : > { %3479 = vst.msk [vmem:[%s8256_s27 + $0x3c] sm:$0x1] %vm919_vm1, %v3292_v38  ;;  %3497 = vst.msk [vmem:[%s8256_s27 + $0xcc] sm:$0x1] %vm919_vm1, %v3428_v48  ;;  %v3980_v39 = vcombine.high %v3876_v29, %v3876_v29  ;;  %v3987_v62 = vrot.slane %v3876_v29, %v8205_v56  ;;  %v3309_v28 = vcombine.high %v3307_v0, %v3307_v0 }
 0x2a9   : > { %3498 = vst.msk [vmem:[%s8256_s27 + $0xd4] sm:$0x1] %vm919_vm1, %v3436_v46  ;;  %3501 = vst.msk [vmem:[%s8256_s27 + $0xec] sm:$0x1] %vm919_vm1, %v3435_v47  ;;  %v3323_v40 = vrot.slane %v3307_v0, %v8205_v56  ;;  %v3330_v3 = vrot.slane %v3308_v49, %v8205_v56  ;;  %v3338_v30 = vcombine.high %v3316_v41, %v3316_v41 }
 0x2aa   : > { %3502 = vst.msk [vmem:[%s8256_s27 + $0xf4] sm:$0x1] %vm919_vm1, %v3437_v8  ;;  %3499 = vst.msk [vmem:[%s8256_s27 + $0xdc] sm:$0x1] %vm919_vm1, %v3438_v26  ;;  %v3994_v12 = vrot.slane %v3980_v39, %v8205_v56  ;;  %v3995_v42 = vcombine.high %v3987_v62, %v3987_v62  ;;  %v4003_v25 = vrot.slane %v3987_v62, %v8205_v56 }
 0x2ab   : > { %3480 = vst.msk [vmem:[%s8256_s27 + $0x44] sm:$0x1] %vm919_vm1, %v3316_v41  ;;  %3503 = vst.msk [vmem:[%s8256_s27 + $0xfc] sm:$0x1] %vm919_vm1, %v3439_v1  ;;  %v3874_v50 = vmax.f32 %v8741_v20, %v3870_v45  ;;  %v3337_v16 = vrot.slane %v3309_v28, %v8205_v56  ;;  %v3339_v37 = vcombine.high %v3323_v40, %v3323_v40 }
 0x2ac   : > { %v3340_v33 = vcombine.high %v3330_v3, %v3330_v3  ;;  %3481 = vst.msk [vmem:[%s8256_s27 + $0x4c] sm:$0x1] %vm919_vm1, %v3330_v3  ;;  %3482 = vst.msk [vmem:[%s8256_s27 + $0x54] sm:$0x1] %vm919_vm1, %v3338_v30  ;;  %v3869_v51 = vadd.f32 %v8743_v53, %v8224_v18  ;;  %v3996_v23 = vcombine.high %v3994_v12, %v3994_v12 }
 0x2ad   : > { %3484 = vst.msk [vmem:[%s8256_s27 + $0x64] sm:$0x1] %vm919_vm1, %v3323_v40  ;;  %v4010_v61 = vrot.slane %v3994_v12, %v8205_v56  ;;  %v4017_v20 = vrot.slane %v3995_v42, %v8205_v56  ;;  %v4025_v14 = vcombine.high %v4003_v25, %v4003_v25  ;;  %4126 = vst.msk [vmem:[%s8256_s27 + $0x85] sm:$0x1] %vm919_vm1, %v4003_v25 }
 0x2ae   : > { %v3341_v31 = vcombine.high %v3337_v16, %v3337_v16  ;;  %3483 = vst.msk [vmem:[%s8256_s27 + $0x5c] sm:$0x1] %vm919_vm1, %v3340_v33  ;;  %3485 = vst.msk [vmem:[%s8256_s27 + $0x6c] sm:$0x1] %vm919_vm1, %v3337_v16  ;;  %v3882_v53 = vcombine.high %v3874_v50, %v3874_v50  ;;  %v3889_v57 = vrot.slane %v3874_v50, %v8205_v56  ;;  %v3873_v59 = vmul.f32 0.2, %v3869_v51 }
 0x2af   : > { %3486 = vst.msk [vmem:[%s8256_s27 + $0x74] sm:$0x1] %vm919_vm1, %v3339_v37  ;;  %v4024_v44 = vrot.slane %v3996_v23, %v8205_v56  ;;  %v4026_v54 = vcombine.high %v4010_v61, %v4010_v61  ;;  %v4027_v55 = vcombine.high %v4017_v20, %v4017_v20  ;;  %4127 = vst.msk [vmem:[%s8256_s27 + $0x8d] sm:$0x1] %vm919_vm1, %v4017_v20 }
 0x2b0   : > { %4128 = vst.msk [vmem:[%s8256_s27 + $0x95] sm:$0x1] %vm919_vm1, %v4025_v14  ;;  %4130 = vst.msk [vmem:[%s8256_s27 + $0xa5] sm:$0x1] %vm919_vm1, %v4010_v61  ;;  %v3867_v5 = vadd.f32 %v8747_v36, %v8194_v34  ;;  %v3896_v21 = vrot.slane %v3882_v53, %v8205_v56  ;;  %v3897_v10 = vcombine.high %v3889_v57, %v3889_v57 }
 0x2b1   : > { %3487 = vst.msk [vmem:[%s8256_s27 + $0x7c] sm:$0x1] %vm919_vm1, %v3341_v31  ;;  %v3905_v58 = vrot.slane %v3889_v57, %v8205_v56  ;;  %v3877_v2 = vmax.f32 %v3869_v51, %v3873_v59  ;;  %v4028_v4 = vcombine.high %v4024_v44, %v4024_v44  ;;  %4129 = vst.msk [vmem:[%s8256_s27 + $0x9d] sm:$0x1] %vm919_vm1, %v4027_v55 }
 0x2b2   : > { %4131 = vst.msk [vmem:[%s8256_s27 + $0xad] sm:$0x1] %vm919_vm1, %v4024_v44  ;;  %4132 = vst.msk [vmem:[%s8256_s27 + $0xb5] sm:$0x1] %vm919_vm1, %v4026_v54  ;;  %v3871_v36 = vmul.f32 0.2, %v3867_v5  ;;  %v3898_v6 = vcombine.high %v3896_v21, %v3896_v21  ;;  %v3912_v7 = vrot.slane %v3896_v21, %v8205_v56  ;;  %v3919_v24 = vrot.slane %v3897_v10, %v8205_v56 }
 0x2b3   : > { %v3927_v11 = vcombine.high %v3905_v58, %v3905_v58  ;;  %4110 = vst.msk [vmem:[%s8256_s27 + $0x5] sm:$0x1] %vm919_vm1, %v3905_v58  ;;  %4133 = vst.msk [vmem:[%s8256_s27 + $0xbd] sm:$0x1] %vm919_vm1, %v4028_v4  ;;  %v4029_v27 = vcombine.high %v3877_v2, %v3877_v2  ;;  %v4036_v9 = vrot.slane %v3877_v2, %v8205_v56 }
 0x2b4   : > { %v3875_v13 = vmax.f32 %v3867_v5, %v3871_v36  ;;  %v3926_v22 = vrot.slane %v3898_v6, %v8205_v56  ;;  %v3928_v15 = vcombine.high %v3912_v7, %v3912_v7  ;;  %v3929_v17 = vcombine.high %v3919_v24, %v3919_v24  ;;  %4111 = vst.msk [vmem:[%s8256_s27 + $0xd] sm:$0x1] %vm919_vm1, %v3919_v24 }
 0x2b5   : > { %4112 = vst.msk [vmem:[%s8256_s27 + $0x15] sm:$0x1] %vm919_vm1, %v3927_v11  ;;  %4114 = vst.msk [vmem:[%s8256_s27 + $0x25] sm:$0x1] %vm919_vm1, %v3912_v7  ;;  %v4043_v19 = vrot.slane %v4029_v27, %v8205_v56  ;;  %v4044_v32 = vcombine.high %v4036_v9, %v4036_v9  ;;  %v4052_v35 = vrot.slane %v4036_v9, %v8205_v56 }
 0x2b6   : > { %v3931_v38 = vcombine.high %v3875_v13, %v3875_v13  ;;  %v3930_v48 = vcombine.high %v3926_v22, %v3926_v22  ;;  %4113 = vst.msk [vmem:[%s8256_s27 + $0x1d] sm:$0x1] %vm919_vm1, %v3929_v17  ;;  %4115 = vst.msk [vmem:[%s8256_s27 + $0x2d] sm:$0x1] %vm919_vm1, %v3926_v22  ;;  %v3938_v60 = vrot.slane %v3875_v13, %v8205_v56 }
 0x2b7   : > { %4116 = vst.msk [vmem:[%s8256_s27 + $0x35] sm:$0x1] %vm919_vm1, %v3928_v15  ;;  %v4045_v63 = vcombine.high %v4043_v19, %v4043_v19  ;;  %v4059_v47 = vrot.slane %v4043_v19, %v8205_v56  ;;  %v4066_v46 = vrot.slane %v4044_v32, %v8205_v56  ;;  %v4074_v8 = vcombine.high %v4052_v35, %v4052_v35 }
 0x2b8   : > { %4134 = vst.msk [vmem:[%s8256_s27 + $0xc5] sm:$0x1] %vm919_vm1, %v4052_v35  ;;  %4117 = vst.msk [vmem:[%s8256_s27 + $0x3d] sm:$0x1] %vm919_vm1, %v3930_v48  ;;  %v3945_v29 = vrot.slane %v3931_v38, %v8205_v56  ;;  %v3946_v26 = vcombine.high %v3938_v60, %v3938_v60  ;;  %v3954_v0 = vrot.slane %v3938_v60, %v8205_v56 }
 0x2b9   : > { %v4073_v49 = vrot.slane %v4045_v63, %v8205_v56  ;;  %v4075_v41 = vcombine.high %v4059_v47, %v4059_v47  ;;  %v4076_v1 = vcombine.high %v4066_v46, %v4066_v46  ;;  %4135 = vst.msk [vmem:[%s8256_s27 + $0xcd] sm:$0x1] %vm919_vm1, %v4066_v46  ;;  %4136 = vst.msk [vmem:[%s8256_s27 + $0xd5] sm:$0x1] %vm919_vm1, %v4074_v8 }
 0x2ba   : > { %4138 = vst.msk [vmem:[%s8256_s27 + $0xe5] sm:$0x1] %vm919_vm1, %v4059_v47  ;;  %v3947_v39 = vcombine.high %v3945_v29, %v3945_v29  ;;  %v3961_v62 = vrot.slane %v3945_v29, %v8205_v56  ;;  %v3968_v45 = vrot.slane %v3946_v26, %v8205_v56  ;;  %v3976_v28 = vcombine.high %v3954_v0, %v3954_v0 }
 0x2bb   : > { %4118 = vst.msk [vmem:[%s8256_s27 + $0x45] sm:$0x1] %vm919_vm1, %v3954_v0  ;;  %v4077_v40 = vcombine.high %v4073_v49, %v4073_v49  ;;  %4137 = vst.msk [vmem:[%s8256_s27 + $0xdd] sm:$0x1] %vm919_vm1, %v4076_v1 }
 0x2bc   : > { %4139 = vst.msk [vmem:[%s8256_s27 + $0xed] sm:$0x1] %vm919_vm1, %v4073_v49  ;;  %4140 = vst.msk [vmem:[%s8256_s27 + $0xf5] sm:$0x1] %vm919_vm1, %v4075_v41  ;;  %v3975_v3 = vrot.slane %v3947_v39, %v8205_v56  ;;  %v3977_v30 = vcombine.high %v3961_v62, %v3961_v62  ;;  %v3978_v12 = vcombine.high %v3968_v45, %v3968_v45 }
 0x2bd   : > { %4119 = vst.msk [vmem:[%s8256_s27 + $0x4d] sm:$0x1] %vm919_vm1, %v3968_v45  ;;  %4120 = vst.msk [vmem:[%s8256_s27 + $0x55] sm:$0x1] %vm919_vm1, %v3976_v28 }
 0x2be   : > { %4122 = vst.msk [vmem:[%s8256_s27 + $0x65] sm:$0x1] %vm919_vm1, %v3961_v62  ;;  %4141 = vst.msk [vmem:[%s8256_s27 + $0xfd] sm:$0x1] %vm919_vm1, %v4077_v40  ;;  %v3979_v42 = vcombine.high %v3975_v3, %v3975_v3 }
 0x2bf   : > { %4121 = vst.msk [vmem:[%s8256_s27 + $0x5d] sm:$0x1] %vm919_vm1, %v3978_v12  ;;  %4123 = vst.msk [vmem:[%s8256_s27 + $0x6d] sm:$0x1] %vm919_vm1, %v3975_v3 }
 0x2c0   : > { %4124 = vst.msk [vmem:[%s8256_s27 + $0x75] sm:$0x1] %vm919_vm1, %v3977_v30  ;;  %4125 = vst.msk [vmem:[%s8256_s27 + $0x7d] sm:$0x1] %vm919_vm1, %v3979_v42 }
 0x2fd   : > { %v6459_v25 = vpop.f32.mrb[12].mxu0 }
 0x2fe   : > { %v4506_v50 = vadd.f32 %v6459_v25, %v8209_v43  ;;  %v4485_v16 = vpop.f32.mrb[13].mxu0 }
 0x2ff   : > { %v4504_v37 = vadd.f32 %v4485_v16, %v8200_v52  ;;  %v6460_v33 = vpop.f32.mrb[14].mxu0 }
 0x300   : > { %v4510_v51 = vmul.f32 0.2, %v4506_v50  ;;  %v4507_v23 = vadd.f32 %v6460_v33, %v8224_v18  ;;  %v4488_v61 = vpop.f32.mrb[15].mxu0 }
 0x301   : > { %v4508_v20 = vmul.f32 0.2, %v4504_v37  ;;  %v4505_v14 = vadd.f32 %v4488_v61, %v8194_v34 }
 0x302   : > { %v4514_v31 = vmax.f32 %v4506_v50, %v4510_v51  ;;  %v4511_v53 = vmul.f32 0.2, %v4507_v23  ;;  %v6529_v57 = vpop.f32.mrb[12].mxu1 }
 0x303   : > { %v4512_v59 = vmax.f32 %v4504_v37, %v4508_v20  ;;  %v4509_v44 = vmul.f32 0.2, %v4505_v14  ;;  %v8935_v54 = vadd.f32 %v6529_v57, %v8209_v43  ;;  %v5123_v55 = vpop.f32.mrb[13].mxu1 }
 0x304   : > { %v4618_v5 = vcombine.high %v4514_v31, %v4514_v31  ;;  %v4625_v21 = vrot.slane %v4514_v31, %v8205_v56  ;;  %v4515_v10 = vmax.f32 %v4507_v23, %v4511_v53  ;;  %v8939_v58 = vadd.f32 %v5123_v55, %v8200_v52  ;;  %v8941_v2 = vpop.f32.mrb[14].mxu1 }
 0x305   : > { %v4520_v4 = vcombine.high %v4512_v59, %v4512_v59  ;;  %v4527_v36 = vrot.slane %v4512_v59, %v8205_v56  ;;  %v4513_v6 = vmax.f32 %v4505_v14, %v4509_v44  ;;  %v5148_v7 = vmul.f32 0.2, %v8935_v54  ;;  %v8945_v24 = vpop.f32.mrb[15].mxu1 }
 0x306   : > { %v4632_v43 = vrot.slane %v4618_v5, %v8205_v56  ;;  %v4633_v11 = vcombine.high %v4625_v21, %v4625_v21  ;;  %v4641_v27 = vrot.slane %v4625_v21, %v8205_v56  ;;  %v4667_v9 = vcombine.high %v4515_v10, %v4515_v10 }
 0x307   : > { %v4534_v52 = vrot.slane %v4520_v4, %v8205_v56  ;;  %v4535_v13 = vcombine.high %v4527_v36, %v4527_v36  ;;  %v4543_v22 = vrot.slane %v4527_v36, %v8205_v56  ;;  %v4674_v15 = vrot.slane %v4515_v10, %v8205_v56 }
 0x308   : > { %v4634_v17 = vcombine.high %v4632_v43, %v4632_v43  ;;  %v4648_v19 = vrot.slane %v4632_v43, %v8205_v56  ;;  %v4655_v32 = vrot.slane %v4633_v11, %v8205_v56  ;;  %v4663_v35 = vcombine.high %v4641_v27, %v4641_v27  ;;  %4764 = vst.msk [vmem:[%s8256_s27 + $0x86] sm:$0x1] %vm919_vm1, %v4641_v27 }
 0x309   : > { %v4536_v38 = vcombine.high %v4534_v52, %v4534_v52  ;;  %v4550_v48 = vrot.slane %v4534_v52, %v8205_v56  ;;  %v4557_v60 = vrot.slane %v4535_v13, %v8205_v56  ;;  %v4565_v63 = vcombine.high %v4543_v22, %v4543_v22  ;;  %4748 = vst.msk [vmem:[%s8256_s27 + $0x6] sm:$0x1] %vm919_vm1, %v4543_v22 }
 0x30a   : > { %v4662_v47 = vrot.slane %v4634_v17, %v8205_v56  ;;  %v4664_v46 = vcombine.high %v4648_v19, %v4648_v19  ;;  %v4665_v8 = vcombine.high %v4655_v32, %v4655_v32  ;;  %4765 = vst.msk [vmem:[%s8256_s27 + $0x8e] sm:$0x1] %vm919_vm1, %v4655_v32  ;;  %4766 = vst.msk [vmem:[%s8256_s27 + $0x96] sm:$0x1] %vm919_vm1, %v4663_v35  ;;  %v5146_v14 = vmul.f32 0.2, %v8939_v58 }
 0x30b   : > { %4768 = vst.msk [vmem:[%s8256_s27 + $0xa6] sm:$0x1] %vm919_vm1, %v4648_v19  ;;  %v4681_v29 = vrot.slane %v4667_v9, %v8205_v56  ;;  %v4564_v26 = vrot.slane %v4536_v38, %v8205_v56  ;;  %v4566_v0 = vcombine.high %v4550_v48, %v4550_v48  ;;  %v4567_v49 = vcombine.high %v4557_v60, %v4557_v60 }
 0x30c   : > { %4749 = vst.msk [vmem:[%s8256_s27 + $0xe] sm:$0x1] %vm919_vm1, %v4557_v60  ;;  %4750 = vst.msk [vmem:[%s8256_s27 + $0x16] sm:$0x1] %vm919_vm1, %v4565_v63  ;;  %v4682_v41 = vcombine.high %v4674_v15, %v4674_v15  ;;  %v4666_v1 = vcombine.high %v4662_v47, %v4662_v47  ;;  %v4690_v62 = vrot.slane %v4674_v15, %v8205_v56 }
 0x30d   : > { %4752 = vst.msk [vmem:[%s8256_s27 + $0x26] sm:$0x1] %vm919_vm1, %v4550_v48  ;;  %4767 = vst.msk [vmem:[%s8256_s27 + $0x9e] sm:$0x1] %vm919_vm1, %v4665_v8  ;;  %v4683_v39 = vcombine.high %v4681_v29, %v4681_v29  ;;  %v4697_v45 = vrot.slane %v4681_v29, %v8205_v56  ;;  %v4568_v28 = vcombine.high %v4564_v26, %v4564_v26 }
 0x30e   : > { %4769 = vst.msk [vmem:[%s8256_s27 + $0xae] sm:$0x1] %vm919_vm1, %v4662_v47  ;;  %4770 = vst.msk [vmem:[%s8256_s27 + $0xb6] sm:$0x1] %vm919_vm1, %v4664_v46  ;;  %v4704_v40 = vrot.slane %v4682_v41, %v8205_v56  ;;  %v4569_v3 = vcombine.high %v4513_v6, %v4513_v6  ;;  %v4576_v30 = vrot.slane %v4513_v6, %v8205_v56 }
 0x30f   : > { %4751 = vst.msk [vmem:[%s8256_s27 + $0x1e] sm:$0x1] %vm919_vm1, %v4567_v49  ;;  %4753 = vst.msk [vmem:[%s8256_s27 + $0x2e] sm:$0x1] %vm919_vm1, %v4564_v26  ;;  %v4711_v12 = vrot.slane %v4683_v39, %v8205_v56  ;;  %v4712_v42 = vcombine.high %v4690_v62, %v4690_v62  ;;  %v4713_v25 = vcombine.high %v4697_v45, %v4697_v45 }
 0x310   : > { %4754 = vst.msk [vmem:[%s8256_s27 + $0x36] sm:$0x1] %vm919_vm1, %v4566_v0  ;;  %4771 = vst.msk [vmem:[%s8256_s27 + $0xbe] sm:$0x1] %vm919_vm1, %v4666_v1  ;;  %v5152_v50 = vmax.f32 %v8935_v54, %v5148_v7  ;;  %v4714_v16 = vcombine.high %v4704_v40, %v4704_v40  ;;  %v4583_v37 = vrot.slane %v4569_v3, %v8205_v56 }
 0x311   : > { %4772 = vst.msk [vmem:[%s8256_s27 + $0xc6] sm:$0x1] %vm919_vm1, %v4690_v62  ;;  %4776 = vst.msk [vmem:[%s8256_s27 + $0xe6] sm:$0x1] %vm919_vm1, %v4697_v45  ;;  %v4584_v33 = vcombine.high %v4576_v30, %v4576_v30  ;;  %v4592_v51 = vrot.slane %v4576_v30, %v8205_v56  ;;  %v4715_v23 = vcombine.high %v4711_v12, %v4711_v12 }
 0x312   : > { %4755 = vst.msk [vmem:[%s8256_s27 + $0x3e] sm:$0x1] %vm919_vm1, %v4568_v28  ;;  %4773 = vst.msk [vmem:[%s8256_s27 + $0xce] sm:$0x1] %vm919_vm1, %v4704_v40  ;;  %v5256_v61 = vcombine.high %v5152_v50, %v5152_v50  ;;  %v5263_v20 = vrot.slane %v5152_v50, %v8205_v56  ;;  %v4585_v31 = vcombine.high %v4583_v37, %v4583_v37 }
 0x313   : > { %4774 = vst.msk [vmem:[%s8256_s27 + $0xd6] sm:$0x1] %vm919_vm1, %v4712_v42  ;;  %4777 = vst.msk [vmem:[%s8256_s27 + $0xee] sm:$0x1] %vm919_vm1, %v4711_v12  ;;  %v4599_v53 = vrot.slane %v4583_v37, %v8205_v56  ;;  %v4606_v57 = vrot.slane %v4584_v33, %v8205_v56  ;;  %v4614_v59 = vcombine.high %v4592_v51, %v4592_v51 }
 0x314   : > { %4778 = vst.msk [vmem:[%s8256_s27 + $0xf6] sm:$0x1] %vm919_vm1, %v4713_v25  ;;  %4775 = vst.msk [vmem:[%s8256_s27 + $0xde] sm:$0x1] %vm919_vm1, %v4714_v16  ;;  %v5270_v44 = vrot.slane %v5256_v61, %v8205_v56  ;;  %v5271_v54 = vcombine.high %v5263_v20, %v5263_v20  ;;  %v5279_v55 = vrot.slane %v5263_v20, %v8205_v56 }
 0x315   : > { %4756 = vst.msk [vmem:[%s8256_s27 + $0x46] sm:$0x1] %vm919_vm1, %v4592_v51  ;;  %4779 = vst.msk [vmem:[%s8256_s27 + $0xfe] sm:$0x1] %vm919_vm1, %v4715_v23  ;;  %v5150_v5 = vmax.f32 %v8939_v58, %v5146_v14  ;;  %v4613_v21 = vrot.slane %v4585_v31, %v8205_v56  ;;  %v4615_v10 = vcombine.high %v4599_v53, %v4599_v53 }
 0x316   : > { %v4616_v4 = vcombine.high %v4606_v57, %v4606_v57  ;;  %4757 = vst.msk [vmem:[%s8256_s27 + $0x4e] sm:$0x1] %vm919_vm1, %v4606_v57  ;;  %4758 = vst.msk [vmem:[%s8256_s27 + $0x56] sm:$0x1] %vm919_vm1, %v4614_v59  ;;  %v5145_v36 = vadd.f32 %v8941_v2, %v8224_v18  ;;  %v5272_v6 = vcombine.high %v5270_v44, %v5270_v44 }
 0x317   : > { %4760 = vst.msk [vmem:[%s8256_s27 + $0x66] sm:$0x1] %vm919_vm1, %v4599_v53  ;;  %v5286_v7 = vrot.slane %v5270_v44, %v8205_v56  ;;  %v5293_v58 = vrot.slane %v5271_v54, %v8205_v56  ;;  %v5301_v43 = vcombine.high %v5279_v55, %v5279_v55  ;;  %5402 = vst.msk [vmem:[%s8256_s27 + $0x87] sm:$0x1] %vm919_vm1, %v5279_v55 }
 0x318   : > { %v4617_v11 = vcombine.high %v4613_v21, %v4613_v21  ;;  %4759 = vst.msk [vmem:[%s8256_s27 + $0x5e] sm:$0x1] %vm919_vm1, %v4616_v4  ;;  %4761 = vst.msk [vmem:[%s8256_s27 + $0x6e] sm:$0x1] %vm919_vm1, %v4613_v21  ;;  %v5158_v18 = vcombine.high %v5150_v5, %v5150_v5  ;;  %v5165_v2 = vrot.slane %v5150_v5, %v8205_v56  ;;  %v5149_v27 = vmul.f32 0.2, %v5145_v36 }
 0x319   : > { %4762 = vst.msk [vmem:[%s8256_s27 + $0x76] sm:$0x1] %vm919_vm1, %v4615_v10  ;;  %v5300_v9 = vrot.slane %v5272_v6, %v8205_v56  ;;  %v5302_v52 = vcombine.high %v5286_v7, %v5286_v7  ;;  %v5303_v13 = vcombine.high %v5293_v58, %v5293_v58  ;;  %5403 = vst.msk [vmem:[%s8256_s27 + $0x8f] sm:$0x1] %vm919_vm1, %v5293_v58 }
 0x31a   : > { %5404 = vst.msk [vmem:[%s8256_s27 + $0x97] sm:$0x1] %vm919_vm1, %v5301_v43  ;;  %5406 = vst.msk [vmem:[%s8256_s27 + $0xa7] sm:$0x1] %vm919_vm1, %v5286_v7  ;;  %v5143_v22 = vadd.f32 %v8945_v24, %v8194_v34  ;;  %v5172_v15 = vrot.slane %v5158_v18, %v8205_v56  ;;  %v5173_v17 = vcombine.high %v5165_v2, %v5165_v2 }
 0x31b   : > { %4763 = vst.msk [vmem:[%s8256_s27 + $0x7e] sm:$0x1] %vm919_vm1, %v4617_v11  ;;  %v5181_v19 = vrot.slane %v5165_v2, %v8205_v56  ;;  %v5153_v32 = vmax.f32 %v5145_v36, %v5149_v27  ;;  %v5304_v35 = vcombine.high %v5300_v9, %v5300_v9  ;;  %5405 = vst.msk [vmem:[%s8256_s27 + $0x9f] sm:$0x1] %vm919_vm1, %v5303_v13 }
 0x31c   : > { %5407 = vst.msk [vmem:[%s8256_s27 + $0xaf] sm:$0x1] %vm919_vm1, %v5300_v9  ;;  %5408 = vst.msk [vmem:[%s8256_s27 + $0xb7] sm:$0x1] %vm919_vm1, %v5302_v52  ;;  %v5147_v34 = vmul.f32 0.2, %v5143_v22  ;;  %v5174_v24 = vcombine.high %v5172_v15, %v5172_v15  ;;  %v5188_v38 = vrot.slane %v5172_v15, %v8205_v56  ;;  %v5195_v48 = vrot.slane %v5173_v17, %v8205_v56 }
 0x31d   : > { %v5203_v60 = vcombine.high %v5181_v19, %v5181_v19  ;;  %5386 = vst.msk [vmem:[%s8256_s27 + $0x7] sm:$0x1] %vm919_vm1, %v5181_v19  ;;  %5409 = vst.msk [vmem:[%s8256_s27 + $0xbf] sm:$0x1] %vm919_vm1, %v5304_v35  ;;  %v5305_v63 = vcombine.high %v5153_v32, %v5153_v32  ;;  %v5312_v47 = vrot.slane %v5153_v32, %v8205_v56 }
 0x31e   : > { %v5151_v46 = vmax.f32 %v5143_v22, %v5147_v34  ;;  %v5202_v8 = vrot.slane %v5174_v24, %v8205_v56  ;;  %v5204_v29 = vcombine.high %v5188_v38, %v5188_v38  ;;  %v5205_v26 = vcombine.high %v5195_v48, %v5195_v48  ;;  %5387 = vst.msk [vmem:[%s8256_s27 + $0xf] sm:$0x1] %vm919_vm1, %v5195_v48 }
 0x31f   : > { %5388 = vst.msk [vmem:[%s8256_s27 + $0x17] sm:$0x1] %vm919_vm1, %v5203_v60  ;;  %5390 = vst.msk [vmem:[%s8256_s27 + $0x27] sm:$0x1] %vm919_vm1, %v5188_v38  ;;  %v5319_v0 = vrot.slane %v5305_v63, %v8205_v56  ;;  %v5320_v49 = vcombine.high %v5312_v47, %v5312_v47  ;;  %v5328_v41 = vrot.slane %v5312_v47, %v8205_v56 }
 0x320   : > { %v5207_v1 = vcombine.high %v5151_v46, %v5151_v46  ;;  %v5206_v39 = vcombine.high %v5202_v8, %v5202_v8  ;;  %5389 = vst.msk [vmem:[%s8256_s27 + $0x1f] sm:$0x1] %vm919_vm1, %v5205_v26  ;;  %5391 = vst.msk [vmem:[%s8256_s27 + $0x2f] sm:$0x1] %vm919_vm1, %v5202_v8  ;;  %v5214_v62 = vrot.slane %v5151_v46, %v8205_v56 }
 0x321   : > { %5392 = vst.msk [vmem:[%s8256_s27 + $0x37] sm:$0x1] %vm919_vm1, %v5204_v29  ;;  %v5321_v45 = vcombine.high %v5319_v0, %v5319_v0  ;;  %v5335_v28 = vrot.slane %v5319_v0, %v8205_v56  ;;  %v5342_v40 = vrot.slane %v5320_v49, %v8205_v56  ;;  %v5350_v3 = vcombine.high %v5328_v41, %v5328_v41 }
 0x322   : > { %5410 = vst.msk [vmem:[%s8256_s27 + $0xc7] sm:$0x1] %vm919_vm1, %v5328_v41  ;;  %5393 = vst.msk [vmem:[%s8256_s27 + $0x3f] sm:$0x1] %vm919_vm1, %v5206_v39  ;;  %v5221_v30 = vrot.slane %v5207_v1, %v8205_v56  ;;  %v5222_v12 = vcombine.high %v5214_v62, %v5214_v62  ;;  %v5230_v42 = vrot.slane %v5214_v62, %v8205_v56 }
 0x323   : > { %v5349_v25 = vrot.slane %v5321_v45, %v8205_v56  ;;  %v5351_v50 = vcombine.high %v5335_v28, %v5335_v28  ;;  %v5352_v16 = vcombine.high %v5342_v40, %v5342_v40  ;;  %5411 = vst.msk [vmem:[%s8256_s27 + $0xcf] sm:$0x1] %vm919_vm1, %v5342_v40  ;;  %5412 = vst.msk [vmem:[%s8256_s27 + $0xd7] sm:$0x1] %vm919_vm1, %v5350_v3 }
 0x324   : > { %5414 = vst.msk [vmem:[%s8256_s27 + $0xe7] sm:$0x1] %vm919_vm1, %v5335_v28  ;;  %v5223_v37 = vcombine.high %v5221_v30, %v5221_v30  ;;  %v5237_v33 = vrot.slane %v5221_v30, %v8205_v56  ;;  %v5244_v51 = vrot.slane %v5222_v12, %v8205_v56  ;;  %v5252_v23 = vcombine.high %v5230_v42, %v5230_v42 }
 0x325   : > { %5394 = vst.msk [vmem:[%s8256_s27 + $0x47] sm:$0x1] %vm919_vm1, %v5230_v42  ;;  %v5353_v61 = vcombine.high %v5349_v25, %v5349_v25  ;;  %5413 = vst.msk [vmem:[%s8256_s27 + $0xdf] sm:$0x1] %vm919_vm1, %v5352_v16 }
 0x326   : > { %5415 = vst.msk [vmem:[%s8256_s27 + $0xef] sm:$0x1] %vm919_vm1, %v5349_v25  ;;  %5416 = vst.msk [vmem:[%s8256_s27 + $0xf7] sm:$0x1] %vm919_vm1, %v5351_v50  ;;  %v5251_v20 = vrot.slane %v5223_v37, %v8205_v56  ;;  %v5253_v14 = vcombine.high %v5237_v33, %v5237_v33  ;;  %v5254_v31 = vcombine.high %v5244_v51, %v5244_v51 }
 0x327   : > { %5395 = vst.msk [vmem:[%s8256_s27 + $0x4f] sm:$0x1] %vm919_vm1, %v5244_v51  ;;  %5396 = vst.msk [vmem:[%s8256_s27 + $0x57] sm:$0x1] %vm919_vm1, %v5252_v23 }
 0x328   : > { %5398 = vst.msk [vmem:[%s8256_s27 + $0x67] sm:$0x1] %vm919_vm1, %v5237_v33  ;;  %5417 = vst.msk [vmem:[%s8256_s27 + $0xff] sm:$0x1] %vm919_vm1, %v5353_v61  ;;  %v5255_v56 = vcombine.high %v5251_v20, %v5251_v20 }
 0x329   : > { %5397 = vst.msk [vmem:[%s8256_s27 + $0x5f] sm:$0x1] %vm919_vm1, %v5254_v31  ;;  %5399 = vst.msk [vmem:[%s8256_s27 + $0x6f] sm:$0x1] %vm919_vm1, %v5251_v20 }
 0x32a   : > { %5400 = vst.msk [vmem:[%s8256_s27 + $0x77] sm:$0x1] %vm919_vm1, %v5253_v14  ;;  %5401 = vst.msk [vmem:[%s8256_s27 + $0x7f] sm:$0x1] %vm919_vm1, %v5255_v56 }
 0x32b   : > { %6815 = shalt.err (!%p6812_p6)
}
 0x32c   : > { %s6816_s5 = scalar_lea.hbm %s9127_s29, 4096  ;;  %s6820_s24 = scalar_lea.hbm %s9198_s3, 16384 }
 0x32d   : > { %p6817_p7 = scmp.ne.s32.totalorder %s9127_s29, %s6816_s5  ;;  %p6821_p11 = scmp.lt.u32.totalorder %s9127_s29, %s9198_s3 }
 0x32e   : > { %p6822_p12 = scmp.lt.u32.totalorder %s6820_s24, %s6816_s5  ;;  %p6824_p0 = scmp.lt.u32.totalorder %s6816_s5, %s9127_s29 }
 0x32f   : > { %p6818_p9 = pnand %p6817_p7, %p6979_p3 }
 0x330   : > { %p6823_p13 = por %p6822_p12, %p6821_p11 }
 0x331   : > { %p6819_p10 = pneg %p6818_p9 }
 0x332   : > { %p6825_p1 = por %p6824_p0, %p6823_p13 }
 0x334   : > { %p6826_p2 = pnand %p6825_p1, %p6819_p10 }
 0x336   : > { %6829 = shalt.err (!%p6826_p2)
}
 0x337   : > { %s6905_s15 = smov 128   ;;  %s6906_s9 = smov 256  }
 0x338   : > { %s6907_s21 = smov 8  }
 0x339   : > { %6660 = dma.vmem_to_hbm [thread:$0]  (%p6979_p3), %s9131_s7, 4096, %s9127_s29, %s9143_s10, %s6905_s15, %s6906_s9, %s6907_s21  }
 0x33a PF: > { %p6666_p4 = scmp.ge.s32.totalorder %s6896_s19, 2  ;;  %s5448_s4 = sand.u32 1, %s6868_s12  }
 0x33b   : > { %s5449_s11 = scalar_lea.sflag [#allocation3], %s5448_s4 }
 0x33c   : > { %p6663_p5 = pnand %p6666_p4, %p6988_p8 }
 0x33e   : > { %6863 = dma.done.wait (!%p6663_p5), %s5449_s11, 4096  }
 0x33f   : > { %6865 = vsyncadd (!%p6663_p5), %s5449_s11, 4294963200  ;;  %s16_s19 = sadd.s32 1, %s6896_s19   ;;  %s9207_s12 = smov %s6872_s13 }
 0x340   : > { %p13_p6 = scmp.ge.s32.totalorder %s16_s19, 6   ;;  %s9208_s13 = smov %s6876_s14 }
 0x341   : > { %s9209_s14 = smov %s6997_s30  ;;  %s9210_s15 = smov %s6888_s17 }
 0x342   : > { %s9211_s16 = smov %s6892_s18  ;;  %s9212_s17 = smov %s9215_s22 }
 0x343   : > { %s9213_s18 = smov %s9219_s23  ;;  %15 = sbr.rel (!%p13_p6) target bundleno = 5 (0x5), region = 79 }
 0x34a   :  { %5454 = vsyncpa [#allocation3], 1 }
 0x34b   :  { %5456 = vsyncpa [#allocation3 + $0x1], 1 }

</bundles_post_ra>
